<compile_context>
chip_gen: v5e
topology: v5e:2x2
jax: 0.10.0
libtpu: 0.0.40
codegen_flags: <defaults>
</compile_context>

<pallas_src>
import functools
import math
from typing import NamedTuple

import jax
import jax.numpy as jnp
import numpy as np
from jax import lax
from jax.experimental import pallas as pl
from jax.experimental.pallas import tpu as pltpu


class _LayerCfg(NamedTuple):
    H: int; W: int; Cin: int; Cout: int      # Cout is lane-padded for the last layer
    K: int; S: int; P: int
    OH: int; OW: int
    pool: bool
    PK: int; PS: int; PP: int
    OHp: int; OWp: int
    PH: int; PW: int
    outH: int; outW: int


def _tokenizer_kernel(x_ref, *refs, cfgs, mxu_dtype):
    """One batch element: all conv(+Identity)(+maxpool) layers, then tokens.

    x_ref   : (H0, W0, Cin0)  raw NHWC input block
    refs    : n_layers weight refs (K*K*Cin, Cout), o_ref (T, Cpad), scratches
    scratch : per layer -> xpad (Hp, Wp, Cin), col (OH*OW, K*K*Cin),
              [pool (PH, PW, Cout)]
    """
    n = len(cfgs)
    w_refs = refs[:n]
    o_ref = refs[n]
    scratch = refs[n + 1:]

    cur = x_ref[...].astype(jnp.float32)          # current layer input (H, W, Cin)

    si = 0
    for li, c in enumerate(cfgs):
        xpad_ref = scratch[si]
        col_ref = scratch[si + 1]
        si += 2
        if c.pool:
            pool_ref = scratch[si]
            si += 1

        Hp, Wp = c.H + 2 * c.P, c.W + 2 * c.P

        # ---- Conv2d zero padding done in VMEM (no wrapper pad / HBM pass).
        #      Only the pad border strips are (re)zeroed each grid step.
        if c.P > 0:
            zr = jnp.zeros((c.P, Wp, c.Cin), jnp.float32)
            xpad_ref[pl.ds(0, c.P), :, :] = zr
            xpad_ref[pl.ds(c.P + c.H, c.P), :, :] = zr
            zc = jnp.zeros((Hp, c.P, c.Cin), jnp.float32)
            xpad_ref[:, pl.ds(0, c.P), :] = zc
            xpad_ref[:, pl.ds(c.P + c.W, c.P), :] = zc
        xpad_ref[pl.ds(c.P, c.H), pl.ds(c.P, c.W), :] = cur

        # ---- im2col staging: the K*K shifted windows land side by side on the
        #      lane axis, so the whole conv is ONE MXU dot (K*K*Cin contraction)
        #      with no carried accumulator.
        for kh in range(c.K):
            for kw in range(c.K):
                if c.S == 1:
                    win = xpad_ref[pl.ds(kh, c.OH), pl.ds(kw, c.OW), :]
                else:
                    # TODO(synk): stride>1 path (strided sublane windows) is
                    # untested on hardware; the provided config uses stride=1.
                    win = xpad_ref[pl.ds(kh, c.OH, stride=c.S),
                                   pl.ds(kw, c.OW, stride=c.S), :]
                tap = kh * c.K + kw
                col_ref[:, pl.ds(tap * c.Cin, c.Cin)] = win.reshape(c.OH * c.OW, c.Cin)

        lhs = col_ref[...]
        if mxu_dtype != jnp.float32:
            lhs = lhs.astype(mxu_dtype)
        conv = jnp.dot(lhs, w_refs[li][...], preferred_element_type=jnp.float32)
        conv = conv.reshape(c.OH, c.OW, c.Cout)
        # activation=None -> nn.Identity: nothing to do.  bias=False.

        if not c.pool:
            cur = conv
            continue

        # ---- MaxPool2d(PK, PS, PP) epilogue, fully in VMEM.
        #      Fill only the -inf pad strips of the padded scratch, then store
        #      the conv interior (no full -inf broadcast, no concatenates).
        if c.PP > 0:
            pool_ref[pl.ds(0, c.PP), :, :] = jnp.full((c.PP, c.PW, c.Cout),
                                                      -jnp.inf, jnp.float32)
            pool_ref[:, pl.ds(0, c.PP), :] = jnp.full((c.PH, c.PP, c.Cout),
                                                      -jnp.inf, jnp.float32)
        nb = c.PH - c.PP - c.OH
        if nb > 0:
            pool_ref[pl.ds(c.PP + c.OH, nb), :, :] = jnp.full((nb, c.PW, c.Cout),
                                                              -jnp.inf, jnp.float32)
        nr = c.PW - c.PP - c.OW
        if nr > 0:
            pool_ref[:, pl.ds(c.PP + c.OW, nr), :] = jnp.full((c.PH, nr, c.Cout),
                                                              -jnp.inf, jnp.float32)
        pool_ref[pl.ds(c.PP, c.OH), pl.ds(c.PP, c.OW), :] = conv

        # H direction: strided reads along the cheap major dim.
        rm = pool_ref[pl.ds(0, c.OHp, stride=c.PS), :, :]
        for kh in range(1, c.PK):
            rm = jnp.maximum(rm, pool_ref[pl.ds(kh, c.OHp, stride=c.PS), :, :])
        # W direction: park row maxima back in the padded scratch (keeps the
        # -inf pad columns) and take strided sublane reads.
        pool_ref[pl.ds(0, c.OHp), :, :] = rm
        out = pool_ref[pl.ds(0, c.OHp), pl.ds(0, c.OWp, stride=c.PS), :]
        for kw in range(1, c.PK):
            out = jnp.maximum(out,
                              pool_ref[pl.ds(0, c.OHp), pl.ds(kw, c.OWp, stride=c.PS), :])
        cur = out

    # Tokenize: (outH, outW, Cpad) -> (outH*outW, Cpad).  Leading-dims-only
    # reshape; last dim is a multiple of 128 -> unmasked lane-dense stores.
    last = cfgs[-1]
    o_ref[...] = cur.reshape(last.outH * last.outW, last.Cout)


# --------------------------------- Tokenizer ---------------------------------

def init_tokenizer_weights(key, kernel_size, n_conv_layers, n_input_channels,
                           n_output_channels, in_planes):
    """Kaiming-normal conv weights (fan_in, gain=sqrt(2)), OIHW, bias=False."""
    filt = [n_input_channels] + [in_planes] * (n_conv_layers - 1) + [n_output_channels]
    ws = []
    for i in range(n_conv_layers):
        key, sub = jax.random.split(key)
        fan_in = filt[i] * kernel_size * kernel_size
        std = math.sqrt(2.0 / fan_in)
        ws.append(std * jax.random.normal(
            sub, (filt[i + 1], filt[i], kernel_size, kernel_size), jnp.float32))
    return ws


def tokenizer_forward(x_nchw, weights, *, stride, padding,
                      pooling_kernel_size=3, pooling_stride=2, pooling_padding=1,
                      max_pool=True, flatten=True, mxu_dtype=jnp.float32):
    """All conv layers of the Tokenizer fused into a single pallas_call."""
    B = x_nchw.shape[0]
    x_nhwc = jnp.transpose(x_nchw, (0, 2, 3, 1))     # NCHW -> NHWC (channels on lanes)
    _, H0, W0, C0 = x_nhwc.shape

    cfgs, w_mats, scratch = [], [], []
    h, w, cin = H0, W0, C0
    n = len(weights)
    for i, wt in enumerate(weights):
        Cout, Cin_w, K, K2 = wt.shape
        assert Cin_w == cin and K == K2
        OH = (h + 2 * padding - K) // stride + 1
        OW = (w + 2 * padding - K) // stride + 1
        last = i == n - 1
        Cpad = ((Cout + 127) // 128) * 128 if last else Cout

        # OIHW -> (K, K, Cin, Cout) -> (K*K*Cin, Cout), tap-major rows (kh*K+kw).
        wk = jnp.transpose(wt, (2, 3, 1, 0)).reshape(K * K * cin, Cout)
        wk = wk.astype(jnp.float32)
        if Cpad != Cout:
            wk = jnp.pad(wk, ((0, 0), (0, Cpad - Cout)))   # lane-pad last layer
        if mxu_dtype != jnp.float32:
            wk = wk.astype(mxu_dtype)
        w_mats.append(wk)

        if max_pool:
            OHp = (OH + 2 * pooling_padding - pooling_kernel_size) // pooling_stride + 1
            OWp = (OW + 2 * pooling_padding - pooling_kernel_size) // pooling_stride + 1
            PH = max(OH + 2 * pooling_padding, pooling_stride * (OHp - 1) + pooling_kernel_size)
            PW = max(OW + 2 * pooling_padding, pooling_stride * (OWp - 1) + pooling_kernel_size)
            outH, outW = OHp, OWp
        else:
            OHp = OWp = PH = PW = 0
            outH, outW = OH, OW

        cfgs.append(_LayerCfg(H=h, W=w, Cin=cin, Cout=Cpad, K=K, S=stride,
                              P=padding, OH=OH, OW=OW, pool=max_pool,
                              PK=pooling_kernel_size, PS=pooling_stride,
                              PP=pooling_padding, OHp=OHp, OWp=OWp, PH=PH, PW=PW,
                              outH=outH, outW=outW))

        scratch.append(pltpu.VMEM((h + 2 * padding, w + 2 * padding, cin), jnp.float32))
        scratch.append(pltpu.VMEM((OH * OW, K * K * cin), jnp.float32))
        if max_pool:
            scratch.append(pltpu.VMEM((PH, PW, Cpad), jnp.float32))

        h, w, cin = outH, outW, Cout          # next layer sees the true Cout

    T = cfgs[-1].outH * cfgs[-1].outW
    Cpad_last = cfgs[-1].Cout
    Cout_last = weights[-1].shape[0]

    kernel = functools.partial(_tokenizer_kernel, cfgs=tuple(cfgs), mxu_dtype=mxu_dtype)

    in_specs = [pl.BlockSpec((None, H0, W0, C0), lambda b: (b, 0, 0, 0))]
    for cfg in cfgs:
        in_specs.append(
            pl.BlockSpec((cfg.K * cfg.K * cfg.Cin, cfg.Cout), lambda b: (0, 0)))

    out = pl.pallas_call(
        kernel,
        out_shape=jax.ShapeDtypeStruct((B, T, Cpad_last), jnp.float32),
        grid=(B,),
        in_specs=in_specs,
        out_specs=pl.BlockSpec((None, T, Cpad_last), lambda b: (b, 0, 0)),
        scratch_shapes=scratch,
        # B independent steps.  TODO(synk): CORE_PARALLEL / OH-tiling for v7x.
        compiler_params=pltpu.CompilerParams(dimension_semantics=("parallel",)),
    )(x_nhwc, *w_mats)

    tokens = out[:, :, :Cout_last]            # drop lane-pad channels
    if flatten:
        return tokens                         # == Flatten(2,3).transpose(-2,-1)
    hw = tokens.reshape(B, cfgs[-1].outH, cfgs[-1].outW, Cout_last)
    return jnp.transpose(hw, (0, 3, 1, 2))    # back to NCHW


# ----------------------------- Pure-JAX reference ----------------------------

def tokenizer_reference(x_nchw, weights, *, stride, padding,
                        pool_k=3, pool_s=2, pool_p=1):
    h = x_nchw
    for w in weights:
        h = lax.conv_general_dilated(
            h, w, (stride, stride), ((padding, padding), (padding, padding)),
            dimension_numbers=("NCHW", "OIHW", "NCHW"),
            precision=lax.Precision.HIGHEST)
        h = lax.reduce_window(
            h, -jnp.inf, lax.max,
            window_dimensions=(1, 1, pool_k, pool_k),
            window_strides=(1, 1, pool_s, pool_s),
            padding=((0, 0), (0, 0), (pool_p, pool_p), (pool_p, pool_p)))
    B, C, H, W = h.shape
    return jnp.transpose(h.reshape(B, C, H * W), (0, 2, 1))


# ------------------------------------ Main -----------------------------------

if __name__ == "__main__":
    # Module config: n_conv_layers=1, conv_bias=False, activation=None (Identity),
    # max_pool=True, flatten=True.
    kernel_size, stride, padding = 3, 1, 1
    n_input_channels, n_output_channels, in_planes = 4, 32, 32
    B, H, W = 2, 16, 16

    key = jax.random.PRNGKey(0)
    kx, kw = jax.random.split(key)
    x = jax.random.normal(kx, (B, n_input_channels, H, W), jnp.float32)
    weights = init_tokenizer_weights(kw, kernel_size, 1, n_input_channels,
                                     n_output_channels, in_planes)

    out = tokenizer_forward(x, weights, stride=stride, padding=padding)
    out = jax.block_until_ready(out)

    ref = tokenizer_reference(x, weights, stride=stride, padding=padding)
    assert out.shape == (B, (H // 2) * (W // 2), n_output_channels), out.shape
    np.testing.assert_allclose(np.asarray(out), np.asarray(ref),
                               rtol=1e-2, atol=1e-2)
    print("KERNEL_OK")
</pallas_src>

<mosaic_0001>
module attributes {stable_mosaic.version = 11 : i64} {
  func.func @_tokenizer_kernel(%arg0: i32, %arg1: memref<1x16x16x4xf32, #tpu.memory_space<vmem>>, %arg2: memref<36x128xf32, #tpu.memory_space<vmem>>, %arg3: memref<1x64x128xf32, #tpu.memory_space<vmem>>, %arg4: memref<18x18x4xf32, #tpu.memory_space<vmem>>, %arg5: memref<256x36xf32, #tpu.memory_space<vmem>>, %arg6: memref<18x18x128xf32, #tpu.memory_space<vmem>>) attributes {dimension_semantics = [#tpu.dimension_semantics<parallel>], iteration_bounds = array<i64: 2>, scalar_prefetch = 0 : i64, scratch_operands = 3 : i64, tpu.core_type = #tpu.core_type<tc>, window_params = [{transform_indices = @transform_0, window_bounds = array<i64: 1, 16, 16, 4>}, {pipeline_mode = #tpu.pipeline_mode<synchronous>, transform_indices = @transform_1, window_bounds = array<i64: 36, 128>}, {transform_indices = @transform_2, window_bounds = array<i64: 1, 64, 128>}]} {
    %c0 = arith.constant 0 : index
    %c0_0 = arith.constant 0 : index
    %c0_1 = arith.constant 0 : index
    %c0_2 = arith.constant 0 : index
    %0 = vector.load %arg1[%c0, %c0_0, %c0_1, %c0_2] : memref<1x16x16x4xf32, #tpu.memory_space<vmem>>, vector<1x16x16x4xf32>
    %1 = vector.shape_cast %0 : vector<1x16x16x4xf32> to vector<16x16x4xf32>
    %cst = arith.constant 0.000000e+00 : f32
    %2 = vector.broadcast %cst : f32 to vector<1x18x4xf32>
    %c0_3 = arith.constant 0 : index
    %c0_4 = arith.constant 0 : index
    %c0_5 = arith.constant 0 : index
    %3 = vector.load %arg4[%c0_3, %c0_4, %c0_5] : memref<18x18x4xf32, #tpu.memory_space<vmem>>, vector<1x18x4xf32>
    tpu.vector_store %arg4[%c0_3, %c0_4, %c0_5], %2 {strides = array<i32>} : memref<18x18x4xf32, #tpu.memory_space<vmem>>, vector<1x18x4xf32>,
    %c17 = arith.constant 17 : index
    %c0_6 = arith.constant 0 : index
    %c0_7 = arith.constant 0 : index
    %4 = vector.load %arg4[%c17, %c0_6, %c0_7] : memref<18x18x4xf32, #tpu.memory_space<vmem>>, vector<1x18x4xf32>
    tpu.vector_store %arg4[%c17, %c0_6, %c0_7], %2 {strides = array<i32>} : memref<18x18x4xf32, #tpu.memory_space<vmem>>, vector<1x18x4xf32>,
    %cst_8 = arith.constant 0.000000e+00 : f32
    %5 = vector.broadcast %cst_8 : f32 to vector<18x1x4xf32>
    %c0_9 = arith.constant 0 : index
    %c0_10 = arith.constant 0 : index
    %c0_11 = arith.constant 0 : index
    %6 = vector.load %arg4[%c0_9, %c0_10, %c0_11] : memref<18x18x4xf32, #tpu.memory_space<vmem>>, vector<18x1x4xf32>
    tpu.vector_store %arg4[%c0_9, %c0_10, %c0_11], %5 {strides = array<i32>} : memref<18x18x4xf32, #tpu.memory_space<vmem>>, vector<18x1x4xf32>,
    %c0_12 = arith.constant 0 : index
    %c17_13 = arith.constant 17 : index
    %c0_14 = arith.constant 0 : index
    %7 = vector.load %arg4[%c0_12, %c17_13, %c0_14] : memref<18x18x4xf32, #tpu.memory_space<vmem>>, vector<18x1x4xf32>
    tpu.vector_store %arg4[%c0_12, %c17_13, %c0_14], %5 {strides = array<i32>} : memref<18x18x4xf32, #tpu.memory_space<vmem>>, vector<18x1x4xf32>,
    %c1 = arith.constant 1 : index
    %c1_15 = arith.constant 1 : index
    %c0_16 = arith.constant 0 : index
    %8 = vector.load %arg4[%c1, %c1_15, %c0_16] : memref<18x18x4xf32, #tpu.memory_space<vmem>>, vector<16x16x4xf32>
    tpu.vector_store %arg4[%c1, %c1_15, %c0_16], %1 {strides = array<i32>} : memref<18x18x4xf32, #tpu.memory_space<vmem>>, vector<16x16x4xf32>,
    %c0_17 = arith.constant 0 : index
    %c0_18 = arith.constant 0 : index
    %c0_19 = arith.constant 0 : index
    %9 = vector.load %arg4[%c0_17, %c0_18, %c0_19] : memref<18x18x4xf32, #tpu.memory_space<vmem>>, vector<16x16x4xf32>
    %10 = vector.shape_cast %9 : vector<16x16x4xf32> to vector<256x4xf32>
    %c0_20 = arith.constant 0 : index
    %c0_21 = arith.constant 0 : index
    %11 = vector.load %arg5[%c0_20, %c0_21] : memref<256x36xf32, #tpu.memory_space<vmem>>, vector<256x4xf32>
    tpu.vector_store %arg5[%c0_20, %c0_21], %10 {strides = array<i32>} : memref<256x36xf32, #tpu.memory_space<vmem>>, vector<256x4xf32>,
    %c0_22 = arith.constant 0 : index
    %c1_23 = arith.constant 1 : index
    %c0_24 = arith.constant 0 : index
    %12 = vector.load %arg4[%c0_22, %c1_23, %c0_24] : memref<18x18x4xf32, #tpu.memory_space<vmem>>, vector<16x16x4xf32>
    %13 = vector.shape_cast %12 : vector<16x16x4xf32> to vector<256x4xf32>
    %c0_25 = arith.constant 0 : index
    %c4 = arith.constant 4 : index
    %14 = vector.load %arg5[%c0_25, %c4] : memref<256x36xf32, #tpu.memory_space<vmem>>, vector<256x4xf32>
    tpu.vector_store %arg5[%c0_25, %c4], %13 {strides = array<i32>} : memref<256x36xf32, #tpu.memory_space<vmem>>, vector<256x4xf32>,
    %c0_26 = arith.constant 0 : index
    %c2 = arith.constant 2 : index
    %c0_27 = arith.constant 0 : index
    %15 = vector.load %arg4[%c0_26, %c2, %c0_27] : memref<18x18x4xf32, #tpu.memory_space<vmem>>, vector<16x16x4xf32>
    %16 = vector.shape_cast %15 : vector<16x16x4xf32> to vector<256x4xf32>
    %c0_28 = arith.constant 0 : index
    %c8 = arith.constant 8 : index
    %17 = vector.load %arg5[%c0_28, %c8] : memref<256x36xf32, #tpu.memory_space<vmem>>, vector<256x4xf32>
    tpu.vector_store %arg5[%c0_28, %c8], %16 {strides = array<i32>} : memref<256x36xf32, #tpu.memory_space<vmem>>, vector<256x4xf32>,
    %c1_29 = arith.constant 1 : index
    %c0_30 = arith.constant 0 : index
    %c0_31 = arith.constant 0 : index
    %18 = vector.load %arg4[%c1_29, %c0_30, %c0_31] : memref<18x18x4xf32, #tpu.memory_space<vmem>>, vector<16x16x4xf32>
    %19 = vector.shape_cast %18 : vector<16x16x4xf32> to vector<256x4xf32>
    %c0_32 = arith.constant 0 : index
    %c12 = arith.constant 12 : index
    %20 = vector.load %arg5[%c0_32, %c12] : memref<256x36xf32, #tpu.memory_space<vmem>>, vector<256x4xf32>
    tpu.vector_store %arg5[%c0_32, %c12], %19 {strides = array<i32>} : memref<256x36xf32, #tpu.memory_space<vmem>>, vector<256x4xf32>,
    %c1_33 = arith.constant 1 : index
    %c1_34 = arith.constant 1 : index
    %c0_35 = arith.constant 0 : index
    %21 = vector.load %arg4[%c1_33, %c1_34, %c0_35] : memref<18x18x4xf32, #tpu.memory_space<vmem>>, vector<16x16x4xf32>
    %22 = vector.shape_cast %21 : vector<16x16x4xf32> to vector<256x4xf32>
    %c0_36 = arith.constant 0 : index
    %c16 = arith.constant 16 : index
    %23 = vector.load %arg5[%c0_36, %c16] : memref<256x36xf32, #tpu.memory_space<vmem>>, vector<256x4xf32>
    tpu.vector_store %arg5[%c0_36, %c16], %22 {strides = array<i32>} : memref<256x36xf32, #tpu.memory_space<vmem>>, vector<256x4xf32>,
    %c1_37 = arith.constant 1 : index
    %c2_38 = arith.constant 2 : index
    %c0_39 = arith.constant 0 : index
    %24 = vector.load %arg4[%c1_37, %c2_38, %c0_39] : memref<18x18x4xf32, #tpu.memory_space<vmem>>, vector<16x16x4xf32>
    %25 = vector.shape_cast %24 : vector<16x16x4xf32> to vector<256x4xf32>
    %c0_40 = arith.constant 0 : index
    %c20 = arith.constant 20 : index
    %26 = vector.load %arg5[%c0_40, %c20] : memref<256x36xf32, #tpu.memory_space<vmem>>, vector<256x4xf32>
    tpu.vector_store %arg5[%c0_40, %c20], %25 {strides = array<i32>} : memref<256x36xf32, #tpu.memory_space<vmem>>, vector<256x4xf32>,
    %c2_41 = arith.constant 2 : index
    %c0_42 = arith.constant 0 : index
    %c0_43 = arith.constant 0 : index
    %27 = vector.load %arg4[%c2_41, %c0_42, %c0_43] : memref<18x18x4xf32, #tpu.memory_space<vmem>>, vector<16x16x4xf32>
    %28 = vector.shape_cast %27 : vector<16x16x4xf32> to vector<256x4xf32>
    %c0_44 = arith.constant 0 : index
    %c24 = arith.constant 24 : index
    %29 = vector.load %arg5[%c0_44, %c24] : memref<256x36xf32, #tpu.memory_space<vmem>>, vector<256x4xf32>
    tpu.vector_store %arg5[%c0_44, %c24], %28 {strides = array<i32>} : memref<256x36xf32, #tpu.memory_space<vmem>>, vector<256x4xf32>,
    %c2_45 = arith.constant 2 : index
    %c1_46 = arith.constant 1 : index
    %c0_47 = arith.constant 0 : index
    %30 = vector.load %arg4[%c2_45, %c1_46, %c0_47] : memref<18x18x4xf32, #tpu.memory_space<vmem>>, vector<16x16x4xf32>
    %31 = vector.shape_cast %30 : vector<16x16x4xf32> to vector<256x4xf32>
    %c0_48 = arith.constant 0 : index
    %c28 = arith.constant 28 : index
    %32 = vector.load %arg5[%c0_48, %c28] : memref<256x36xf32, #tpu.memory_space<vmem>>, vector<256x4xf32>
    tpu.vector_store %arg5[%c0_48, %c28], %31 {strides = array<i32>} : memref<256x36xf32, #tpu.memory_space<vmem>>, vector<256x4xf32>,
    %c2_49 = arith.constant 2 : index
    %c2_50 = arith.constant 2 : index
    %c0_51 = arith.constant 0 : index
    %33 = vector.load %arg4[%c2_49, %c2_50, %c0_51] : memref<18x18x4xf32, #tpu.memory_space<vmem>>, vector<16x16x4xf32>
    %34 = vector.shape_cast %33 : vector<16x16x4xf32> to vector<256x4xf32>
    %c0_52 = arith.constant 0 : index
    %c32 = arith.constant 32 : index
    %35 = vector.load %arg5[%c0_52, %c32] : memref<256x36xf32, #tpu.memory_space<vmem>>, vector<256x4xf32>
    tpu.vector_store %arg5[%c0_52, %c32], %34 {strides = array<i32>} : memref<256x36xf32, #tpu.memory_space<vmem>>, vector<256x4xf32>,
    %c0_53 = arith.constant 0 : index
    %c0_54 = arith.constant 0 : index
    %36 = vector.load %arg5[%c0_53, %c0_54] : memref<256x36xf32, #tpu.memory_space<vmem>>, vector<256x36xf32>
    %c0_55 = arith.constant 0 : index
    %c0_56 = arith.constant 0 : index
    %37 = vector.load %arg2[%c0_55, %c0_56] : memref<36x128xf32, #tpu.memory_space<vmem>>, vector<36x128xf32>
    %cst_57 = arith.constant dense<0.000000e+00> : vector<256x128xf32>
    %38 = tpu.matmul %36, %37, %cst_57 {dimension_numbers = #tpu.dot_dimension_numbers<[1], [0], [0], [1], [0, 0, 1, 1], [], []>} : vector<256x36xf32>, vector<36x128xf32>, vector<256x128xf32> -> vector<256x128xf32>
    %39 = vector.shape_cast %38 : vector<256x128xf32> to vector<16x16x128xf32>
    %cst_58 = arith.constant 0xFF800000 : f32
    %40 = vector.broadcast %cst_58 : f32 to vector<1x18x128xf32>
    %c0_59 = arith.constant 0 : index
    %c0_60 = arith.constant 0 : index
    %c0_61 = arith.constant 0 : index
    %41 = vector.load %arg6[%c0_59, %c0_60, %c0_61] : memref<18x18x128xf32, #tpu.memory_space<vmem>>, vector<1x18x128xf32>
    tpu.vector_store %arg6[%c0_59, %c0_60, %c0_61], %40 {strides = array<i32>} : memref<18x18x128xf32, #tpu.memory_space<vmem>>, vector<1x18x128xf32>,
    %cst_62 = arith.constant 0xFF800000 : f32
    %42 = vector.broadcast %cst_62 : f32 to vector<18x1x128xf32>
    %c0_63 = arith.constant 0 : index
    %c0_64 = arith.constant 0 : index
    %c0_65 = arith.constant 0 : index
    %43 = vector.load %arg6[%c0_63, %c0_64, %c0_65] : memref<18x18x128xf32, #tpu.memory_space<vmem>>, vector<18x1x128xf32>
    tpu.vector_store %arg6[%c0_63, %c0_64, %c0_65], %42 {strides = array<i32>} : memref<18x18x128xf32, #tpu.memory_space<vmem>>, vector<18x1x128xf32>,
    %cst_66 = arith.constant 0xFF800000 : f32
    %44 = vector.broadcast %cst_66 : f32 to vector<1x18x128xf32>
    %c17_67 = arith.constant 17 : index
    %c0_68 = arith.constant 0 : index
    %c0_69 = arith.constant 0 : index
    %45 = vector.load %arg6[%c17_67, %c0_68, %c0_69] : memref<18x18x128xf32, #tpu.memory_space<vmem>>, vector<1x18x128xf32>
    tpu.vector_store %arg6[%c17_67, %c0_68, %c0_69], %44 {strides = array<i32>} : memref<18x18x128xf32, #tpu.memory_space<vmem>>, vector<1x18x128xf32>,
    %cst_70 = arith.constant 0xFF800000 : f32
    %46 = vector.broadcast %cst_70 : f32 to vector<18x1x128xf32>
    %c0_71 = arith.constant 0 : index
    %c17_72 = arith.constant 17 : index
    %c0_73 = arith.constant 0 : index
    %47 = vector.load %arg6[%c0_71, %c17_72, %c0_73] : memref<18x18x128xf32, #tpu.memory_space<vmem>>, vector<18x1x128xf32>
    tpu.vector_store %arg6[%c0_71, %c17_72, %c0_73], %46 {strides = array<i32>} : memref<18x18x128xf32, #tpu.memory_space<vmem>>, vector<18x1x128xf32>,
    %c1_74 = arith.constant 1 : index
    %c1_75 = arith.constant 1 : index
    %c0_76 = arith.constant 0 : index
    %48 = vector.load %arg6[%c1_74, %c1_75, %c0_76] : memref<18x18x128xf32, #tpu.memory_space<vmem>>, vector<16x16x128xf32>
    tpu.vector_store %arg6[%c1_74, %c1_75, %c0_76], %39 {strides = array<i32>} : memref<18x18x128xf32, #tpu.memory_space<vmem>>, vector<16x16x128xf32>,
    %c0_77 = arith.constant 0 : index
    %c0_78 = arith.constant 0 : index
    %c0_79 = arith.constant 0 : index
    %49 = tpu.strided_load %arg6[%c0_77, %c0_78, %c0_79] {strides = array<i32: 2, 1, 1>} : memref<18x18x128xf32, #tpu.memory_space<vmem>>, vector<8x18x128xf32>
    %c1_80 = arith.constant 1 : index
    %c0_81 = arith.constant 0 : index
    %c0_82 = arith.constant 0 : index
    %50 = tpu.strided_load %arg6[%c1_80, %c0_81, %c0_82] {strides = array<i32: 2, 1, 1>} : memref<18x18x128xf32, #tpu.memory_space<vmem>>, vector<8x18x128xf32>
    %51 = arith.maximumf %49, %50 : vector<8x18x128xf32>
    %c2_83 = arith.constant 2 : index
    %c0_84 = arith.constant 0 : index
    %c0_85 = arith.constant 0 : index
    %52 = tpu.strided_load %arg6[%c2_83, %c0_84, %c0_85] {strides = array<i32: 2, 1, 1>} : memref<18x18x128xf32, #tpu.memory_space<vmem>>, vector<8x18x128xf32>
    %53 = arith.maximumf %51, %52 : vector<8x18x128xf32>
    %c0_86 = arith.constant 0 : index
    %c0_87 = arith.constant 0 : index
    %c0_88 = arith.constant 0 : index
    %54 = vector.load %arg6[%c0_86, %c0_87, %c0_88] : memref<18x18x128xf32, #tpu.memory_space<vmem>>, vector<8x18x128xf32>
    tpu.vector_store %arg6[%c0_86, %c0_87, %c0_88], %53 {strides = array<i32>} : memref<18x18x128xf32, #tpu.memory_space<vmem>>, vector<8x18x128xf32>,
    %c0_89 = arith.constant 0 : index
    %c0_90 = arith.constant 0 : index
    %c0_91 = arith.constant 0 : index
    %55 = tpu.strided_load %arg6[%c0_89, %c0_90, %c0_91] {strides = array<i32: 1, 2, 1>} : memref<18x18x128xf32, #tpu.memory_space<vmem>>, vector<8x8x128xf32>
    %c0_92 = arith.constant 0 : index
    %c1_93 = arith.constant 1 : index
    %c0_94 = arith.constant 0 : index
    %56 = tpu.strided_load %arg6[%c0_92, %c1_93, %c0_94] {strides = array<i32: 1, 2, 1>} : memref<18x18x128xf32, #tpu.memory_space<vmem>>, vector<8x8x128xf32>
    %57 = arith.maximumf %55, %56 : vector<8x8x128xf32>
    %c0_95 = arith.constant 0 : index
    %c2_96 = arith.constant 2 : index
    %c0_97 = arith.constant 0 : index
    %58 = tpu.strided_load %arg6[%c0_95, %c2_96, %c0_97] {strides = array<i32: 1, 2, 1>} : memref<18x18x128xf32, #tpu.memory_space<vmem>>, vector<8x8x128xf32>
    %59 = arith.maximumf %57, %58 : vector<8x8x128xf32>
    %60 = vector.shape_cast %59 : vector<8x8x128xf32> to vector<64x128xf32>
    %c0_98 = arith.constant 0 : index
    %c0_99 = arith.constant 0 : index
    %c0_100 = arith.constant 0 : index
    %61 = vector.load %arg3[%c0_98, %c0_99, %c0_100] : memref<1x64x128xf32, #tpu.memory_space<vmem>>, vector<1x64x128xf32>
    %62 = vector.shape_cast %61 : vector<1x64x128xf32> to vector<64x128xf32>
    %63 = vector.shape_cast %60 : vector<64x128xf32> to vector<1x64x128xf32>
    tpu.vector_store %arg3[%c0_98, %c0_99, %c0_100], %63 {strides = array<i32>} : memref<1x64x128xf32, #tpu.memory_space<vmem>>, vector<1x64x128xf32>,
    return
  }
  func.func @transform_0(%arg0: i32) -> (i32, i32, i32, i32) {
    %c0_i32 = arith.constant 0 : i32
    %c0_i32_0 = arith.constant 0 : i32
    %c0_i32_1 = arith.constant 0 : i32
    %c0_i32_2 = arith.constant 0 : i32
    return %arg0, %c0_i32, %c0_i32_0, %c0_i32_1 : i32, i32, i32, i32
  }
  func.func @transform_1(%arg0: i32) -> (i32, i32) {
    %c0_i32 = arith.constant 0 : i32
    %c0_i32_0 = arith.constant 0 : i32
    %c0_i32_1 = arith.constant 0 : i32
    return %c0_i32, %c0_i32_0 : i32, i32
  }
  func.func @transform_2(%arg0: i32) -> (i32, i32, i32) {
    %c0_i32 = arith.constant 0 : i32
    %c0_i32_0 = arith.constant 0 : i32
    %c0_i32_1 = arith.constant 0 : i32
    return %arg0, %c0_i32, %c0_i32_0 : i32, i32, i32
  }
}

</mosaic_0001>

<bundles_post_ra>
// kernel: tpu_custom_call.1
= control target key start
LH: loop header
LB: loop body
LE: loop exit
PB: predicated region body
PF: predicated region fallthrough
CT: control target
= control target key end

     0   :  { %7 = vsyncpa [#allocation6], 0  ;;  %s3922_s0 = inlined_call_operand.vmem [shape: f32[2,16,16,4], index: 0, kind: input, shape index: {}]   ;;  %s3923_s1 = inlined_call_operand.vmem [shape: f32[36,128], index: 1, kind: input, shape index: {}]   ;;  %s3924_s2 = inlined_call_operand.hbm [shape: f32[2,64,128], index: 2, kind: output, shape index: {}]  }
   0x1   :  { %9 = vsyncpa [#allocation6 + $0x1], 0  ;;  %s2685_s9 = smov 0   ;;  %s2687_s10 = smov 0  }
   0x2   :  { %s2689_s11 = smov 0   ;;  %s2691_s12 = smov 0  }
   0x3 LB: > { %s2706_s13 = sadd.s32 4294967295, %s2657_s12   ;;  %s2483_s14 = sadd.s32 4294967294, %s2657_s12   ;;  %s2657_s12 = sphi %s2691_s12, %s4021_s12   ;;  %s2653_s11 = sphi %s2689_s11, %s4020_s11   ;;  %s2649_s10 = sphi %s2687_s10, %s4019_s10   ;;  %s2645_s9 = sphi %s2685_s9, %s4018_s9  }
   0x4   : > { %s2710_s15 = sadd.s32 1, %s2657_s12   ;;  %s69_s16 = sadd.s32 1, %s2653_s11 }
   0x5   : > { %s66_s17 = ssub.s32 %s2657_s12, %s2710_s15  ;;  %p79_p0 = scmp.ne.s32.totalorder %s2653_s11, %s2649_s10 }
   0x6   : > { %p67_p1 = scmp.eq.s32.totalorder %s66_s17, 0  ;;  %p80_p2 = scmp.eq.s32.totalorder %s2706_s13, 1 }
   0x7   : > { %p85_p3 = scmp.ne.s32.totalorder %s2649_s10, %s2645_s9  ;;  %p86_p4 = scmp.eq.s32.totalorder %s2483_s14, 1 }
   0x8   : > { %s2721_s18 = scalar_select %p67_p1, %s2653_s11, %s69_s16  }
   0x9   : > { %p2723_p5 = por %p80_p2, %p79_p0  ;;  %p2727_p6 = por %p86_p4, %p85_p3 }
   0xa   : > { %p2486_p7 = scmp.ge.s32.totalorder %s2657_s12, 1  ;;  %p115_p8 = scmp.lt.s32.totalorder %s2657_s12, 3 }
   0xc   : > { %p116_p9 = pnand %p2486_p7, %p115_p8 }
   0xe   : > { %119 = sbr.rel (%p116_p9) target bundleno = 1019 (0x3fb), region = 28 }
  0x13   : > { %vm174_vm0 = vcmask 31744   ;;  %v2659_v0 = vmov 0.0   ;;  %vm183_vm1 = vcmask 24576   ;;  %s2660_s21 = smov 4   ;;  %p137_p10 = scmp.lt.s32.totalorder %s2706_s13, 1  ;;  %vm177_vm2 = vcmask 25600  }
  0x14   : > { %175 = vst.msk [vmem:[#allocation2] sm:$0xff] %vm174_vm0, %v2659_v0  ;;  %vm477_vm3 = vcmask 64544   ;;  %s2661_s27 = smov 8   ;;  %s2662_s28 = smov 12   ;;  %vm670_vm4 = vcmask 97344   ;;  %vm863_vm5 = vcmask 130144  }
  0x15   : > { %176 = vst.msk [vmem:[#allocation2 + $0x8] sm:$0xff] %vm174_vm0, %v2659_v0  ;;  %s138_s22 = scalar_select %p137_p10, %s2706_s13, 1  ;;  %vm1056_vm6 = vcmask 162944   ;;  %vm1249_vm7 = vcmask 195744   ;;  %vm1443_vm8 = vcmask 228544   ;;  %vm1996_vm9 = vcmask 1043456  }
  0x16   : > { %184 = vst.msk [vmem:[#allocation2] sm:$0x1] %vm183_vm1, %v2659_v0  ;;  %s2663_s29 = smov 16   ;;  %s2664_s30 = smov 20   ;;  %vm1636_vm10 = vcmask 261344   ;;  %vm1829_vm11 = vcmask 294144  }
  0x17   : > { %180 = vst.msk [vmem:[#allocation2 + $0x198] sm:$0xff] %vm174_vm0, %v2659_v0  ;;  %s2528_s23 = sshll.u32 %s138_s22, 8  ;;  %s2665_s3 = smov 24   ;;  %vm1899_vm12 = vcmask 293888  }
  0x18   : > { %181 = vst.msk [vmem:[#allocation2 + $0x1a0] sm:$0xff] %vm174_vm0, %v2659_v0  ;;  %s2771_s26 = scalar_lea.vmem %s3922_s0, %s2528_s23  ;;  %s2666_s4 = smov 28  }
  0x19   : > { %185 = vst.msk [vmem:[#allocation2 + $0x18] sm:$0x1] %vm183_vm1, %v2659_v0  ;;  %v142_v2 = vld [vmem:[%s2771_s26] sm:$0xff]  ;;  %v144_v3 = vld [vmem:[%s2771_s26 + $0x10] sm:$0xff]  ;;  %v143_v4 = vld [vmem:[%s2771_s26 + $0x8] sm:$0xff]  ;;  %s2667_s5 = smov 32  }
  0x1a   : > { %186 = vst.msk [vmem:[#allocation2 + $0x30] sm:$0x1] %vm183_vm1, %v2659_v0  ;;  %v146_v5 = vld [vmem:[%s2771_s26 + $0x20] sm:$0xff]  ;;  %v145_v6 = vld [vmem:[%s2771_s26 + $0x18] sm:$0xff]  ;;  %v147_v8 = vld [vmem:[%s2771_s26 + $0x28] sm:$0xff]  ;;  %s134_s25 = sand.u32 1, %s2649_s10  }
  0x1b   : > { %187 = vst.msk [vmem:[#allocation2 + $0x48] sm:$0x1] %vm183_vm1, %v2659_v0  ;;  %v149_v9 = vld [vmem:[%s2771_s26 + $0x38] sm:$0xff]  ;;  %v148_v11 = vld [vmem:[%s2771_s26 + $0x30] sm:$0xff]  ;;  %v150_v12 = vld [vmem:[%s2771_s26 + $0x40] sm:$0xff]  ;;  %s2406_s6 = scalar_lea.sflag [#allocation6], %s134_s25 }
  0x1c   : > { %v317_v1 = vld [vmem:[#allocation2 + $0x1] sm:$0xff]  ;;  %188 = vst.msk [vmem:[#allocation2 + $0x60] sm:$0x1] %vm183_vm1, %v2659_v0  ;;  %v152_v13 = vld [vmem:[%s2771_s26 + $0x50] sm:$0xff]  ;;  %v153_v16 = vld [vmem:[%s2771_s26 + $0x58] sm:$0xff]  ;;  %s2615_s17 = scalar_lea.hbm %s3924_s2, 128 }
  0x1d   : > { %381 = vrot.lane.b32.xlu0 %v317_v1, %s2660_s21  ;;  %189 = vst.msk [vmem:[#allocation2 + $0x78] sm:$0x1] %vm183_vm1, %v2659_v0  ;;  %v151_v15 = vld [vmem:[%s2771_s26 + $0x48] sm:$0xff]  ;;  %v154_v20 = vld [vmem:[%s2771_s26 + $0x60] sm:$0xff]  ;;  %v156_v21 = vld [vmem:[%s2771_s26 + $0x70] sm:$0xff] }
  0x1e   : > { %190 = vst.msk [vmem:[#allocation2 + $0x90] sm:$0x1] %vm183_vm1, %v2659_v0  ;;  %v155_v18 = vld [vmem:[%s2771_s26 + $0x68] sm:$0xff]  ;;  %v158_v22 = vld [vmem:[%s2771_s26 + $0x80] sm:$0xff]  ;;  %v157_v24 = vld [vmem:[%s2771_s26 + $0x78] sm:$0xff] }
  0x1f   : > { %191 = vst.msk [vmem:[#allocation2 + $0xa8] sm:$0x1] %vm183_vm1, %v2659_v0  ;;  %v159_v25 = vld [vmem:[%s2771_s26 + $0x88] sm:$0xff]  ;;  %v161_v26 = vld [vmem:[%s2771_s26 + $0x98] sm:$0xff]  ;;  %v160_v28 = vld [vmem:[%s2771_s26 + $0x90] sm:$0xff] }
  0x20   : > { %192 = vst.msk [vmem:[#allocation2 + $0xc0] sm:$0x1] %vm183_vm1, %v2659_v0  ;;  %v162_v31 = vld [vmem:[%s2771_s26 + $0xa0] sm:$0xff]  ;;  %v164_v32 = vld [vmem:[%s2771_s26 + $0xb0] sm:$0xff]  ;;  %v163_v33 = vld [vmem:[%s2771_s26 + $0xa8] sm:$0xff] }
  0x21   : > { %193 = vst.msk [vmem:[#allocation2 + $0xd8] sm:$0x1] %vm183_vm1, %v2659_v0  ;;  %v165_v37 = vld [vmem:[%s2771_s26 + $0xb8] sm:$0xff]  ;;  %v167_v38 = vld [vmem:[%s2771_s26 + $0xc8] sm:$0xff]  ;;  %v166_v39 = vld [vmem:[%s2771_s26 + $0xc0] sm:$0xff] }
  0x22   : > { %194 = vst.msk [vmem:[#allocation2 + $0xf0] sm:$0x1] %vm183_vm1, %v2659_v0  ;;  %v168_v43 = vld [vmem:[%s2771_s26 + $0xd0] sm:$0xff]  ;;  %v170_v44 = vld [vmem:[%s2771_s26 + $0xe0] sm:$0xff]  ;;  %v169_v45 = vld [vmem:[%s2771_s26 + $0xd8] sm:$0xff] }
  0x23   : > { %195 = vst.msk [vmem:[#allocation2 + $0x108] sm:$0x1] %vm183_vm1, %v2659_v0  ;;  %v171_v49 = vld [vmem:[%s2771_s26 + $0xe8] sm:$0xff]  ;;  %v253_v1 = vld [vmem:[#allocation2] sm:$0xff] }
  0x24   : > { %196 = vst.msk [vmem:[#allocation2 + $0x120] sm:$0x1] %vm183_vm1, %v2659_v0 }
  0x25   : > { %197 = vst.msk [vmem:[#allocation2 + $0x138] sm:$0x1] %vm183_vm1, %v2659_v0 }
  0x26   : > { %198 = vst.msk [vmem:[#allocation2 + $0x150] sm:$0x1] %vm183_vm1, %v2659_v0 }
  0x27   : > { %199 = vst.msk [vmem:[#allocation2 + $0x168] sm:$0x1] %vm183_vm1, %v2659_v0 }
  0x28   : > { %200 = vst.msk [vmem:[#allocation2 + $0x180] sm:$0x1] %vm183_vm1, %v2659_v0 }
  0x29   : > { %203 = vst.msk [vmem:[#allocation2 + $0x29] sm:$0x1] %vm183_vm1, %v2659_v0 }
  0x2a   : > { %204 = vst.msk [vmem:[#allocation2 + $0x41] sm:$0x1] %vm183_vm1, %v2659_v0 }
  0x2b   : > { %205 = vst.msk [vmem:[#allocation2 + $0x59] sm:$0x1] %vm183_vm1, %v2659_v0 }
  0x2c   : > { %206 = vst.msk [vmem:[#allocation2 + $0x71] sm:$0x1] %vm183_vm1, %v2659_v0 }
  0x2d   : > { %207 = vst.msk [vmem:[#allocation2 + $0x89] sm:$0x1] %vm183_vm1, %v2659_v0 }
  0x2e   : > { %208 = vst.msk [vmem:[#allocation2 + $0xa1] sm:$0x1] %vm183_vm1, %v2659_v0 }
  0x2f   : > { %209 = vst.msk [vmem:[#allocation2 + $0xb9] sm:$0x1] %vm183_vm1, %v2659_v0 }
  0x30   : > { %210 = vst.msk [vmem:[#allocation2 + $0xd1] sm:$0x1] %vm183_vm1, %v2659_v0 }
  0x31   : > { %211 = vst.msk [vmem:[#allocation2 + $0xe9] sm:$0x1] %vm183_vm1, %v2659_v0 }
  0x32   : > { %212 = vst.msk [vmem:[#allocation2 + $0x101] sm:$0x1] %vm183_vm1, %v2659_v0 }
  0x33   : > { %213 = vst.msk [vmem:[#allocation2 + $0x119] sm:$0x1] %vm183_vm1, %v2659_v0 }
  0x34   : > { %214 = vst.msk [vmem:[#allocation2 + $0x131] sm:$0x1] %vm183_vm1, %v2659_v0 }
  0x35   : > { %215 = vst.msk [vmem:[#allocation2 + $0x149] sm:$0x1] %vm183_vm1, %v2659_v0 }
  0x36   : > { %216 = vst.msk [vmem:[#allocation2 + $0x161] sm:$0x1] %vm183_vm1, %v2659_v0 }
  0x37   : > { %217 = vst.msk [vmem:[#allocation2 + $0x179] sm:$0x1] %vm183_vm1, %v2659_v0 }
  0x38   : > { %218 = vst.msk [vmem:[#allocation2 + $0x191] sm:$0x1] %vm183_vm1, %v2659_v0 }
  0x39   : > { %221 = vst.msk [vmem:[#allocation2 + $0x19] sm:$0xff] %vm174_vm0, %v142_v2 }
  0x3a   : > { %201 = vst.msk [vmem:[#allocation2 + $0x198] sm:$0x1] %vm183_vm1, %v2659_v0 }
  0x3b   : > { %178 = vst.msk [vmem:[#allocation2 + $0x10] sm:$0x3] %vm177_vm2, %v2659_v0 }
  0x3c   : > { %182 = vst.msk [vmem:[#allocation2 + $0x1a8] sm:$0x3] %vm177_vm2, %v2659_v0 }
  0x3d   : > { %202 = vst.msk [vmem:[#allocation2 + $0x11] sm:$0x1] %vm183_vm1, %v2659_v0 }
  0x3e   : > { %223 = vst.msk [vmem:[#allocation2 + $0x31] sm:$0xff] %vm174_vm0, %v144_v3 }
  0x3f   : > { %219 = vst.msk [vmem:[#allocation2 + $0x1a9] sm:$0x1] %vm183_vm1, %v2659_v0 }
  0x40   : > { %v2788_v7 = vld [vmem:[#allocation2 + $0x19] sm:$0xff]  ;;  %222 = vst.msk [vmem:[#allocation2 + $0x21] sm:$0xff] %vm174_vm0, %v143_v4 }
  0x41   : > { %385 = vrot.lane.b32.xlu1 %v2788_v7, %s2660_s21  ;;  %225 = vst.msk [vmem:[#allocation2 + $0x49] sm:$0xff] %vm174_vm0, %v146_v5  ;;  %v510_v5 = vld [vmem:[#allocation2 + $0x2] sm:$0xff] }
  0x42   : > { %v318_v10 = vld [vmem:[#allocation2 + $0x9] sm:$0xff]  ;;  %224 = vst.msk [vmem:[#allocation2 + $0x39] sm:$0xff] %vm174_vm0, %v145_v6 }
  0x43   : > { %383 = vrot.lane.b32.xlu0 %v318_v10, %s2660_s21  ;;  %226 = vst.msk [vmem:[#allocation2 + $0x51] sm:$0xff] %vm174_vm0, %v147_v8  ;;  %v2980_v8 = vld [vmem:[#allocation2 + $0x18] sm:$0xff] }
  0x44   : > { %228 = vst.msk [vmem:[#allocation2 + $0x69] sm:$0xff] %vm174_vm0, %v149_v9  ;;  %v511_v4 = vld [vmem:[#allocation2 + $0xa] sm:$0xff] }
  0x45   : > { %v2803_v14 = vld [vmem:[#allocation2 + $0x31] sm:$0xff]  ;;  %227 = vst.msk [vmem:[#allocation2 + $0x61] sm:$0xff] %vm174_vm0, %v148_v11  ;;  %v254_v9 = vld [vmem:[#allocation2 + $0x8] sm:$0xff] }
  0x46   : > { %389 = vrot.lane.b32.xlu2 %v2803_v14, %s2660_s21  ;;  %229 = vst.msk [vmem:[#allocation2 + $0x79] sm:$0xff] %vm174_vm0, %v150_v12  ;;  %v2938_v58 = vld [vmem:[#allocation2 + $0x30] sm:$0xff] }
  0x47   : > { %v2811_v17 = vld [vmem:[#allocation2 + $0x21] sm:$0xff]  ;;  %231 = vst.msk [vmem:[#allocation2 + $0x91] sm:$0xff] %vm174_vm0, %v152_v13 }
  0x48   : > { %v2815_v19 = vld [vmem:[#allocation2 + $0x49] sm:$0xff]  ;;  %230 = vst.msk [vmem:[#allocation2 + $0x81] sm:$0xff] %vm174_vm0, %v151_v15  ;;  %v2977_v6 = vld [vmem:[#allocation2 + $0x1a] sm:$0xff] }
  0x49   : > { %387 = vrot.lane.b32.xlu1 %v2811_v17, %s2660_s21  ;;  %232 = vst.msk [vmem:[#allocation2 + $0x99] sm:$0xff] %vm174_vm0, %v153_v16  ;;  %v2827_v23 = vld [vmem:[#allocation2 + $0x39] sm:$0xff]  ;;  %v2995_v12 = vld [vmem:[#allocation2 + $0x22] sm:$0xff] }
  0x4a   : > { %234 = vst.msk [vmem:[#allocation2 + $0xb1] sm:$0xff] %vm174_vm0, %v155_v18  ;;  %v2837_v27 = vld [vmem:[#allocation2 + $0x51] sm:$0xff]  ;;  %v2999_v13 = vld [vmem:[#allocation2 + $0x3a] sm:$0xff]  ;;  %v3003_v16 = vld [vmem:[#allocation2 + $0x48] sm:$0xff] }
  0x4b   : > { %393 = vrot.lane.b32.xlu0 %v2815_v19, %s2660_s21  ;;  %233 = vst.msk [vmem:[#allocation2 + $0xa9] sm:$0xff] %vm174_vm0, %v154_v20  ;;  %v2842_v29 = vld [vmem:[#allocation2 + $0x69] sm:$0xff]  ;;  %v2954_v62 = vld [vmem:[#allocation2 + $0x38] sm:$0xff]  ;;  %v3001_v15 = vld [vmem:[#allocation2 + $0x20] sm:$0xff] }
  0x4c   : > { %235 = vst.msk [vmem:[#allocation2 + $0xc1] sm:$0xff] %vm174_vm0, %v156_v21  ;;  %v2850_v30 = vld [vmem:[#allocation2 + $0x61] sm:$0xff]  ;;  %v2986_v11 = vld [vmem:[#allocation2 + $0x32] sm:$0xff] }
  0x4d   : > { %237 = vst.msk [vmem:[#allocation2 + $0xd9] sm:$0xff] %vm174_vm0, %v158_v22  ;;  %v2858_v34 = vld [vmem:[#allocation2 + $0x79] sm:$0xff]  ;;  %v3020_v22 = vld [vmem:[#allocation2 + $0x4a] sm:$0xff] }
  0x4e   : > { %391 = vrot.lane.b32.xlu2 %v2827_v23, %s2660_s21  ;;  %236 = vst.msk [vmem:[#allocation2 + $0xc9] sm:$0xff] %vm174_vm0, %v157_v24  ;;  %v2862_v35 = vld [vmem:[#allocation2 + $0x91] sm:$0xff]  ;;  %v2968_v2 = vld [vmem:[#allocation2 + $0x60] sm:$0xff] }
  0x4f   : > { %238 = vst.msk [vmem:[#allocation2 + $0xe1] sm:$0xff] %vm174_vm0, %v159_v25  ;;  %v2868_v36 = vld [vmem:[#allocation2 + $0x81] sm:$0xff]  ;;  %v3009_v21 = vld [vmem:[#allocation2 + $0x52] sm:$0xff] }
  0x50   : > { %240 = vst.msk [vmem:[#allocation2 + $0xf9] sm:$0xff] %vm174_vm0, %v161_v26  ;;  %v2876_v40 = vld [vmem:[#allocation2 + $0x99] sm:$0xff]  ;;  %v3024_v24 = vld [vmem:[#allocation2 + $0x62] sm:$0xff]  ;;  %v3026_v25 = vld [vmem:[#allocation2 + $0x50] sm:$0xff] }
  0x51   : > { %395 = vrot.lane.b32.xlu1 %v2837_v27, %s2660_s21  ;;  %239 = vst.msk [vmem:[#allocation2 + $0xf1] sm:$0xff] %vm174_vm0, %v160_v28  ;;  %v2880_v41 = vld [vmem:[#allocation2 + $0xb1] sm:$0xff]  ;;  %v2982_v10 = vld [vmem:[#allocation2 + $0x80] sm:$0xff]  ;;  %v3028_v26 = vld [vmem:[#allocation2 + $0x68] sm:$0xff] }
  0x52   : > { %241 = vst.msk [vmem:[#allocation2 + $0x109] sm:$0xff] %vm174_vm0, %v162_v31  ;;  %v2886_v42 = vld [vmem:[#allocation2 + $0xa9] sm:$0xff] }
  0x53   : > { %399 = vrot.lane.b32.xlu0 %v2842_v29, %s2660_s21  ;;  %243 = vst.msk [vmem:[#allocation2 + $0x121] sm:$0xff] %vm174_vm0, %v164_v32  ;;  %v2894_v46 = vld [vmem:[#allocation2 + $0xc1] sm:$0xff] }
  0x54   : > { %242 = vst.msk [vmem:[#allocation2 + $0x111] sm:$0xff] %vm174_vm0, %v163_v33  ;;  %v2898_v47 = vld [vmem:[#allocation2 + $0xd9] sm:$0xff]  ;;  %v3007_v18 = vld [vmem:[#allocation2 + $0xa8] sm:$0xff] }
  0x55   : > { %244 = vst.msk [vmem:[#allocation2 + $0x129] sm:$0xff] %vm174_vm0, %v165_v37  ;;  %v2904_v48 = vld [vmem:[#allocation2 + $0xc9] sm:$0xff]  ;;  %v3034_v32 = vld [vmem:[#allocation2 + $0x7a] sm:$0xff] }
  0x56   : > { %397 = vrot.lane.b32.xlu2 %v2850_v30, %s2660_s21  ;;  %246 = vst.msk [vmem:[#allocation2 + $0x141] sm:$0xff] %vm174_vm0, %v167_v38  ;;  %v2910_v50 = vld [vmem:[#allocation2 + $0xe1] sm:$0xff]  ;;  %v3045_v33 = vld [vmem:[#allocation2 + $0x6a] sm:$0xff]  ;;  %v3051_v38 = vld [vmem:[#allocation2 + $0x78] sm:$0xff] }
  0x57   : > { %245 = vst.msk [vmem:[#allocation2 + $0x139] sm:$0xff] %vm174_vm0, %v166_v39  ;;  %v2912_v51 = vld [vmem:[#allocation2 + $0xf9] sm:$0xff]  ;;  %v3032_v28 = vld [vmem:[#allocation2 + $0xc8] sm:$0xff]  ;;  %v3053_v39 = vld [vmem:[#allocation2 + $0x90] sm:$0xff] }
  0x58   : > { %247 = vst.msk [vmem:[#allocation2 + $0x151] sm:$0xff] %vm174_vm0, %v168_v43  ;;  %v2918_v52 = vld [vmem:[#allocation2 + $0xf1] sm:$0xff]  ;;  %v3049_v37 = vld [vmem:[#allocation2 + $0x82] sm:$0xff] }
  0x59   : > { %401 = vrot.lane.b32.xlu1 %v2858_v34, %s2660_s21  ;;  %249 = vst.msk [vmem:[#allocation2 + $0x169] sm:$0xff] %vm174_vm0, %v170_v44  ;;  %v2922_v53 = vld [vmem:[#allocation2 + $0x109] sm:$0xff] }
  0x5a   : > { %248 = vst.msk [vmem:[#allocation2 + $0x159] sm:$0xff] %vm174_vm0, %v169_v45  ;;  %v2924_v54 = vld [vmem:[#allocation2 + $0x121] sm:$0xff]  ;;  %v3057_v43 = vld [vmem:[#allocation2 + $0xf0] sm:$0xff] }
  0x5b   : > { %405 = vrot.lane.b32.xlu0 %v2862_v35, %s2660_s21  ;;  %250 = vst.msk [vmem:[#allocation2 + $0x171] sm:$0xff] %vm174_vm0, %v171_v49  ;;  %v2930_v55 = vld [vmem:[#allocation2 + $0x111] sm:$0xff]  ;;  %v3059_v45 = vld [vmem:[#allocation2 + $0x9a] sm:$0xff] }
  0x5c   : > { %v2934_v56 = vld [vmem:[#allocation2 + $0x129] sm:$0xff]  ;;  %289 = vst.msk [vmem:[#allocation3 + $0x20] sm:$0xff] %vm174_vm0, %v2938_v58  ;;  %v3070_v49 = vld [vmem:[#allocation2 + $0x92] sm:$0xff] }
  0x5d   : > { %v2936_v57 = vld [vmem:[#allocation2 + $0x141] sm:$0xff]  ;;  %290 = vst.msk [vmem:[#allocation3 + $0x28] sm:$0xff] %vm174_vm0, %v2954_v62 }
  0x5e   : > { %403 = vrot.lane.b32.xlu2 %v2868_v36, %s2660_s21  ;;  %v2946_v59 = vld [vmem:[#allocation2 + $0x139] sm:$0xff]  ;;  %285 = vst.msk [vmem:[#allocation3] sm:$0xff] %vm174_vm0, %v253_v1 }
  0x5f   : > { %v2950_v60 = vld [vmem:[#allocation2 + $0x151] sm:$0xff]  ;;  %293 = vst.msk [vmem:[#allocation3 + $0x40] sm:$0xff] %vm174_vm0, %v2968_v2 }
  0x60   : > { %v2952_v61 = vld [vmem:[#allocation2 + $0x169] sm:$0xff]  ;;  %3960 = vst [vmem:[#allocation10_spill] sm:$0xff] %v2977_v6 }
  0x61   : > { %407 = vrot.lane.b32.xlu1 %v2876_v40, %s2660_s21  ;;  %3958 = vst [vmem:[#allocation8_spill] sm:$0xff] %v2952_v61  ;;  %v2962_v63 = vld [vmem:[#allocation2 + $0x159] sm:$0xff] }
  0x62   : > { %v2966_v0 = vld [vmem:[#allocation2 + $0x171] sm:$0xff]  ;;  %287 = vst.msk [vmem:[#allocation3 + $0x10] sm:$0xff] %vm174_vm0, %v2980_v8 }
  0x63   : > { %411 = vrot.lane.b32.xlu0 %v2880_v41, %s2660_s21  ;;  %3959 = vst [vmem:[#allocation9_spill] sm:$0xff] %v2966_v0 }
  0x64   : > { %3961 = vst [vmem:[#allocation11_spill] sm:$0xff] %v2986_v11 }
  0x65   : > { %286 = vst.msk [vmem:[#allocation3 + $0x8] sm:$0xff] %vm174_vm0, %v254_v9  ;;  %v3080_v9 = vld [vmem:[#allocation2 + $0xb0] sm:$0xff] }
  0x66   : > { %409 = vrot.lane.b32.xlu2 %v2886_v42, %s2660_s21  ;;  %296 = vst.msk [vmem:[#allocation3 + $0x58] sm:$0xff] %vm174_vm0, %v2982_v10 }
  0x67   : > { %3962 = vst [vmem:[#allocation12_spill] sm:$0xff] %v2995_v12 }
  0x68   : > { %3963 = vst [vmem:[#allocation13_spill] sm:$0xff] %v2999_v13 }
  0x69   : > { %413 = vrot.lane.b32.xlu1 %v2894_v46, %s2660_s21  ;;  %288 = vst.msk [vmem:[#allocation3 + $0x18] sm:$0xff] %vm174_vm0, %v3001_v15 }
  0x6a   : > { %3964 = vst [vmem:[#allocation14_spill] sm:$0xff] %v3009_v21 }
  0x6b   : > { %417 = vrot.lane.b32.xlu0 %v2898_v47, %s2660_s21  ;;  %291 = vst.msk [vmem:[#allocation3 + $0x30] sm:$0xff] %vm174_vm0, %v3003_v16 }
  0x6c   : > { %299 = vst.msk [vmem:[#allocation3 + $0x70] sm:$0xff] %vm174_vm0, %v3007_v18 }
  0x6d   : > { %3965 = vst [vmem:[#allocation15_spill] sm:$0xff] %v3020_v22 }
  0x6e   : > { %415 = vrot.lane.b32.xlu2 %v2904_v48, %s2660_s21  ;;  %3966 = vst [vmem:[#allocation16_spill] sm:$0xff] %v3024_v24 }
  0x6f   : > { %292 = vst.msk [vmem:[#allocation3 + $0x38] sm:$0xff] %vm174_vm0, %v3026_v25 }
  0x70   : > { %3967 = vst [vmem:[#allocation17_spill] sm:$0xff] %v3034_v32 }
  0x71   : > { %419 = vrot.lane.b32.xlu1 %v2910_v50, %s2660_s21  ;;  %294 = vst.msk [vmem:[#allocation3 + $0x48] sm:$0xff] %vm174_vm0, %v3028_v26 }
  0x72   : > { %302 = vst.msk [vmem:[#allocation3 + $0x88] sm:$0xff] %vm174_vm0, %v3032_v28 }
  0x73   : > { %423 = vrot.lane.b32.xlu0 %v2912_v51, %s2660_s21  ;;  %3968 = vst [vmem:[#allocation18_spill] sm:$0xff] %v3045_v33 }
  0x74   : > { %3969 = vst [vmem:[#allocation19_spill] sm:$0xff] %v3049_v37 }
  0x75   : > { %295 = vst.msk [vmem:[#allocation3 + $0x50] sm:$0xff] %vm174_vm0, %v3051_v38 }
  0x76   : > { %421 = vrot.lane.b32.xlu2 %v2918_v52, %s2660_s21  ;;  %3970 = vst [vmem:[#allocation20_spill] sm:$0xff] %v3059_v45 }
  0x77   : > { %297 = vst.msk [vmem:[#allocation3 + $0x60] sm:$0xff] %vm174_vm0, %v3053_v39 }
  0x78   : > { %305 = vst.msk [vmem:[#allocation3 + $0xa0] sm:$0xff] %vm174_vm0, %v3057_v43 }
  0x79   : > { %425 = vrot.lane.b32.xlu1 %v2922_v53, %s2660_s21  ;;  %3971 = vst [vmem:[#allocation21_spill] sm:$0xff] %v3070_v49 }
  0x7a   : > { %300 = vst.msk [vmem:[#allocation3 + $0x78] sm:$0xff] %vm174_vm0, %v3080_v9 }
  0x7b   : > { %429 = vrot.lane.b32.xlu0 %v2924_v54, %s2660_s21 }
  0x7e   : > { %427 = vrot.lane.b32.xlu2 %v2930_v55, %s2660_s21 }
  0x81   : > { %431 = vrot.lane.b32.xlu1 %v2934_v56, %s2660_s21 }
  0x83   : > { %435 = vrot.lane.b32.xlu0 %v2936_v57, %s2660_s21 }
  0x86   : > { %433 = vrot.lane.b32.xlu2 %v2946_v59, %s2660_s21 }
  0x89   : > { %437 = vrot.lane.b32.xlu1 %v2950_v60, %s2660_s21 }
  0x8b   : > { %441 = vrot.lane.b32.xlu0 %v2952_v61, %s2660_s21  ;;  %v3226_v61 = vld [vmem:[#allocation2 + $0x170] sm:$0xff] }
  0x8c   : > { %316 = vst.msk [vmem:[#allocation3 + $0xf8] sm:$0xff] %vm174_vm0, %v3226_v61 }
  0x8e   : > { %439 = vrot.lane.b32.xlu2 %v2962_v63, %s2660_s21 }
  0x8f   : > { %v382_v3 = vpop.permute.xlu0 %381 }
  0x90   : > { %478 = vst.msk [vmem:[#allocation3] sm:$0xff] %vm477_vm3, %v382_v3 }
  0x91   : > { %443 = vrot.lane.b32.xlu1 %v2966_v0, %s2660_s21  ;;  %v3207_v0 = vld [vmem:[#allocation2 + $0x168] sm:$0xff] }
  0x92   : > { %315 = vst.msk [vmem:[#allocation3 + $0xf0] sm:$0xff] %vm174_vm0, %v3207_v0 }
  0x93   : > { %576 = vrot.lane.b32.xlu0 %v511_v4, %s2661_s27  ;;  %v3076_v4 = vld [vmem:[#allocation2 + $0xaa] sm:$0xff] }
  0x94   : > { %3972 = vst [vmem:[#allocation22_spill] sm:$0xff] %v3076_v4 }
  0x96   : > { %574 = vrot.lane.b32.xlu2 %v510_v5, %s2661_s27  ;;  %v3078_v5 = vld [vmem:[#allocation2 + $0x98] sm:$0xff] }
  0x97   : > { %298 = vst.msk [vmem:[#allocation3 + $0x68] sm:$0xff] %vm174_vm0, %v3078_v5 }
  0x99   : > { %578 = vrot.lane.b32.xlu1 %v2977_v6, %s2661_s27  ;;  %v3184_v6 = vld [vmem:[#allocation2 + $0x140] sm:$0xff] }
  0x9a   : > { %312 = vst.msk [vmem:[#allocation3 + $0xd8] sm:$0xff] %vm174_vm0, %v3184_v6 }
  0x9b   : > { %582 = vrot.lane.b32.xlu0 %v2986_v11, %s2661_s27  ;;  %v3180_v11 = vld [vmem:[#allocation2 + $0x13a] sm:$0xff] }
  0x9c   : > { %3984 = vst [vmem:[#allocation34_spill] sm:$0xff] %v3180_v11 }
  0x9e   : > { %580 = vrot.lane.b32.xlu2 %v2995_v12, %s2661_s27  ;;  %v3203_v12 = vld [vmem:[#allocation2 + $0x15a] sm:$0xff] }
  0xa0   : > { %v390_v20 = vpop.permute.xlu2 %389 }
  0xa1   : > { %482 = vst.msk [vmem:[#allocation3 + $0x20] sm:$0xff] %vm477_vm3, %v390_v20  ;;  %584 = vrot.lane.b32.xlu1 %v2999_v13, %s2661_s27  ;;  %v3084_v20 = vld [vmem:[#allocation2 + $0x110] sm:$0xff]  ;;  %v3161_v13 = vld [vmem:[#allocation2 + $0x120] sm:$0xff] }
  0xa2   : > { %308 = vst.msk [vmem:[#allocation3 + $0xb8] sm:$0xff] %vm174_vm0, %v3084_v20 }
  0xa3   : > { %588 = vrot.lane.b32.xlu0 %v3009_v21, %s2661_s27  ;;  %v3140_v21 = vld [vmem:[#allocation2 + $0x10a] sm:$0xff]  ;;  %309 = vst.msk [vmem:[#allocation3 + $0xc0] sm:$0xff] %vm174_vm0, %v3161_v13 }
  0xa4   : > { %3979 = vst [vmem:[#allocation29_spill] sm:$0xff] %v3140_v21 }
  0xa6   : > { %586 = vrot.lane.b32.xlu2 %v3020_v22, %s2661_s27  ;;  %v3165_v22 = vld [vmem:[#allocation2 + $0x12a] sm:$0xff] }
  0xa7   : > { %3982 = vst [vmem:[#allocation32_spill] sm:$0xff] %v3165_v22 }
  0xa8   : > { %v392_v31 = vpop.permute.xlu2 %391 }
  0xa9   : > { %483 = vst.msk [vmem:[#allocation3 + $0x28] sm:$0xff] %vm477_vm3, %v392_v31  ;;  %590 = vrot.lane.b32.xlu1 %v3024_v24, %s2661_s27  ;;  %v3134_v24 = vld [vmem:[#allocation2 + $0xf8] sm:$0xff] }
  0xaa   : > { %306 = vst.msk [vmem:[#allocation3 + $0xa8] sm:$0xff] %vm174_vm0, %v3134_v24 }
  0xab   : > { %594 = vrot.lane.b32.xlu0 %v3034_v32, %s2661_s27  ;;  %v3113_v32 = vld [vmem:[#allocation2 + $0xe2] sm:$0xff] }
  0xac   : > { %3976 = vst [vmem:[#allocation26_spill] sm:$0xff] %v3113_v32 }
  0xae   : > { %592 = vrot.lane.b32.xlu2 %v3045_v33, %s2661_s27 }
  0xb0   : > { %v398_v44 = vpop.permute.xlu2 %397 }
  0xb1   : > { %486 = vst.msk [vmem:[#allocation3 + $0x40] sm:$0xff] %vm477_vm3, %v398_v44  ;;  %596 = vrot.lane.b32.xlu1 %v3049_v37, %s2661_s27  ;;  %v3086_v44 = vld [vmem:[#allocation2 + $0xc2] sm:$0xff]  ;;  %v3107_v37 = vld [vmem:[#allocation2 + $0xd8] sm:$0xff] }
  0xb2   : > { %3973 = vst [vmem:[#allocation23_spill] sm:$0xff] %v3086_v44 }
  0xb3   : > { %600 = vrot.lane.b32.xlu0 %v3059_v45, %s2661_s27  ;;  %v386_v1 = vpop.permute.xlu1 %385  ;;  %303 = vst.msk [vmem:[#allocation3 + $0x90] sm:$0xff] %vm174_vm0, %v3107_v37 }
  0xb4   : > { %480 = vst.msk [vmem:[#allocation3 + $0x10] sm:$0xff] %vm477_vm3, %v386_v1  ;;  %v3097_v1 = vld [vmem:[#allocation2 + $0xb2] sm:$0xff] }
  0xb5   : > { %v384_v3 = vpop.permute.xlu0 %383  ;;  %3974 = vst [vmem:[#allocation24_spill] sm:$0xff] %v3097_v1 }
  0xb6   : > { %598 = vrot.lane.b32.xlu2 %v3070_v49, %s2661_s27  ;;  %479 = vst.msk [vmem:[#allocation3 + $0x8] sm:$0xff] %vm477_vm3, %v384_v3 }
  0xb8   : > { %v404_v31 = vpop.permute.xlu2 %403 }
  0xb9   : > { %489 = vst.msk [vmem:[#allocation3 + $0x58] sm:$0xff] %vm477_vm3, %v404_v31  ;;  %602 = vrot.lane.b32.xlu1 %v3076_v4, %s2661_s27  ;;  %v3103_v31 = vld [vmem:[#allocation2 + $0xca] sm:$0xff]  ;;  %v3105_v4 = vld [vmem:[#allocation2 + $0xc0] sm:$0xff] }
  0xba   : > { %3975 = vst [vmem:[#allocation25_spill] sm:$0xff] %v3103_v31 }
  0xbb   : > { %606 = vrot.lane.b32.xlu0 %v3086_v44, %s2661_s27  ;;  %v388_v3 = vpop.permute.xlu1 %387  ;;  %301 = vst.msk [vmem:[#allocation3 + $0x80] sm:$0xff] %vm174_vm0, %v3105_v4  ;;  %v3111_v44 = vld [vmem:[#allocation2 + $0x138] sm:$0xff] }
  0xbc   : > { %481 = vst.msk [vmem:[#allocation3 + $0x18] sm:$0xff] %vm477_vm3, %v388_v3 }
  0xbd   : > { %v394_v45 = vpop.permute.xlu0 %393  ;;  %311 = vst.msk [vmem:[#allocation3 + $0xd0] sm:$0xff] %vm174_vm0, %v3111_v44 }
  0xbe   : > { %604 = vrot.lane.b32.xlu2 %v3097_v1, %s2661_s27  ;;  %484 = vst.msk [vmem:[#allocation3 + $0x30] sm:$0xff] %vm477_vm3, %v394_v45  ;;  %v3124_v45 = vld [vmem:[#allocation2 + $0xda] sm:$0xff] }
  0xbf   : > { %3977 = vst [vmem:[#allocation27_spill] sm:$0xff] %v3124_v45 }
  0xc0   : > { %v410_v49 = vpop.permute.xlu2 %409 }
  0xc1   : > { %492 = vst.msk [vmem:[#allocation3 + $0x70] sm:$0xff] %vm477_vm3, %v410_v49  ;;  %608 = vrot.lane.b32.xlu1 %v3103_v31, %s2661_s27  ;;  %v3130_v49 = vld [vmem:[#allocation2 + $0xf2] sm:$0xff]  ;;  %v3132_v31 = vld [vmem:[#allocation2 + $0xe0] sm:$0xff] }
  0xc2   : > { %3978 = vst [vmem:[#allocation28_spill] sm:$0xff] %v3130_v49 }
  0xc3   : > { %612 = vrot.lane.b32.xlu0 %v3113_v32, %s2661_s27  ;;  %v396_v3 = vpop.permute.xlu1 %395  ;;  %304 = vst.msk [vmem:[#allocation3 + $0x98] sm:$0xff] %vm174_vm0, %v3132_v31  ;;  %v3138_v32 = vld [vmem:[#allocation2 + $0x158] sm:$0xff] }
  0xc4   : > { %485 = vst.msk [vmem:[#allocation3 + $0x38] sm:$0xff] %vm477_vm3, %v396_v3 }
  0xc5   : > { %v400_v1 = vpop.permute.xlu0 %399  ;;  %314 = vst.msk [vmem:[#allocation3 + $0xe8] sm:$0xff] %vm174_vm0, %v3138_v32 }
  0xc6   : > { %610 = vrot.lane.b32.xlu2 %v3124_v45, %s2661_s27  ;;  %487 = vst.msk [vmem:[#allocation3 + $0x48] sm:$0xff] %vm477_vm3, %v400_v1  ;;  %v3151_v1 = vld [vmem:[#allocation2 + $0xfa] sm:$0xff] }
  0xc7   : > { %3980 = vst [vmem:[#allocation30_spill] sm:$0xff] %v3151_v1 }
  0xc8   : > { %v416_v33 = vpop.permute.xlu2 %415 }
  0xc9   : > { %495 = vst.msk [vmem:[#allocation3 + $0x88] sm:$0xff] %vm477_vm3, %v416_v33  ;;  %614 = vrot.lane.b32.xlu1 %v3130_v49, %s2661_s27  ;;  %v3157_v33 = vld [vmem:[#allocation2 + $0x112] sm:$0xff]  ;;  %v3159_v49 = vld [vmem:[#allocation2 + $0x108] sm:$0xff] }
  0xca   : > { %3981 = vst [vmem:[#allocation31_spill] sm:$0xff] %v3157_v33 }
  0xcb   : > { %618 = vrot.lane.b32.xlu0 %v3140_v21, %s2661_s27  ;;  %v402_v3 = vpop.permute.xlu1 %401  ;;  %307 = vst.msk [vmem:[#allocation3 + $0xb0] sm:$0xff] %vm174_vm0, %v3159_v49 }
  0xcc   : > { %488 = vst.msk [vmem:[#allocation3 + $0x50] sm:$0xff] %vm477_vm3, %v402_v3 }
  0xcd   : > { %v406_v45 = vpop.permute.xlu0 %405 }
  0xce   : > { %616 = vrot.lane.b32.xlu2 %v3151_v1, %s2661_s27  ;;  %490 = vst.msk [vmem:[#allocation3 + $0x60] sm:$0xff] %vm477_vm3, %v406_v45  ;;  %v3174_v45 = vld [vmem:[#allocation2 + $0x122] sm:$0xff] }
  0xcf   : > { %3983 = vst [vmem:[#allocation33_spill] sm:$0xff] %v3174_v45 }
  0xd0   : > { %v422_v21 = vpop.permute.xlu2 %421 }
  0xd1   : > { %498 = vst.msk [vmem:[#allocation3 + $0xa0] sm:$0xff] %vm477_vm3, %v422_v21  ;;  %620 = vrot.lane.b32.xlu1 %v3157_v33, %s2661_s27  ;;  %v3182_v21 = vld [vmem:[#allocation2 + $0x128] sm:$0xff]  ;;  %v3188_v33 = vld [vmem:[#allocation2 + $0x152] sm:$0xff] }
  0xd2   : > { %310 = vst.msk [vmem:[#allocation3 + $0xc8] sm:$0xff] %vm174_vm0, %v3182_v21 }
  0xd3   : > { %624 = vrot.lane.b32.xlu0 %v3165_v22, %s2661_s27  ;;  %v408_v3 = vpop.permute.xlu1 %407  ;;  %3985 = vst [vmem:[#allocation35_spill] sm:$0xff] %v3188_v33 }
  0xd4   : > { %491 = vst.msk [vmem:[#allocation3 + $0x68] sm:$0xff] %vm477_vm3, %v408_v3 }
  0xd5   : > { %v412_v1 = vpop.permute.xlu0 %411 }
  0xd6   : > { %622 = vrot.lane.b32.xlu2 %v3174_v45, %s2661_s27  ;;  %493 = vst.msk [vmem:[#allocation3 + $0x78] sm:$0xff] %vm477_vm3, %v412_v1  ;;  %v3197_v1 = vld [vmem:[#allocation2 + $0x142] sm:$0xff] }
  0xd7   : > { %3986 = vst [vmem:[#allocation36_spill] sm:$0xff] %v3197_v1 }
  0xd8   : > { %v428_v22 = vpop.permute.xlu2 %427 }
  0xd9   : > { %501 = vst.msk [vmem:[#allocation3 + $0xb8] sm:$0xff] %vm477_vm3, %v428_v22  ;;  %626 = vrot.lane.b32.xlu1 %v3180_v11, %s2661_s27  ;;  %v3205_v22 = vld [vmem:[#allocation2 + $0x150] sm:$0xff] }
  0xda   : > { %313 = vst.msk [vmem:[#allocation3 + $0xe0] sm:$0xff] %vm174_vm0, %v3205_v22  ;;  %v3211_v11 = vld [vmem:[#allocation2 + $0x172] sm:$0xff] }
  0xdb   : > { %630 = vrot.lane.b32.xlu0 %v3188_v33, %s2661_s27  ;;  %v414_v3 = vpop.permute.xlu1 %413  ;;  %3987 = vst [vmem:[#allocation37_spill] sm:$0xff] %v3211_v11 }
  0xdc   : > { %494 = vst.msk [vmem:[#allocation3 + $0x80] sm:$0xff] %vm477_vm3, %v414_v3 }
  0xdd   : > { %v418_v45 = vpop.permute.xlu0 %417 }
  0xde   : > { %628 = vrot.lane.b32.xlu2 %v3197_v1, %s2661_s27  ;;  %496 = vst.msk [vmem:[#allocation3 + $0x90] sm:$0xff] %vm477_vm3, %v418_v45  ;;  %v3220_v45 = vld [vmem:[#allocation2 + $0x16a] sm:$0xff] }
  0xe0   : > { %v434_v33 = vpop.permute.xlu2 %433 }
  0xe1   : > { %504 = vst.msk [vmem:[#allocation3 + $0xd0] sm:$0xff] %vm477_vm3, %v434_v33  ;;  %632 = vrot.lane.b32.xlu1 %v3203_v12, %s2661_s27 }
  0xe3   : > { %636 = vrot.lane.b32.xlu0 %v3211_v11, %s2661_s27  ;;  %v420_v3 = vpop.permute.xlu1 %419 }
  0xe4   : > { %497 = vst.msk [vmem:[#allocation3 + $0x98] sm:$0xff] %vm477_vm3, %v420_v3 }
  0xe5   : > { %v424_v1 = vpop.permute.xlu0 %423 }
  0xe6   : > { %634 = vrot.lane.b32.xlu2 %v3220_v45, %s2661_s27  ;;  %499 = vst.msk [vmem:[#allocation3 + $0xa8] sm:$0xff] %vm477_vm3, %v424_v1 }
  0xe8   : > { %v440_v33 = vpop.permute.xlu2 %439 }
  0xe9   : > { %507 = vst.msk [vmem:[#allocation3 + $0xe8] sm:$0xff] %vm477_vm3, %v440_v33  ;;  %767 = vrot.lane.b32.xlu1 %v2980_v8, %s2662_s28 }
  0xeb   : > { %771 = vrot.lane.b32.xlu0 %v2938_v58, %s2662_s28  ;;  %v426_v3 = vpop.permute.xlu1 %425 }
  0xec   : > { %500 = vst.msk [vmem:[#allocation3 + $0xb0] sm:$0xff] %vm477_vm3, %v426_v3 }
  0xed   : > { %v430_v11 = vpop.permute.xlu0 %429 }
  0xee   : > { %769 = vrot.lane.b32.xlu2 %v3001_v15, %s2662_s28  ;;  %502 = vst.msk [vmem:[#allocation3 + $0xc0] sm:$0xff] %vm477_vm3, %v430_v11 }
  0xf0   : > { %v575_v1 = vpop.permute.xlu2 %574 }
  0xf1   : > { %671 = vst.msk [vmem:[#allocation3] sm:$0xff] %vm670_vm4, %v575_v1  ;;  %773 = vrot.lane.b32.xlu1 %v2954_v62, %s2662_s28 }
  0xf3   : > { %777 = vrot.lane.b32.xlu0 %v3026_v25, %s2662_s28  ;;  %v432_v58 = vpop.permute.xlu1 %431 }
  0xf4   : > { %503 = vst.msk [vmem:[#allocation3 + $0xc8] sm:$0xff] %vm477_vm3, %v432_v58 }
  0xf5   : > { %v436_v8 = vpop.permute.xlu0 %435 }
  0xf6   : > { %775 = vrot.lane.b32.xlu2 %v3003_v16, %s2662_s28  ;;  %505 = vst.msk [vmem:[#allocation3 + $0xd8] sm:$0xff] %vm477_vm3, %v436_v8 }
  0xf8   : > { %v581_v11 = vpop.permute.xlu2 %580 }
  0xf9   : > { %674 = vst.msk [vmem:[#allocation3 + $0x18] sm:$0xff] %vm670_vm4, %v581_v11  ;;  %779 = vrot.lane.b32.xlu1 %v2968_v2, %s2662_s28  ;;  %v173_v11 = vld [vmem:[%s2771_s26 + $0xf8] sm:$0xff] }
  0xfa   : > { %252 = vst.msk [vmem:[#allocation2 + $0x189] sm:$0xff] %vm174_vm0, %v173_v11 }
  0xfb   : > { %783 = vrot.lane.b32.xlu0 %v3051_v38, %s2662_s28  ;;  %v438_v62 = vpop.permute.xlu1 %437 }
  0xfc   : > { %506 = vst.msk [vmem:[#allocation3 + $0xe0] sm:$0xff] %vm477_vm3, %v438_v62 }
  0xfd   : > { %v442_v15 = vpop.permute.xlu0 %441 }
  0xfe   : > { %781 = vrot.lane.b32.xlu2 %v3028_v26, %s2662_s28  ;;  %508 = vst.msk [vmem:[#allocation3 + $0xf0] sm:$0xff] %vm477_vm3, %v442_v15 }
 0x100   : > { %v587_v33 = vpop.permute.xlu2 %586 }
 0x101   : > { %677 = vst.msk [vmem:[#allocation3 + $0x30] sm:$0xff] %vm670_vm4, %v587_v33  ;;  %785 = vrot.lane.b32.xlu1 %v2982_v10, %s2662_s28 }
 0x103   : > { %789 = vrot.lane.b32.xlu0 %v3078_v5, %s2662_s28  ;;  %v444_v2 = vpop.permute.xlu1 %443 }
 0x104   : > { %509 = vst.msk [vmem:[#allocation3 + $0xf8] sm:$0xff] %vm477_vm3, %v444_v2 }
 0x105   : > { %v577_v3 = vpop.permute.xlu0 %576 }
 0x106   : > { %787 = vrot.lane.b32.xlu2 %v3053_v39, %s2662_s28  ;;  %672 = vst.msk [vmem:[#allocation3 + $0x8] sm:$0xff] %vm670_vm4, %v577_v3 }
 0x108   : > { %v593_v1 = vpop.permute.xlu2 %592 }
 0x109   : > { %680 = vst.msk [vmem:[#allocation3 + $0x48] sm:$0xff] %vm670_vm4, %v593_v1  ;;  %791 = vrot.lane.b32.xlu1 %v3007_v18, %s2662_s28 }
 0x10b   : > { %795 = vrot.lane.b32.xlu0 %v3105_v4, %s2662_s28  ;;  %v579_v10 = vpop.permute.xlu1 %578  ;;  %v172_v4 = vld [vmem:[%s2771_s26 + $0xf0] sm:$0xff]  ;;  %s2487_s26 = sshll.u32 %s134_s25, 6 }
 0x10c   : > { %673 = vst.msk [vmem:[#allocation3 + $0x10] sm:$0xff] %vm670_vm4, %v579_v10 }
 0x10d   : > { %v583_v5 = vpop.permute.xlu0 %582  ;;  %251 = vst.msk [vmem:[#allocation2 + $0x181] sm:$0xff] %vm174_vm0, %v172_v4  ;;  %v3988_v4 = vld [vmem:[#allocation8_spill] sm:$0xff] }
 0x10e   : > { %793 = vrot.lane.b32.xlu2 %v3080_v9, %s2662_s28  ;;  %675 = vst.msk [vmem:[#allocation3 + $0x20] sm:$0xff] %vm670_vm4, %v583_v5 }
 0x110   : > { %v599_v58 = vpop.permute.xlu2 %598 }
 0x111   : > { %683 = vst.msk [vmem:[#allocation3 + $0x60] sm:$0xff] %vm670_vm4, %v599_v58  ;;  %797 = vrot.lane.b32.xlu1 %v3032_v28, %s2662_s28 }
 0x113   : > { %801 = vrot.lane.b32.xlu0 %v3132_v31, %s2662_s28  ;;  %v585_v18 = vpop.permute.xlu1 %584 }
 0x114   : > { %676 = vst.msk [vmem:[#allocation3 + $0x28] sm:$0xff] %vm670_vm4, %v585_v18  ;;  %v3415_v18 = vld [vmem:[#allocation2 + $0x181] sm:$0xff] }
 0x115   : > { %v589_v8 = vpop.permute.xlu0 %588 }
 0x116   : > { %799 = vrot.lane.b32.xlu2 %v3107_v37, %s2662_s28  ;;  %678 = vst.msk [vmem:[#allocation3 + $0x38] sm:$0xff] %vm670_vm4, %v589_v8  ;;  %v3989_v8 = vld [vmem:[#allocation9_spill] sm:$0xff] }
 0x118   : > { %v605_v9 = vpop.permute.xlu2 %604 }
 0x119   : > { %686 = vst.msk [vmem:[#allocation3 + $0x78] sm:$0xff] %vm670_vm4, %v605_v9  ;;  %803 = vrot.lane.b32.xlu1 %v3057_v43, %s2662_s28  ;;  %v3990_v9 = vld [vmem:[#allocation12_spill] sm:$0xff] }
 0x11b   : > { %807 = vrot.lane.b32.xlu0 %v3159_v49, %s2662_s28  ;;  %v591_v28 = vpop.permute.xlu1 %590 }
 0x11c   : > { %679 = vst.msk [vmem:[#allocation3 + $0x40] sm:$0xff] %vm670_vm4, %v591_v28 }
 0x11d   : > { %v595_v31 = vpop.permute.xlu0 %594 }
 0x11e   : > { %805 = vrot.lane.b32.xlu2 %v3134_v24, %s2662_s28  ;;  %681 = vst.msk [vmem:[#allocation3 + $0x50] sm:$0xff] %vm670_vm4, %v595_v31 }
 0x120   : > { %v611_v37 = vpop.permute.xlu2 %610 }
 0x121   : > { %689 = vst.msk [vmem:[#allocation3 + $0x90] sm:$0xff] %vm670_vm4, %v611_v37  ;;  %809 = vrot.lane.b32.xlu1 %v3084_v20, %s2662_s28  ;;  %v3991_v37 = vld [vmem:[#allocation10_spill] sm:$0xff] }
 0x123   : > { %813 = vrot.lane.b32.xlu0 %v3182_v21, %s2662_s28  ;;  %v597_v62 = vpop.permute.xlu1 %596 }
 0x124   : > { %682 = vst.msk [vmem:[#allocation3 + $0x58] sm:$0xff] %vm670_vm4, %v597_v62 }
 0x125   : > { %v601_v49 = vpop.permute.xlu0 %600 }
 0x126   : > { %811 = vrot.lane.b32.xlu2 %v3161_v13, %s2662_s28  ;;  %684 = vst.msk [vmem:[#allocation3 + $0x68] sm:$0xff] %vm670_vm4, %v601_v49  ;;  %v3992_v49 = vld [vmem:[#allocation11_spill] sm:$0xff] }
 0x128   : > { %v617_v15 = vpop.permute.xlu2 %616 }
 0x129   : > { %692 = vst.msk [vmem:[#allocation3 + $0xa8] sm:$0xff] %vm670_vm4, %v617_v15  ;;  %815 = vrot.lane.b32.xlu1 %v3111_v44, %s2662_s28  ;;  %v3993_v15 = vld [vmem:[#allocation15_spill] sm:$0xff] }
 0x12b   : > { %819 = vrot.lane.b32.xlu0 %v3205_v22, %s2662_s28  ;;  %v603_v20 = vpop.permute.xlu1 %602 }
 0x12c   : > { %685 = vst.msk [vmem:[#allocation3 + $0x70] sm:$0xff] %vm670_vm4, %v603_v20 }
 0x12d   : > { %v607_v21 = vpop.permute.xlu0 %606 }
 0x12e   : > { %817 = vrot.lane.b32.xlu2 %v3184_v6, %s2662_s28  ;;  %687 = vst.msk [vmem:[#allocation3 + $0x80] sm:$0xff] %vm670_vm4, %v607_v21  ;;  %v3324_v6 = vld [vmem:[#allocation2 + $0x180] sm:$0xff] }
 0x130   : > { %v623_v13 = vpop.permute.xlu2 %622 }
 0x131   : > { %695 = vst.msk [vmem:[#allocation3 + $0xc0] sm:$0xff] %vm670_vm4, %v623_v13  ;;  %821 = vrot.lane.b32.xlu1 %v3138_v32, %s2662_s28  ;;  %v3994_v13 = vld [vmem:[#allocation13_spill] sm:$0xff] }
 0x133   : > { %825 = vrot.lane.b32.xlu0 %v3226_v61, %s2662_s28  ;;  %v609_v44 = vpop.permute.xlu1 %608  ;;  %v734_v61 = vld [vmem:[#allocation2 + $0x188] sm:$0xff] }
 0x134   : > { %688 = vst.msk [vmem:[#allocation3 + $0x88] sm:$0xff] %vm670_vm4, %v609_v44 }
 0x135   : > { %v613_v33 = vpop.permute.xlu0 %612 }
 0x136   : > { %823 = vrot.lane.b32.xlu2 %v3207_v0, %s2662_s28  ;;  %690 = vst.msk [vmem:[#allocation3 + $0x98] sm:$0xff] %vm670_vm4, %v613_v33  ;;  %v3995_v33 = vld [vmem:[#allocation14_spill] sm:$0xff] }
 0x138   : > { %v629_v2 = vpop.permute.xlu2 %628 }
 0x139   : > { %698 = vst.msk [vmem:[#allocation3 + $0xd8] sm:$0xff] %vm670_vm4, %v629_v2  ;;  %827 = vrot.lane.b32.xlu1 %v3324_v6, %s2662_s28  ;;  %v3996_v2 = vld [vmem:[#allocation18_spill] sm:$0xff] }
 0x13b   : > { %960 = vrot.lane.b32.xlu0 %v2788_v7, %s2663_s29  ;;  %v615_v3 = vpop.permute.xlu1 %614 }
 0x13c   : > { %691 = vst.msk [vmem:[#allocation3 + $0xa0] sm:$0xff] %vm670_vm4, %v615_v3 }
 0x13d   : > { %v619_v1 = vpop.permute.xlu0 %618 }
 0x13e   : > { %829 = vrot.lane.b32.xlu2 %v734_v61, %s2662_s28  ;;  %693 = vst.msk [vmem:[#allocation3 + $0xb0] sm:$0xff] %vm670_vm4, %v619_v1  ;;  %v3997_v1 = vld [vmem:[#allocation16_spill] sm:$0xff]  ;;  %s3871_s28 = scalar_lea.vmem [#allocation5], %s2487_s26 }
 0x140   : > { %v635_v10 = vpop.permute.xlu2 %634 }
 0x141   : > { %701 = vst.msk [vmem:[#allocation3 + $0xf0] sm:$0xff] %vm670_vm4, %v635_v10  ;;  %962 = vrot.lane.b32.xlu1 %v2811_v17, %s2663_s29 }
 0x143   : > { %966 = vrot.lane.b32.xlu0 %v2827_v23, %s2663_s29  ;;  %v621_v5 = vpop.permute.xlu1 %620 }
 0x144   : > { %694 = vst.msk [vmem:[#allocation3 + $0xb8] sm:$0xff] %vm670_vm4, %v621_v5  ;;  %v3998_v5 = vld [vmem:[#allocation17_spill] sm:$0xff] }
 0x145   : > { %v625_v7 = vpop.permute.xlu0 %624 }
 0x146   : > { %964 = vrot.lane.b32.xlu2 %v2803_v14, %s2663_s29  ;;  %696 = vst.msk [vmem:[#allocation3 + $0xc8] sm:$0xff] %vm670_vm4, %v625_v7  ;;  %v3999_v7 = vld [vmem:[#allocation21_spill] sm:$0xff] }
 0x148   : > { %v770_v58 = vpop.permute.xlu2 %769 }
 0x149   : > { %865 = vst.msk [vmem:[#allocation3 + $0x8] sm:$0xff] %vm863_vm5, %v770_v58  ;;  %968 = vrot.lane.b32.xlu1 %v2815_v19, %s2663_s29 }
 0x14b   : > { %972 = vrot.lane.b32.xlu0 %v2850_v30, %s2663_s29  ;;  %v627_v17 = vpop.permute.xlu1 %626 }
 0x14c   : > { %697 = vst.msk [vmem:[#allocation3 + $0xd0] sm:$0xff] %vm670_vm4, %v627_v17 }
 0x14d   : > { %v631_v23 = vpop.permute.xlu0 %630 }
 0x14e   : > { %970 = vrot.lane.b32.xlu2 %v2837_v27, %s2663_s29  ;;  %699 = vst.msk [vmem:[#allocation3 + $0xe0] sm:$0xff] %vm670_vm4, %v631_v23  ;;  %v4000_v23 = vld [vmem:[#allocation19_spill] sm:$0xff] }
 0x150   : > { %v776_v14 = vpop.permute.xlu2 %775 }
 0x151   : > { %868 = vst.msk [vmem:[#allocation3 + $0x20] sm:$0xff] %vm863_vm5, %v776_v14  ;;  %974 = vrot.lane.b32.xlu1 %v2842_v29, %s2663_s29 }
 0x153   : > { %978 = vrot.lane.b32.xlu0 %v2868_v36, %s2663_s29  ;;  %v633_v19 = vpop.permute.xlu1 %632 }
 0x154   : > { %700 = vst.msk [vmem:[#allocation3 + $0xe8] sm:$0xff] %vm670_vm4, %v633_v19  ;;  %v4001_v19 = vld [vmem:[#allocation20_spill] sm:$0xff] }
 0x155   : > { %v637_v30 = vpop.permute.xlu0 %636 }
 0x156   : > { %976 = vrot.lane.b32.xlu2 %v2858_v34, %s2663_s29  ;;  %702 = vst.msk [vmem:[#allocation3 + $0xf8] sm:$0xff] %vm670_vm4, %v637_v30  ;;  %v4002_v30 = vld [vmem:[#allocation24_spill] sm:$0xff] }
 0x158   : > { %v782_v27 = vpop.permute.xlu2 %781 }
 0x159   : > { %871 = vst.msk [vmem:[#allocation3 + $0x38] sm:$0xff] %vm863_vm5, %v782_v27  ;;  %980 = vrot.lane.b32.xlu1 %v2862_v35, %s2663_s29 }
 0x15b   : > { %984 = vrot.lane.b32.xlu0 %v2886_v42, %s2663_s29  ;;  %v768_v29 = vpop.permute.xlu1 %767 }
 0x15c   : > { %864 = vst.msk [vmem:[#allocation3] sm:$0xff] %vm863_vm5, %v768_v29 }
 0x15d   : > { %v772_v36 = vpop.permute.xlu0 %771 }
 0x15e   : > { %982 = vrot.lane.b32.xlu2 %v2876_v40, %s2663_s29  ;;  %866 = vst.msk [vmem:[#allocation3 + $0x10] sm:$0xff] %vm863_vm5, %v772_v36  ;;  %v4003_v36 = vld [vmem:[#allocation22_spill] sm:$0xff] }
 0x160   : > { %v788_v34 = vpop.permute.xlu2 %787 }
 0x161   : > { %874 = vst.msk [vmem:[#allocation3 + $0x50] sm:$0xff] %vm863_vm5, %v788_v34  ;;  %986 = vrot.lane.b32.xlu1 %v2880_v41, %s2663_s29 }
 0x163   : > { %990 = vrot.lane.b32.xlu0 %v2904_v48, %s2663_s29  ;;  %v774_v35 = vpop.permute.xlu1 %773 }
 0x164   : > { %867 = vst.msk [vmem:[#allocation3 + $0x18] sm:$0xff] %vm863_vm5, %v774_v35  ;;  %v4004_v35 = vld [vmem:[#allocation23_spill] sm:$0xff] }
 0x165   : > { %v778_v42 = vpop.permute.xlu0 %777 }
 0x166   : > { %988 = vrot.lane.b32.xlu2 %v2894_v46, %s2663_s29  ;;  %869 = vst.msk [vmem:[#allocation3 + $0x28] sm:$0xff] %vm863_vm5, %v778_v42  ;;  %v4005_v42 = vld [vmem:[#allocation27_spill] sm:$0xff] }
 0x168   : > { %v794_v40 = vpop.permute.xlu2 %793 }
 0x169   : > { %877 = vst.msk [vmem:[#allocation3 + $0x68] sm:$0xff] %vm863_vm5, %v794_v40  ;;  %992 = vrot.lane.b32.xlu1 %v2898_v47, %s2663_s29 }
 0x16b   : > { %996 = vrot.lane.b32.xlu0 %v2918_v52, %s2663_s29  ;;  %v780_v41 = vpop.permute.xlu1 %779 }
 0x16c   : > { %870 = vst.msk [vmem:[#allocation3 + $0x30] sm:$0xff] %vm863_vm5, %v780_v41 }
 0x16d   : > { %v784_v48 = vpop.permute.xlu0 %783 }
 0x16e   : > { %994 = vrot.lane.b32.xlu2 %v2910_v50, %s2663_s29  ;;  %872 = vst.msk [vmem:[#allocation3 + $0x40] sm:$0xff] %vm863_vm5, %v784_v48  ;;  %v4006_v48 = vld [vmem:[#allocation25_spill] sm:$0xff] }
 0x170   : > { %v800_v46 = vpop.permute.xlu2 %799 }
 0x171   : > { %880 = vst.msk [vmem:[#allocation3 + $0x80] sm:$0xff] %vm863_vm5, %v800_v46  ;;  %998 = vrot.lane.b32.xlu1 %v2912_v51, %s2663_s29 }
 0x173   : > { %1002 = vrot.lane.b32.xlu0 %v2930_v55, %s2663_s29  ;;  %v786_v47 = vpop.permute.xlu1 %785 }
 0x174   : > { %873 = vst.msk [vmem:[#allocation3 + $0x48] sm:$0xff] %vm863_vm5, %v786_v47  ;;  %v4007_v47 = vld [vmem:[#allocation26_spill] sm:$0xff] }
 0x175   : > { %v790_v52 = vpop.permute.xlu0 %789 }
 0x176   : > { %1000 = vrot.lane.b32.xlu2 %v2922_v53, %s2663_s29  ;;  %875 = vst.msk [vmem:[#allocation3 + $0x58] sm:$0xff] %vm863_vm5, %v790_v52  ;;  %v4008_v52 = vld [vmem:[#allocation30_spill] sm:$0xff] }
 0x178   : > { %v806_v50 = vpop.permute.xlu2 %805 }
 0x179   : > { %883 = vst.msk [vmem:[#allocation3 + $0x98] sm:$0xff] %vm863_vm5, %v806_v50  ;;  %1004 = vrot.lane.b32.xlu1 %v2924_v54, %s2663_s29 }
 0x17b   : > { %1008 = vrot.lane.b32.xlu0 %v2946_v59, %s2663_s29  ;;  %v792_v51 = vpop.permute.xlu1 %791 }
 0x17c   : > { %876 = vst.msk [vmem:[#allocation3 + $0x60] sm:$0xff] %vm863_vm5, %v792_v51 }
 0x17d   : > { %v796_v55 = vpop.permute.xlu0 %795 }
 0x17e   : > { %1006 = vrot.lane.b32.xlu2 %v2934_v56, %s2663_s29  ;;  %878 = vst.msk [vmem:[#allocation3 + $0x70] sm:$0xff] %vm863_vm5, %v796_v55  ;;  %v4009_v55 = vld [vmem:[#allocation28_spill] sm:$0xff] }
 0x180   : > { %v812_v53 = vpop.permute.xlu2 %811 }
 0x181   : > { %886 = vst.msk [vmem:[#allocation3 + $0xb0] sm:$0xff] %vm863_vm5, %v812_v53  ;;  %1010 = vrot.lane.b32.xlu1 %v2936_v57, %s2663_s29 }
 0x183   : > { %1014 = vrot.lane.b32.xlu0 %v2962_v63, %s2663_s29  ;;  %v798_v54 = vpop.permute.xlu1 %797 }
 0x184   : > { %879 = vst.msk [vmem:[#allocation3 + $0x78] sm:$0xff] %vm863_vm5, %v798_v54  ;;  %v4010_v54 = vld [vmem:[#allocation29_spill] sm:$0xff] }
 0x185   : > { %v802_v59 = vpop.permute.xlu0 %801 }
 0x186   : > { %1012 = vrot.lane.b32.xlu2 %v2950_v60, %s2663_s29  ;;  %881 = vst.msk [vmem:[#allocation3 + $0x88] sm:$0xff] %vm863_vm5, %v802_v59  ;;  %v3426_v60 = vld [vmem:[#allocation2 + $0x189] sm:$0xff] }
 0x187   : > { %v4011_v59 = vld [vmem:[#allocation33_spill] sm:$0xff] }
 0x188   : > { %v818_v56 = vpop.permute.xlu2 %817 }
 0x189   : > { %889 = vst.msk [vmem:[#allocation3 + $0xc8] sm:$0xff] %vm863_vm5, %v818_v56  ;;  %1016 = vrot.lane.b32.xlu1 %v3988_v4, %s2663_s29 }
 0x18b   : > { %1020 = vrot.lane.b32.xlu0 %v3415_v18, %s2663_s29  ;;  %v804_v57 = vpop.permute.xlu1 %803 }
 0x18c   : > { %882 = vst.msk [vmem:[#allocation3 + $0x90] sm:$0xff] %vm863_vm5, %v804_v57  ;;  %v4012_v57 = vld [vmem:[#allocation31_spill] sm:$0xff] }
 0x18d   : > { %v808_v63 = vpop.permute.xlu0 %807 }
 0x18e   : > { %1018 = vrot.lane.b32.xlu2 %v3989_v8, %s2663_s29  ;;  %884 = vst.msk [vmem:[#allocation3 + $0xa0] sm:$0xff] %vm863_vm5, %v808_v63  ;;  %v4013_v8 = vld [vmem:[#allocation32_spill] sm:$0xff] }
 0x190   : > { %v824_v11 = vpop.permute.xlu2 %823 }
 0x191   : > { %892 = vst.msk [vmem:[#allocation3 + $0xe0] sm:$0xff] %vm863_vm5, %v824_v11  ;;  %1022 = vrot.lane.b32.xlu1 %v3426_v60, %s2663_s29  ;;  %v4014_v11 = vld [vmem:[#allocation36_spill] sm:$0xff]  ;;  %s2529_s29 = sshll.u32 %s2706_s13, 6  ;;  %s2418_s13 = sshll.u32 %s3871_s28, 4  ;;  %s2419_s13 = int_to_ptr.vmem [resolvable:$true] %s2418_s13 }
 0x193   : > { %1155 = vrot.lane.b32.xlu0 %v3990_v9, %s2664_s30  ;;  %v810_v28 = vpop.permute.xlu1 %809 }
 0x194   : > { %885 = vst.msk [vmem:[#allocation3 + $0xa8] sm:$0xff] %vm863_vm5, %v810_v28 }
 0x195   : > { %v814_v31 = vpop.permute.xlu0 %813 }
 0x196   : > { %1153 = vrot.lane.b32.xlu2 %v3991_v37, %s2664_s30  ;;  %887 = vst.msk [vmem:[#allocation3 + $0xb8] sm:$0xff] %vm863_vm5, %v814_v31  ;;  %v4015_v31 = vld [vmem:[#allocation34_spill] sm:$0xff] }
 0x198   : > { %v830_v62 = vpop.permute.xlu2 %829 }
 0x199   : > { %895 = vst.msk [vmem:[#allocation3 + $0xf8] sm:$0xff] %vm863_vm5, %v830_v62  ;;  %1157 = vrot.lane.b32.xlu1 %v3992_v49, %s2664_s30  ;;  %v4016_v62 = vld [vmem:[#allocation35_spill] sm:$0xff] }
 0x19b   : > { %1161 = vrot.lane.b32.xlu0 %v3993_v15, %s2664_s30  ;;  %v816_v20 = vpop.permute.xlu1 %815 }
 0x19c   : > { %888 = vst.msk [vmem:[#allocation3 + $0xc0] sm:$0xff] %vm863_vm5, %v816_v20 }
 0x19d   : > { %v820_v21 = vpop.permute.xlu0 %819 }
 0x19e   : > { %1159 = vrot.lane.b32.xlu2 %v3994_v13, %s2664_s30  ;;  %890 = vst.msk [vmem:[#allocation3 + $0xd0] sm:$0xff] %vm863_vm5, %v820_v21  ;;  %v3518_v21 = vld [vmem:[#allocation2 + $0x18a] sm:$0xff] }
 0x19f   : > { %v4017_v13 = vld [vmem:[#allocation37_spill] sm:$0xff] }
 0x1a0   : > { %v965_v44 = vpop.permute.xlu2 %964 }
 0x1a1   : > { %1059 = vst.msk [vmem:[#allocation3 + $0x10] sm:$0xff] %vm1056_vm6, %v965_v44  ;;  %1163 = vrot.lane.b32.xlu1 %v3995_v33, %s2664_s30 }
 0x1a3   : > { %1167 = vrot.lane.b32.xlu0 %v3996_v2, %s2664_s30  ;;  %v822_v61 = vpop.permute.xlu1 %821 }
 0x1a4   : > { %891 = vst.msk [vmem:[#allocation3 + $0xd8] sm:$0xff] %vm863_vm5, %v822_v61  ;;  %v1284_v61 = vld [vmem:[#allocation2 + $0x38] sm:$0xff] }
 0x1a5   : > { %v826_v3 = vpop.permute.xlu0 %825 }
 0x1a6   : > { %1165 = vrot.lane.b32.xlu2 %v3997_v1, %s2664_s30  ;;  %893 = vst.msk [vmem:[#allocation3 + $0xe8] sm:$0xff] %vm863_vm5, %v826_v3 }
 0x1a8   : > { %v971_v10 = vpop.permute.xlu2 %970 }
 0x1a9   : > { %1062 = vst.msk [vmem:[#allocation3 + $0x28] sm:$0xff] %vm1056_vm6, %v971_v10  ;;  %1169 = vrot.lane.b32.xlu1 %v3998_v5, %s2664_s30 }
 0x1ab   : > { %1173 = vrot.lane.b32.xlu0 %v3999_v7, %s2664_s30  ;;  %v828_v58 = vpop.permute.xlu1 %827 }
 0x1ac   : > { %894 = vst.msk [vmem:[#allocation3 + $0xf0] sm:$0xff] %vm863_vm5, %v828_v58 }
 0x1ad   : > { %v961_v17 = vpop.permute.xlu0 %960 }
 0x1ae   : > { %1171 = vrot.lane.b32.xlu2 %v4000_v23, %s2664_s30  ;;  %1057 = vst.msk [vmem:[#allocation3] sm:$0xff] %vm1056_vm6, %v961_v17 }
 0x1b0   : > { %v977_v14 = vpop.permute.xlu2 %976 }
 0x1b1   : > { %1065 = vst.msk [vmem:[#allocation3 + $0x40] sm:$0xff] %vm1056_vm6, %v977_v14  ;;  %1175 = vrot.lane.b32.xlu1 %v4001_v19, %s2664_s30  ;;  %v1685_v19 = vld [vmem:[#allocation2 + $0xf2] sm:$0xff] }
 0x1b3   : > { %1179 = vrot.lane.b32.xlu0 %v4002_v30, %s2664_s30  ;;  %v963_v27 = vpop.permute.xlu1 %962 }
 0x1b4   : > { %1058 = vst.msk [vmem:[#allocation3 + $0x8] sm:$0xff] %vm1056_vm6, %v963_v27 }
 0x1b5   : > { %v967_v29 = vpop.permute.xlu0 %966 }
 0x1b6   : > { %1177 = vrot.lane.b32.xlu2 %v4003_v36, %s2664_s30  ;;  %1060 = vst.msk [vmem:[#allocation3 + $0x18] sm:$0xff] %vm1056_vm6, %v967_v29  ;;  %v1476_v29 = vld [vmem:[#allocation2 + $0x31] sm:$0xff] }
 0x1b8   : > { %v983_v34 = vpop.permute.xlu2 %982 }
 0x1b9   : > { %1068 = vst.msk [vmem:[#allocation3 + $0x58] sm:$0xff] %vm1056_vm6, %v983_v34  ;;  %1181 = vrot.lane.b32.xlu1 %v4004_v35, %s2664_s30  ;;  %v1484_v34 = vld [vmem:[#allocation2 + $0x91] sm:$0xff] }
 0x1bb   : > { %1185 = vrot.lane.b32.xlu0 %v4005_v42, %s2664_s30  ;;  %v969_v40 = vpop.permute.xlu1 %968 }
 0x1bc   : > { %1061 = vst.msk [vmem:[#allocation3 + $0x20] sm:$0xff] %vm1056_vm6, %v969_v40  ;;  %v1669_v40 = vld [vmem:[#allocation2 + $0x32] sm:$0xff] }
 0x1bd   : > { %v973_v41 = vpop.permute.xlu0 %972 }
 0x1be   : > { %1183 = vrot.lane.b32.xlu2 %v4006_v48, %s2664_s30  ;;  %1063 = vst.msk [vmem:[#allocation3 + $0x30] sm:$0xff] %vm1056_vm6, %v973_v41  ;;  %v1493_v48 = vld [vmem:[#allocation2 + $0xf9] sm:$0xff] }
 0x1c0   : > { %v989_v46 = vpop.permute.xlu2 %988 }
 0x1c1   : > { %1071 = vst.msk [vmem:[#allocation3 + $0x70] sm:$0xff] %vm1056_vm6, %v989_v46  ;;  %1187 = vrot.lane.b32.xlu1 %v4007_v47, %s2664_s30  ;;  %v1677_v46 = vld [vmem:[#allocation2 + $0x92] sm:$0xff] }
 0x1c3   : > { %1191 = vrot.lane.b32.xlu0 %v4008_v52, %s2664_s30  ;;  %v975_v50 = vpop.permute.xlu1 %974 }
 0x1c4   : > { %1064 = vst.msk [vmem:[#allocation3 + $0x38] sm:$0xff] %vm1056_vm6, %v975_v50  ;;  %v1501_v50 = vld [vmem:[#allocation2 + $0x159] sm:$0xff] }
 0x1c5   : > { %v979_v51 = vpop.permute.xlu0 %978 }
 0x1c6   : > { %1189 = vrot.lane.b32.xlu2 %v4009_v55, %s2664_s30  ;;  %1066 = vst.msk [vmem:[#allocation3 + $0x48] sm:$0xff] %vm1056_vm6, %v979_v51  ;;  %v1686_v51 = vld [vmem:[#allocation2 + $0xfa] sm:$0xff] }
 0x1c8   : > { %v995_v53 = vpop.permute.xlu2 %994 }
 0x1c9   : > { %1074 = vst.msk [vmem:[#allocation3 + $0x88] sm:$0xff] %vm1056_vm6, %v995_v53  ;;  %1193 = vrot.lane.b32.xlu1 %v4010_v54, %s2664_s30  ;;  %v1694_v54 = vld [vmem:[#allocation2 + $0x15a] sm:$0xff] }
 0x1cb   : > { %1197 = vrot.lane.b32.xlu0 %v4011_v59, %s2664_s30  ;;  %v981_v56 = vpop.permute.xlu1 %980 }
 0x1cc   : > { %1067 = vst.msk [vmem:[#allocation3 + $0x50] sm:$0xff] %vm1056_vm6, %v981_v56  ;;  %v1477_v56 = vld [vmem:[#allocation2 + $0x39] sm:$0xff] }
 0x1cd   : > { %v985_v4 = vpop.permute.xlu0 %984 }
 0x1ce   : > { %1195 = vrot.lane.b32.xlu2 %v4012_v57, %s2664_s30  ;;  %1069 = vst.msk [vmem:[#allocation3 + $0x60] sm:$0xff] %vm1056_vm6, %v985_v4 }
 0x1d0   : > { %v1001_v63 = vpop.permute.xlu2 %1000 }
 0x1d1   : > { %1077 = vst.msk [vmem:[#allocation3 + $0xa0] sm:$0xff] %vm1056_vm6, %v1001_v63  ;;  %1199 = vrot.lane.b32.xlu1 %v4013_v8, %s2664_s30  ;;  %v1485_v63 = vld [vmem:[#allocation2 + $0x99] sm:$0xff] }
 0x1d3   : > { %1203 = vrot.lane.b32.xlu0 %v4014_v11, %s2664_s30  ;;  %v987_v9 = vpop.permute.xlu1 %986  ;;  %v1670_v11 = vld [vmem:[#allocation2 + $0x3a] sm:$0xff] }
 0x1d4   : > { %1070 = vst.msk [vmem:[#allocation3 + $0x68] sm:$0xff] %vm1056_vm6, %v987_v9  ;;  %v1301_v9 = vld [vmem:[#allocation2 + $0x108] sm:$0xff] }
 0x1d5   : > { %v991_v28 = vpop.permute.xlu0 %990 }
 0x1d6   : > { %1201 = vrot.lane.b32.xlu2 %v4015_v31, %s2664_s30  ;;  %1072 = vst.msk [vmem:[#allocation3 + $0x78] sm:$0xff] %vm1056_vm6, %v991_v28 }
 0x1d8   : > { %v1007_v37 = vpop.permute.xlu2 %1006 }
 0x1d9   : > { %1080 = vst.msk [vmem:[#allocation3 + $0xb8] sm:$0xff] %vm1056_vm6, %v1007_v37  ;;  %1205 = vrot.lane.b32.xlu1 %v4016_v62, %s2664_s30  ;;  %v1678_v37 = vld [vmem:[#allocation2 + $0x9a] sm:$0xff] }
 0x1db   : > { %1209 = vrot.lane.b32.xlu0 %v3220_v45, %s2664_s30  ;;  %v993_v49 = vpop.permute.xlu1 %992  ;;  %v3525_v45 = vld [vmem:[#allocation2 + $0x182] sm:$0xff] }
 0x1dc   : > { %1073 = vst.msk [vmem:[#allocation3 + $0x80] sm:$0xff] %vm1056_vm6, %v993_v49  ;;  %v1494_v49 = vld [vmem:[#allocation2 + $0x109] sm:$0xff] }
 0x1dd   : > { %v997_v15 = vpop.permute.xlu0 %996 }
 0x1de   : > { %1207 = vrot.lane.b32.xlu2 %v3203_v12, %s2664_s30  ;;  %1075 = vst.msk [vmem:[#allocation3 + $0x90] sm:$0xff] %vm1056_vm6, %v997_v15  ;;  %v1283_v12 = vld [vmem:[#allocation2 + $0x30] sm:$0xff] }
 0x1e0   : > { %v1013_v20 = vpop.permute.xlu2 %1012 }
 0x1e1   : > { %1083 = vst.msk [vmem:[#allocation3 + $0xd0] sm:$0xff] %vm1056_vm6, %v1013_v20  ;;  %1211 = vrot.lane.b32.xlu1 %v4017_v13, %s2664_s30  ;;  %v1687_v13 = vld [vmem:[#allocation2 + $0x10a] sm:$0xff] }
 0x1e3   : > { %1215 = vrot.lane.b32.xlu0 %v3518_v21, %s2664_s30  ;;  %v999_v44 = vpop.permute.xlu1 %998 }
 0x1e4   : > { %1076 = vst.msk [vmem:[#allocation3 + $0x98] sm:$0xff] %vm1056_vm6, %v999_v44 }
 0x1e5   : > { %v1003_v33 = vpop.permute.xlu0 %1002 }
 0x1e6   : > { %1213 = vrot.lane.b32.xlu2 %v3525_v45, %s2664_s30  ;;  %1078 = vst.msk [vmem:[#allocation3 + $0xa8] sm:$0xff] %vm1056_vm6, %v1003_v33  ;;  %v1695_v33 = vld [vmem:[#allocation2 + $0x16a] sm:$0xff] }
 0x1e8   : > { %v1019_v2 = vpop.permute.xlu2 %1018 }
 0x1e9   : > { %1086 = vst.msk [vmem:[#allocation3 + $0xe8] sm:$0xff] %vm1056_vm6, %v1019_v2  ;;  %1347 = vrot.lane.b32.xlu1 %v1283_v12, %s2665_s3  ;;  %v1502_v12 = vld [vmem:[#allocation2 + $0x169] sm:$0xff] }
 0x1eb   : > { %1351 = vrot.lane.b32.xlu0 %v3003_v16, %s2665_s3  ;;  %v1005_v3 = vpop.permute.xlu1 %1004  ;;  %v1287_v16 = vld [vmem:[#allocation2 + $0x60] sm:$0xff] }
 0x1ec   : > { %1079 = vst.msk [vmem:[#allocation3 + $0xb0] sm:$0xff] %vm1056_vm6, %v1005_v3 }
 0x1ed   : > { %v1009_v1 = vpop.permute.xlu0 %1008 }
 0x1ee   : > { %1349 = vrot.lane.b32.xlu2 %v1284_v61, %s2665_s3  ;;  %1081 = vst.msk [vmem:[#allocation3 + $0xc0] sm:$0xff] %vm1056_vm6, %v1009_v1  ;;  %v1293_v61 = vld [vmem:[#allocation2 + $0xa8] sm:$0xff] }
 0x1ef   : > { %v1486_v1 = vld [vmem:[#allocation2 + $0xa9] sm:$0xff] }
 0x1f0   : > { %v1154_v10 = vpop.permute.xlu2 %1153 }
 0x1f1   : > { %1250 = vst.msk [vmem:[#allocation3] sm:$0xff] %vm1249_vm7, %v1154_v10  ;;  %1353 = vrot.lane.b32.xlu1 %v3026_v25, %s2665_s3  ;;  %v1290_v25 = vld [vmem:[#allocation2 + $0x80] sm:$0xff]  ;;  %v1478_v10 = vld [vmem:[#allocation2 + $0x49] sm:$0xff] }
 0x1f3   : > { %1357 = vrot.lane.b32.xlu0 %v3028_v26, %s2665_s3  ;;  %v1011_v5 = vpop.permute.xlu1 %1010 }
 0x1f4   : > { %1082 = vst.msk [vmem:[#allocation3 + $0xc8] sm:$0xff] %vm1056_vm6, %v1011_v5 }
 0x1f5   : > { %v1015_v7 = vpop.permute.xlu0 %1014 }
 0x1f6   : > { %1355 = vrot.lane.b32.xlu2 %v1287_v16, %s2665_s3  ;;  %1084 = vst.msk [vmem:[#allocation3 + $0xd8] sm:$0xff] %vm1056_vm6, %v1015_v7  ;;  %v1302_v7 = vld [vmem:[#allocation2 + $0x110] sm:$0xff] }
 0x1f8   : > { %v1160_v58 = vpop.permute.xlu2 %1159 }
 0x1f9   : > { %1253 = vst.msk [vmem:[#allocation3 + $0x18] sm:$0xff] %vm1249_vm7, %v1160_v58  ;;  %1359 = vrot.lane.b32.xlu1 %v3051_v38, %s2665_s3  ;;  %v1492_v38 = vld [vmem:[#allocation2 + $0xf1] sm:$0xff] }
 0x1fb   : > { %1363 = vrot.lane.b32.xlu0 %v3053_v39, %s2665_s3  ;;  %v1017_v26 = vpop.permute.xlu1 %1016 }
 0x1fc   : > { %1085 = vst.msk [vmem:[#allocation3 + $0xe0] sm:$0xff] %vm1056_vm6, %v1017_v26  ;;  %v1671_v26 = vld [vmem:[#allocation2 + $0x4a] sm:$0xff] }
 0x1fd   : > { %v1021_v17 = vpop.permute.xlu0 %1020 }
 0x1fe   : > { %1361 = vrot.lane.b32.xlu2 %v1290_v25, %s2665_s3  ;;  %1087 = vst.msk [vmem:[#allocation3 + $0xf0] sm:$0xff] %vm1056_vm6, %v1021_v17  ;;  %v1679_v25 = vld [vmem:[#allocation2 + $0xaa] sm:$0xff] }
 0x200   : > { %v1166_v23 = vpop.permute.xlu2 %1165 }
 0x201   : > { %1256 = vst.msk [vmem:[#allocation3 + $0x30] sm:$0xff] %vm1249_vm7, %v1166_v23  ;;  %1379 = vrot.lane.b32.xlu1 %v3057_v43, %s2665_s3  ;;  %v1500_v43 = vld [vmem:[#allocation2 + $0x151] sm:$0xff] }
 0x203   : > { %1395 = vrot.lane.b32.xlu0 %v3205_v22, %s2665_s3  ;;  %v1023_v39 = vpop.permute.xlu1 %1022 }
 0x204   : > { %1088 = vst.msk [vmem:[#allocation3 + $0xf8] sm:$0xff] %vm1056_vm6, %v1023_v39 }
 0x205   : > { %v1156_v14 = vpop.permute.xlu0 %1155 }
 0x206   : > { %1572 = vrot.lane.b32.xlu2 %v1492_v38, %s2666_s4  ;;  %1251 = vst.msk [vmem:[#allocation3 + $0x8] sm:$0xff] %vm1249_vm7, %v1156_v14  ;;  %v1495_v38 = vld [vmem:[#allocation2 + $0x111] sm:$0xff] }
 0x207   : > { %v1688_v14 = vld [vmem:[#allocation2 + $0x112] sm:$0xff] }
 0x208   : > { %v1172_v30 = vpop.permute.xlu2 %1171 }
 0x209   : > { %1259 = vst.msk [vmem:[#allocation3 + $0x48] sm:$0xff] %vm1249_vm7, %v1172_v30  ;;  %1765 = vrot.lane.b32.xlu1 %v1685_v19, %s2667_s5  ;;  %v1310_v19 = vld [vmem:[#allocation2 + $0x170] sm:$0xff] }
 0x20b   : > { %1781 = vrot.lane.b32.xlu0 %v4016_v62, %s2667_s5  ;;  %v1158_v22 = vpop.permute.xlu1 %1157 }
 0x20c   : > { %1252 = vst.msk [vmem:[#allocation3 + $0x10] sm:$0xff] %vm1249_vm7, %v1158_v22  ;;  %v1503_v22 = vld [vmem:[#allocation2 + $0x171] sm:$0xff] }
 0x20d   : > { %v1162_v27 = vpop.permute.xlu0 %1161 }
 0x20e   : > { %1588 = vrot.lane.b32.xlu2 %v1500_v43, %s2666_s4  ;;  %1254 = vst.msk [vmem:[#allocation3 + $0x20] sm:$0xff] %vm1249_vm7, %v1162_v27  ;;  %v1898_v27 = vld [vmem:[%s3923_s1 + $0x20] sm:$0xf] }
 0x20f   : > { %2531 = vmatpush.msk.msra.mxu2 %vm1996_vm9, %v1898_v27  ;;  %2532 = vmatpush.msk.msra.mxu3 %vm1996_vm9, %v1898_v27 }
 0x210   : > { %v1178_v36 = vpop.permute.xlu2 %1177  ;;  %2490 = vmatpush.msk.msra.mxu0 %vm1996_vm9, %v1898_v27  ;;  %2530 = vmatpush.msk.msra.mxu1 %vm1996_vm9, %v1898_v27 }
 0x211   : > { %1262 = vst.msk [vmem:[#allocation3 + $0x60] sm:$0xff] %vm1249_vm7, %v1178_v36  ;;  %1540 = vrot.lane.b32.xlu1 %v1476_v29, %s2666_s4  ;;  %v1294_v36 = vld [vmem:[#allocation2 + $0xb0] sm:$0xff] }
 0x213   : > { %1381 = vrot.lane.b32.xlu0 %v3134_v24, %s2665_s3  ;;  %v1164_v35 = vpop.permute.xlu1 %1163 }
 0x214   : > { %1255 = vst.msk [vmem:[#allocation3 + $0x28] sm:$0xff] %vm1249_vm7, %v1164_v35  ;;  %v1896_v35 = vld [vmem:[%s3923_s1 + $0x10] sm:$0xff] }
 0x215   : > { %v1168_v42 = vpop.permute.xlu0 %1167 }
 0x216   : > { %1556 = vrot.lane.b32.xlu2 %v1484_v34, %s2666_s4  ;;  %1257 = vst.msk [vmem:[#allocation3 + $0x38] sm:$0xff] %vm1249_vm7, %v1168_v42  ;;  %v1897_v34 = vld [vmem:[%s3923_s1 + $0x18] sm:$0xff]  ;;  %v1895_v42 = vld [vmem:[%s3923_s1 + $0x8] sm:$0xff] }
 0x217   : > { %2534 = vmatpush.msra.mxu2 %v1897_v34  ;;  %2535 = vmatpush.msra.mxu3 %v1897_v34 }
 0x218   : > { %v1184_v41 = vpop.permute.xlu2 %1183  ;;  %2012 = vmatpush.msra.mxu0 %v1897_v34  ;;  %2533 = vmatpush.msra.mxu1 %v1897_v34 }
 0x219   : > { %1265 = vst.msk [vmem:[#allocation3 + $0x78] sm:$0xff] %vm1249_vm7, %v1184_v41  ;;  %1733 = vrot.lane.b32.xlu1 %v1669_v40, %s2667_s5  ;;  %v1696_v40 = vld [vmem:[#allocation2 + $0x172] sm:$0xff]  ;;  %2537 = vmatpush.msra.mxu2 %v1896_v35 }
 0x21a   : > { %2538 = vmatpush.msra.mxu3 %v1896_v35  ;;  %2013 = vmatpush.msra.mxu0 %v1896_v35 }
 0x21b   : > { %1574 = vrot.lane.b32.xlu0 %v1493_v48, %s2666_s4  ;;  %v1170_v24 = vpop.permute.xlu1 %1169  ;;  %2540 = vmatpush.msra.mxu2 %v1895_v42 }
 0x21c   : > { %1258 = vst.msk [vmem:[#allocation3 + $0x40] sm:$0xff] %vm1249_vm7, %v1170_v24  ;;  %2541 = vmatpush.msra.mxu3 %v1895_v42  ;;  %v1894_v24 = vld [vmem:[%s3923_s1] sm:$0xff]  ;;  %2536 = vmatpush.msra.mxu1 %v1896_v35 }
 0x21d   : > { %v1174_v47 = vpop.permute.xlu0 %1173  ;;  %2543 = vmatpush.msra.mxu2 %v1894_v24  ;;  %2014 = vmatpush.msra.mxu0 %v1895_v42  ;;  %v1691_v35 = vld [vmem:[#allocation2 + $0x13a] sm:$0xff] }
 0x21e   : > { %1749 = vrot.lane.b32.xlu2 %v1677_v46, %s2667_s5  ;;  %1260 = vst.msk [vmem:[#allocation3 + $0x50] sm:$0xff] %vm1249_vm7, %v1174_v47  ;;  %v1479_v46 = vld [vmem:[#allocation2 + $0x51] sm:$0xff]  ;;  %2544 = vmatpush.msra.mxu3 %v1894_v24 }
 0x21f   : > { %2539 = vmatpush.msra.mxu1 %v1895_v42  ;;  %2015 = vmatpush.msra.mxu0 %v1894_v24 }
 0x220   : > { %v1190_v52 = vpop.permute.xlu2 %1189 }
 0x221   : > { %1268 = vst.msk [vmem:[#allocation3 + $0x90] sm:$0xff] %vm1249_vm7, %v1190_v52  ;;  %1397 = vrot.lane.b32.xlu1 %v3138_v32, %s2665_s3  ;;  %v1292_v32 = vld [vmem:[#allocation2 + $0x98] sm:$0xff]  ;;  %v1303_v52 = vld [vmem:[#allocation2 + $0x120] sm:$0xff]  ;;  %2542 = vmatpush.msra.mxu1 %v1894_v24 }
 0x223   : > { %1590 = vrot.lane.b32.xlu0 %v1501_v50, %s2666_s4  ;;  %v1176_v55 = vpop.permute.xlu1 %1175  ;;  %v1487_v50 = vld [vmem:[#allocation2 + $0xb1] sm:$0xff] }
 0x224   : > { %1261 = vst.msk [vmem:[#allocation3 + $0x58] sm:$0xff] %vm1249_vm7, %v1176_v55 }
 0x225   : > { %v1180_v53 = vpop.permute.xlu0 %1179 }
 0x226   : > { %1767 = vrot.lane.b32.xlu2 %v1686_v51, %s2667_s5  ;;  %1263 = vst.msk [vmem:[#allocation3 + $0x68] sm:$0xff] %vm1249_vm7, %v1180_v53  ;;  %v1672_v53 = vld [vmem:[#allocation2 + $0x52] sm:$0xff] }
 0x228   : > { %v1196_v59 = vpop.permute.xlu2 %1195 }
 0x229   : > { %1271 = vst.msk [vmem:[#allocation3 + $0xa8] sm:$0xff] %vm1249_vm7, %v1196_v59  ;;  %1783 = vrot.lane.b32.xlu1 %v1694_v54, %s2667_s5  ;;  %v1496_v59 = vld [vmem:[#allocation2 + $0x121] sm:$0xff] }
 0x22b   : > { %1542 = vrot.lane.b32.xlu0 %v1477_v56, %s2666_s4  ;;  %v1182_v4 = vpop.permute.xlu1 %1181  ;;  %v1680_v56 = vld [vmem:[#allocation2 + $0xb2] sm:$0xff] }
 0x22c   : > { %1264 = vst.msk [vmem:[#allocation3 + $0x70] sm:$0xff] %vm1249_vm7, %v1182_v4 }
 0x22d   : > { %v1186_v57 = vpop.permute.xlu0 %1185 }
 0x22e   : > { %1365 = vrot.lane.b32.xlu2 %v1292_v32, %s2665_s3  ;;  %1266 = vst.msk [vmem:[#allocation3 + $0x80] sm:$0xff] %vm1249_vm7, %v1186_v57 }
 0x230   : > { %v1202_v8 = vpop.permute.xlu2 %1201 }
 0x231   : > { %1274 = vst.msk [vmem:[#allocation3 + $0xc0] sm:$0xff] %vm1249_vm7, %v1202_v8  ;;  %1558 = vrot.lane.b32.xlu1 %v1485_v63, %s2666_s4  ;;  %v1689_v63 = vld [vmem:[#allocation2 + $0x122] sm:$0xff] }
 0x233   : > { %1735 = vrot.lane.b32.xlu0 %v1670_v11, %s2667_s5  ;;  %v1188_v28 = vpop.permute.xlu1 %1187 }
 0x234   : > { %1267 = vst.msk [vmem:[#allocation3 + $0x88] sm:$0xff] %vm1249_vm7, %v1188_v28  ;;  %v1480_v28 = vld [vmem:[#allocation2 + $0x61] sm:$0xff] }
 0x235   : > { %v1192_v31 = vpop.permute.xlu0 %1191 }
 0x236   : > { %1383 = vrot.lane.b32.xlu2 %v1301_v9, %s2665_s3  ;;  %1269 = vst.msk [vmem:[#allocation3 + $0x98] sm:$0xff] %vm1249_vm7, %v1192_v31 }
 0x238   : > { %v1208_v62 = vpop.permute.xlu2 %1207 }
 0x239   : > { %1277 = vst.msk [vmem:[#allocation3 + $0xd8] sm:$0xff] %vm1249_vm7, %v1208_v62  ;;  %1751 = vrot.lane.b32.xlu1 %v1678_v37, %s2667_s5 }
 0x23b   : > { %1399 = vrot.lane.b32.xlu0 %v3207_v0, %s2665_s3  ;;  %v1194_v15 = vpop.permute.xlu1 %1193 }
 0x23c   : > { %1270 = vst.msk [vmem:[#allocation3 + $0xa0] sm:$0xff] %vm1249_vm7, %v1194_v15 }
 0x23d   : > { %v1198_v20 = vpop.permute.xlu0 %1197 }
 0x23e   : > { %1576 = vrot.lane.b32.xlu2 %v1494_v49, %s2666_s4  ;;  %1272 = vst.msk [vmem:[#allocation3 + $0xb0] sm:$0xff] %vm1249_vm7, %v1198_v20  ;;  %v1673_v20 = vld [vmem:[#allocation2 + $0x62] sm:$0xff] }
 0x240   : > { %v1214_v44 = vpop.permute.xlu2 %1213 }
 0x241   : > { %1280 = vst.msk [vmem:[#allocation3 + $0xf0] sm:$0xff] %vm1249_vm7, %v1214_v44  ;;  %1769 = vrot.lane.b32.xlu1 %v1687_v13, %s2667_s5  ;;  %v1304_v13 = vld [vmem:[#allocation2 + $0x128] sm:$0xff] }
 0x243   : > { %1785 = vrot.lane.b32.xlu0 %v1695_v33, %s2667_s5  ;;  %v1200_v0 = vpop.permute.xlu1 %1199 }
 0x244   : > { %1273 = vst.msk [vmem:[#allocation3 + $0xb8] sm:$0xff] %vm1249_vm7, %v1200_v0 }
 0x245   : > { %v1204_v2 = vpop.permute.xlu0 %1203 }
 0x246   : > { %1592 = vrot.lane.b32.xlu2 %v1502_v12, %s2666_s4  ;;  %1275 = vst.msk [vmem:[#allocation3 + $0xc8] sm:$0xff] %vm1249_vm7, %v1204_v2  ;;  %v1681_v12 = vld [vmem:[#allocation2 + $0xc2] sm:$0xff] }
 0x247   : > { %v1312_v2 = vld [vmem:[#allocation2 + $0x188] sm:$0xff] }
 0x248   : > { %v1350_v3 = vpop.permute.xlu2 %1349 }
 0x249   : > { %1445 = vst.msk [vmem:[#allocation3 + $0x8] sm:$0xff] %vm1443_vm8, %v1350_v3  ;;  %1367 = vrot.lane.b32.xlu1 %v1293_v61, %s2665_s3  ;;  %v1497_v61 = vld [vmem:[#allocation2 + $0x129] sm:$0xff] }
 0x24b   : > { %1560 = vrot.lane.b32.xlu0 %v1486_v1, %s2666_s4  ;;  %v1206_v16 = vpop.permute.xlu1 %1205 }
 0x24c   : > { %1276 = vst.msk [vmem:[#allocation3 + $0xd0] sm:$0xff] %vm1249_vm7, %v1206_v16 }
 0x24d   : > { %v1210_v5 = vpop.permute.xlu0 %1209 }
 0x24e   : > { %1544 = vrot.lane.b32.xlu2 %v1478_v10, %s2666_s4  ;;  %1278 = vst.msk [vmem:[#allocation3 + $0xe0] sm:$0xff] %vm1249_vm7, %v1210_v5  ;;  %v1690_v5 = vld [vmem:[#allocation2 + $0x12a] sm:$0xff] }
 0x250   : > { %v1356_v58 = vpop.permute.xlu2 %1355 }
 0x251   : > { %1448 = vst.msk [vmem:[#allocation3 + $0x20] sm:$0xff] %vm1443_vm8, %v1356_v58  ;;  %1385 = vrot.lane.b32.xlu1 %v1302_v7, %s2665_s3 }
 0x253   : > { %1753 = vrot.lane.b32.xlu0 %v1679_v25, %s2667_s5  ;;  %v1212_v17 = vpop.permute.xlu1 %1211 }
 0x254   : > { %1279 = vst.msk [vmem:[#allocation3 + $0xe8] sm:$0xff] %vm1249_vm7, %v1212_v17 }
 0x255   : > { %v1216_v23 = vpop.permute.xlu0 %1215 }
 0x256   : > { %1737 = vrot.lane.b32.xlu2 %v1671_v26, %s2667_s5  ;;  %1281 = vst.msk [vmem:[#allocation3 + $0xf8] sm:$0xff] %vm1249_vm7, %v1216_v23  ;;  %v1296_v26 = vld [vmem:[#allocation2 + $0xc8] sm:$0xff] }
 0x257   : > { %v1489_v23 = vld [vmem:[#allocation2 + $0xc9] sm:$0xff] }
 0x258   : > { %v1362_v39 = vpop.permute.xlu2 %1361 }
 0x259   : > { %1451 = vst.msk [vmem:[#allocation3 + $0x38] sm:$0xff] %vm1443_vm8, %v1362_v39  ;;  %1578 = vrot.lane.b32.xlu1 %v1495_v38, %s2666_s4  ;;  %v1481_v38 = vld [vmem:[#allocation2 + $0x69] sm:$0xff] }
 0x25b   : > { %1771 = vrot.lane.b32.xlu0 %v1688_v14, %s2667_s5  ;;  %v1348_v30 = vpop.permute.xlu1 %1347 }
 0x25c   : > { %1444 = vst.msk [vmem:[#allocation3] sm:$0xff] %vm1443_vm8, %v1348_v30  ;;  %v1682_v30 = vld [vmem:[#allocation2 + $0xca] sm:$0xff] }
 0x25d   : > { %v1352_v43 = vpop.permute.xlu0 %1351 }
 0x25e   : > { %1401 = vrot.lane.b32.xlu2 %v1310_v19, %s2665_s3  ;;  %1446 = vst.msk [vmem:[#allocation3 + $0x10] sm:$0xff] %vm1443_vm8, %v1352_v43  ;;  %v1674_v43 = vld [vmem:[#allocation2 + $0x6a] sm:$0xff] }
 0x260   : > { %v1573_v29 = vpop.permute.xlu2 %1572 }
 0x261   : > { %1594 = vrot.lane.b32.xlu1 %v1503_v22, %s2666_s4 }
 0x263   : > { %1369 = vrot.lane.b32.xlu0 %v1294_v36, %s2665_s3  ;;  %v1354_v41 = vpop.permute.xlu1 %1353  ;;  %v1498_v36 = vld [vmem:[#allocation2 + $0x139] sm:$0xff] }
 0x264   : > { %1447 = vst.msk [vmem:[#allocation3 + $0x18] sm:$0xff] %vm1443_vm8, %v1354_v41  ;;  %v1313_v41 = vld [vmem:[#allocation2 + $0x198] sm:$0xff] }
 0x265   : > { %v1358_v48 = vpop.permute.xlu0 %1357 }
 0x266   : > { %1787 = vrot.lane.b32.xlu2 %v1696_v40, %s2667_s5  ;;  %1449 = vst.msk [vmem:[#allocation3 + $0x28] sm:$0xff] %vm1443_vm8, %v1358_v48 }
 0x268   : > { %v1589_v47 = vpop.permute.xlu2 %1588 }
 0x269   : > { %1546 = vrot.lane.b32.xlu1 %v1479_v46, %s2666_s4  ;;  %v1506_v46 = vld [vmem:[#allocation2 + $0x199] sm:$0xff] }
 0x26b   : > { %1387 = vrot.lane.b32.xlu0 %v1303_v52, %s2665_s3  ;;  %v1360_v51 = vpop.permute.xlu1 %1359  ;;  %v1297_v52 = vld [vmem:[#allocation2 + $0xd8] sm:$0xff] }
 0x26c   : > { %1450 = vst.msk [vmem:[#allocation3 + $0x30] sm:$0xff] %vm1443_vm8, %v1360_v51 }
 0x26d   : > { %v1364_v55 = vpop.permute.xlu0 %1363 }
 0x26e   : > { %1562 = vrot.lane.b32.xlu2 %v1487_v50, %s2666_s4  ;;  %1452 = vst.msk [vmem:[#allocation3 + $0x40] sm:$0xff] %vm1443_vm8, %v1364_v55  ;;  %v1699_v55 = vld [vmem:[#allocation2 + $0x19a] sm:$0xff] }
 0x270   : > { %v1557_v54 = vpop.permute.xlu2 %1556 }
 0x271   : > { %1645 = vst.msk [vmem:[#allocation3 + $0x40] sm:$0xff] %vm1636_vm10, %v1557_v54  ;;  %1739 = vrot.lane.b32.xlu1 %v1672_v53, %s2667_s5 }
 0x273   : > { %1580 = vrot.lane.b32.xlu0 %v1496_v59, %s2666_s4  ;;  %v1380_v32 = vpop.permute.xlu1 %1379  ;;  %v1482_v59 = vld [vmem:[#allocation2 + $0x79] sm:$0xff] }
 0x274   : > { %1460 = vst.msk [vmem:[#allocation3 + $0x80] sm:$0xff] %vm1443_vm8, %v1380_v32  ;;  %v1306_v32 = vld [vmem:[#allocation2 + $0x140] sm:$0xff] }
 0x275   : > { %1653 = vst.msk [vmem:[#allocation3 + $0x80] sm:$0xff] %vm1636_vm10, %v1573_v29  ;;  %v1396_v4 = vpop.permute.xlu0 %1395 }
 0x276   : > { %1755 = vrot.lane.b32.xlu2 %v1680_v56, %s2667_s5  ;;  %1468 = vst.msk [vmem:[#allocation3 + $0xc0] sm:$0xff] %vm1443_vm8, %v1396_v4 }
 0x277   : > { %1661 = vst.msk [vmem:[#allocation3 + $0xc0] sm:$0xff] %vm1636_vm10, %v1589_v47 }
 0x278   : > { %v1750_v57 = vpop.permute.xlu2 %1749 }
 0x279   : > { %1838 = vst.msk [vmem:[#allocation3 + $0x40] sm:$0xff] %vm1829_vm11, %v1750_v57  ;;  %1403 = vrot.lane.b32.xlu1 %v3324_v6, %s2665_s3  ;;  %v1295_v6 = vld [vmem:[#allocation2 + $0xc0] sm:$0xff] }
 0x27a   : > { %v1490_v57 = vld [vmem:[#allocation2 + $0xd9] sm:$0xff] }
 0x27b   : > { %1596 = vrot.lane.b32.xlu0 %v3415_v18, %s2666_s4  ;;  %v1766_v8 = vpop.permute.xlu1 %1765 }
 0x27c   : > { %1846 = vst.msk [vmem:[#allocation3 + $0x80] sm:$0xff] %vm1829_vm11, %v1766_v8  ;;  %v1675_v8 = vld [vmem:[#allocation2 + $0x7a] sm:$0xff] }
 0x27d   : > { %v1782_v11 = vpop.permute.xlu0 %1781 }
 0x27e   : > { %1773 = vrot.lane.b32.xlu2 %v1689_v63, %s2667_s5  ;;  %1854 = vst.msk [vmem:[#allocation3 + $0xc0] sm:$0xff] %vm1829_vm11, %v1782_v11 }
 0x280   : > { %v1768_v9 = vpop.permute.xlu2 %1767  ;;  %v1870_v31 = vld [vmem:[#allocation3 + $0x40] sm:$0xff] }
 0x281   : > { %1789 = vrot.lane.b32.xlu1 %v3525_v45, %s2667_s5  ;;  %2499 = vmatmul.msk.f32.vlgmr.msra.gmra.mxu1 %vm1899_vm12, %v1870_v31  ;;  %v1488_v45 = vld [vmem:[#allocation2 + $0xc1] sm:$0xff] }
 0x282   : > { %v1683_v31 = vld [vmem:[#allocation2 + $0xda] sm:$0xff] }
 0x283   : > { %1548 = vrot.lane.b32.xlu0 %v1480_v28, %s2666_s4  ;;  %v1541_v18 = vpop.permute.xlu1 %1540  ;;  %v1878_v37 = vld [vmem:[#allocation3 + $0x80] sm:$0xff] }
 0x284   : > { %1637 = vst.msk [vmem:[#allocation3] sm:$0xff] %vm1636_vm10, %v1541_v18  ;;  %2507 = vmatmul.msk.f32.vlgmr.msra.gmra.mxu2 %vm1899_vm12, %v1878_v37  ;;  %v1314_v37 = vld [vmem:[#allocation2 + $0x1a0] sm:$0xff] }
 0x285   : > { %v1382_v62 = vpop.permute.xlu0 %1381  ;;  %v1886_v49 = vld [vmem:[#allocation3 + $0xc0] sm:$0xff] }
 0x286   : > { %1371 = vrot.lane.b32.xlu2 %v1295_v6, %s2665_s3  ;;  %1461 = vst.msk [vmem:[#allocation3 + $0x88] sm:$0xff] %vm1443_vm8, %v1382_v62  ;;  %2515 = vmatmul.msk.f32.vlgmr.msra.gmra.mxu3 %vm1899_vm12, %v1886_v49  ;;  %v1507_v49 = vld [vmem:[#allocation2 + $0x1a1] sm:$0xff] }
 0x288   : > { %v1366_v15 = vpop.permute.xlu2 %1365 }
 0x289   : > { %1453 = vst.msk [vmem:[#allocation3 + $0x48] sm:$0xff] %vm1443_vm8, %v1366_v15  ;;  %1564 = vrot.lane.b32.xlu1 %v1488_v45, %s2666_s4  ;;  %v1692_v15 = vld [vmem:[#allocation2 + $0x142] sm:$0xff] }
 0x28b   : > { %1741 = vrot.lane.b32.xlu0 %v1673_v20, %s2667_s5  ;;  %v1734_v44 = vpop.permute.xlu1 %1733 }
 0x28c   : > { %1830 = vst.msk [vmem:[#allocation3] sm:$0xff] %vm1829_vm11, %v1734_v44  ;;  %v1700_v44 = vld [vmem:[#allocation2 + $0x1a2] sm:$0xff] }
 0x28d   : > { %v1575_v33 = vpop.permute.xlu0 %1574 }
 0x28e   : > { %1389 = vrot.lane.b32.xlu2 %v1304_v13, %s2665_s3  ;;  %1654 = vst.msk [vmem:[#allocation3 + $0x88] sm:$0xff] %vm1636_vm10, %v1575_v33 }
 0x28f   : > { %1847 = vst.msk [vmem:[#allocation3 + $0x88] sm:$0xff] %vm1829_vm11, %v1768_v9  ;;  %v1499_v9 = vld [vmem:[#allocation2 + $0x141] sm:$0xff] }
 0x290   : > { %v1384_v0 = vpop.permute.xlu2 %1383 }
 0x291   : > { %1462 = vst.msk [vmem:[#allocation3 + $0x90] sm:$0xff] %vm1443_vm8, %v1384_v0  ;;  %1757 = vrot.lane.b32.xlu1 %v1681_v12, %s2667_s5  ;;  %v1483_v12 = vld [vmem:[#allocation2 + $0x81] sm:$0xff] }
 0x293   : > { %1405 = vrot.lane.b32.xlu0 %v1312_v2, %s2665_s3  ;;  %v1398_v3 = vpop.permute.xlu1 %1397  ;;  %v1862_v1 = vld [vmem:[#allocation3] sm:$0xff]  ;;  %v1298_v2 = vld [vmem:[#allocation2 + $0xe0] sm:$0xff] }
 0x294   : > { %1469 = vst.msk [vmem:[#allocation3 + $0xc8] sm:$0xff] %vm1443_vm8, %v1398_v3  ;;  %2491 = vmatmul.msk.f32.vlgmr.msra.gmra.mxu0 %vm1899_vm12, %v1862_v1  ;;  %v1491_v1 = vld [vmem:[#allocation2 + $0xe1] sm:$0xff] }
 0x295   : > { %v1591_v10 = vpop.permute.xlu0 %1590 }
 0x296   : > { %1582 = vrot.lane.b32.xlu2 %v1497_v61, %s2666_s4  ;;  %1662 = vst.msk [vmem:[#allocation3 + $0xc8] sm:$0xff] %vm1636_vm10, %v1591_v10  ;;  %v1879_v16 = vld [vmem:[#allocation3 + $0x88] sm:$0xff] }
 0x297   : > { %2508 = vmatmul.msk.f32.gmra.mxu2 %vm1899_vm12, %v1879_v16 }
 0x298   : > { %v1577_v7 = vpop.permute.xlu2 %1576 }
 0x299   : > { %1655 = vst.msk [vmem:[#allocation3 + $0x90] sm:$0xff] %vm1636_vm10, %v1577_v7  ;;  %1775 = vrot.lane.b32.xlu1 %v1690_v5, %s2667_s5  ;;  %v1684_v5 = vld [vmem:[#allocation2 + $0xe2] sm:$0xff] }
 0x29b   : > { %1791 = vrot.lane.b32.xlu0 %v3518_v21, %s2667_s5  ;;  %v1784_v58 = vpop.permute.xlu1 %1783 }
 0x29c   : > { %1855 = vst.msk [vmem:[#allocation3 + $0xc8] sm:$0xff] %vm1829_vm11, %v1784_v58  ;;  %v1676_v58 = vld [vmem:[#allocation2 + $0x82] sm:$0xff] }
 0x29d   : > { %v1543_v25 = vpop.permute.xlu0 %1542 }
 0x29e   : > { %1598 = vrot.lane.b32.xlu2 %v3426_v60, %s2666_s4  ;;  %1638 = vst.msk [vmem:[#allocation3 + $0x8] sm:$0xff] %vm1636_vm10, %v1543_v25  ;;  %v1305_v60 = vld [vmem:[#allocation2 + $0x138] sm:$0xff] }
 0x2a0   : > { %v1593_v17 = vpop.permute.xlu2 %1592 }
 0x2a1   : > { %1373 = vrot.lane.b32.xlu1 %v1296_v26, %s2665_s3 }
 0x2a3   : > { %1566 = vrot.lane.b32.xlu0 %v1489_v23, %s2666_s4  ;;  %v1559_v39 = vpop.permute.xlu1 %1558  ;;  %v1887_v14 = vld [vmem:[#allocation3 + $0xc8] sm:$0xff] }
 0x2a4   : > { %1646 = vst.msk [vmem:[#allocation3 + $0x48] sm:$0xff] %vm1636_vm10, %v1559_v39  ;;  %2516 = vmatmul.msk.f32.gmra.mxu3 %vm1899_vm12, %v1887_v14 }
 0x2a5   : > { %v1736_v21 = vpop.permute.xlu0 %1735 }
 0x2a6   : > { %1550 = vrot.lane.b32.xlu2 %v1481_v38, %s2666_s4  ;;  %1831 = vst.msk [vmem:[#allocation3 + $0x8] sm:$0xff] %vm1829_vm11, %v1736_v21 }
 0x2a8   : > { %v1545_v19 = vpop.permute.xlu2 %1544 }
 0x2a9   : > { %1639 = vst.msk [vmem:[#allocation3 + $0x10] sm:$0xff] %vm1636_vm10, %v1545_v19  ;;  %1391 = vrot.lane.b32.xlu1 %v1305_v60, %s2665_s3 }
 0x2ab   : > { %1759 = vrot.lane.b32.xlu0 %v1682_v30, %s2667_s5  ;;  %v1752_v22 = vpop.permute.xlu1 %1751 }
 0x2ac   : > { %1839 = vst.msk [vmem:[#allocation3 + $0x48] sm:$0xff] %vm1829_vm11, %v1752_v22 }
 0x2ad   : > { %v1400_v27 = vpop.permute.xlu0 %1399  ;;  %v1863_v29 = vld [vmem:[#allocation3 + $0x8] sm:$0xff] }
 0x2ae   : > { %1743 = vrot.lane.b32.xlu2 %v1674_v43, %s2667_s5  ;;  %1470 = vst.msk [vmem:[#allocation3 + $0xd0] sm:$0xff] %vm1443_vm8, %v1400_v27  ;;  %2492 = vmatmul.msk.f32.gmra.mxu0 %vm1899_vm12, %v1863_v29 }
 0x2af   : > { %1663 = vst.msk [vmem:[#allocation3 + $0xd0] sm:$0xff] %vm1636_vm10, %v1593_v17  ;;  %v2668_v17 = vmov -inf  }
 0x2b0   : > { %v1738_v34 = vpop.permute.xlu2 %1737  ;;  %2129 = vst [vmem:[#allocation4 + $0x138] sm:$0x1] %v2668_v17 }
 0x2b1   : > { %1832 = vst.msk [vmem:[#allocation3 + $0x10] sm:$0xff] %vm1829_vm11, %v1738_v34  ;;  %1584 = vrot.lane.b32.xlu1 %v1498_v36, %s2666_s4 }
 0x2b2   : > { %2113 = vst [vmem:[#allocation4] sm:$0xff] %v2668_v17 }
 0x2b3   : > { %1777 = vrot.lane.b32.xlu0 %v1691_v35, %s2667_s5  ;;  %v1770_v42 = vpop.permute.xlu1 %1769  ;;  %v1871_v40 = vld [vmem:[#allocation3 + $0x48] sm:$0xff]  ;;  %2115 = vst [vmem:[#allocation4 + $0x10] sm:$0x3] %v2668_v17 }
 0x2b4   : > { %1848 = vst.msk [vmem:[#allocation3 + $0x90] sm:$0xff] %vm1829_vm11, %v1770_v42  ;;  %2500 = vmatmul.msk.f32.gmra.mxu1 %vm1899_vm12, %v1871_v40 }
 0x2b5   : > { %v1786_v48 = vpop.permute.xlu0 %1785  ;;  %2117 = vst [vmem:[#allocation4 + $0x18] sm:$0x1] %v2668_v17 }
 0x2b6   : > { %1856 = vst.msk [vmem:[#allocation3 + $0xd0] sm:$0xff] %vm1829_vm11, %v1786_v48  ;;  %1407 = vrot.lane.b32.xlu2 %v1313_v41, %s2665_s3 }
 0x2b7   : > { %2118 = vst [vmem:[#allocation4 + $0x30] sm:$0x1] %v2668_v17 }
 0x2b8   : > { %v1402_v24 = vpop.permute.xlu2 %1401  ;;  %v1864_v47 = vld [vmem:[#allocation3 + $0x10] sm:$0xff]  ;;  %2119 = vst [vmem:[#allocation4 + $0x48] sm:$0x1] %v2668_v17 }
 0x2b9   : > { %1471 = vst.msk [vmem:[#allocation3 + $0xd8] sm:$0xff] %vm1443_vm8, %v1402_v24  ;;  %2493 = vmatmul.msk.f32.gmra.mxu0 %vm1899_vm12, %v1864_v47  ;;  %1600 = vrot.lane.b32.xlu1 %v1506_v46, %s2666_s4 }
 0x2ba   : > { %2120 = vst [vmem:[#allocation4 + $0x60] sm:$0x1] %v2668_v17 }
 0x2bb   : > { %1375 = vrot.lane.b32.xlu0 %v1297_v52, %s2665_s3  ;;  %v1368_v50 = vpop.permute.xlu1 %1367  ;;  %v1880_v51 = vld [vmem:[#allocation3 + $0x90] sm:$0xff]  ;;  %2121 = vst [vmem:[#allocation4 + $0x78] sm:$0x1] %v2668_v17 }
 0x2bc   : > { %1454 = vst.msk [vmem:[#allocation3 + $0x50] sm:$0xff] %vm1443_vm8, %v1368_v50  ;;  %2509 = vmatmul.msk.f32.gmra.mxu2 %vm1899_vm12, %v1880_v51 }
 0x2bd   : > { %v1561_v53 = vpop.permute.xlu0 %1560  ;;  %v1888_v54 = vld [vmem:[#allocation3 + $0xd0] sm:$0xff]  ;;  %2122 = vst [vmem:[#allocation4 + $0x90] sm:$0x1] %v2668_v17 }
 0x2be   : > { %1647 = vst.msk [vmem:[#allocation3 + $0x50] sm:$0xff] %vm1636_vm10, %v1561_v53  ;;  %2517 = vmatmul.msk.f32.gmra.mxu3 %vm1899_vm12, %v1888_v54  ;;  %1793 = vrot.lane.b32.xlu2 %v1699_v55, %s2667_s5 }
 0x2bf   : > { %2123 = vst [vmem:[#allocation4 + $0xa8] sm:$0x1] %v2668_v17 }
 0x2c0   : > { %v1788_v56 = vpop.permute.xlu2 %1787  ;;  %2124 = vst [vmem:[#allocation4 + $0xc0] sm:$0x1] %v2668_v17 }
 0x2c1   : > { %1552 = vrot.lane.b32.xlu1 %v1482_v59, %s2666_s4  ;;  %2125 = vst [vmem:[#allocation4 + $0xd8] sm:$0x1] %v2668_v17 }
 0x2c2   : > { %2126 = vst [vmem:[#allocation4 + $0xf0] sm:$0x1] %v2668_v17 }
 0x2c3   : > { %1393 = vrot.lane.b32.xlu0 %v1306_v32, %s2665_s3  ;;  %v1386_v4 = vpop.permute.xlu1 %1385  ;;  %2127 = vst [vmem:[#allocation4 + $0x108] sm:$0x1] %v2668_v17 }
 0x2c4   : > { %1463 = vst.msk [vmem:[#allocation3 + $0x98] sm:$0xff] %vm1443_vm8, %v1386_v4 }
 0x2c5   : > { %v1754_v63 = vpop.permute.xlu0 %1753  ;;  %2128 = vst [vmem:[#allocation4 + $0x120] sm:$0x1] %v2668_v17 }
 0x2c6   : > { %1840 = vst.msk [vmem:[#allocation3 + $0x50] sm:$0xff] %vm1829_vm11, %v1754_v63  ;;  %1568 = vrot.lane.b32.xlu2 %v1490_v57, %s2666_s4 }
 0x2c7   : > { %2130 = vst [vmem:[#allocation4 + $0x150] sm:$0x1] %v2668_v17 }
 0x2c8   : > { %v1563_v11 = vpop.permute.xlu2 %1562  ;;  %2131 = vst [vmem:[#allocation4 + $0x168] sm:$0x1] %v2668_v17 }
 0x2c9   : > { %1745 = vrot.lane.b32.xlu1 %v1675_v8, %s2667_s5  ;;  %2132 = vst [vmem:[#allocation4 + $0x180] sm:$0x1] %v2668_v17 }
 0x2ca   : > { %2139 = vst [vmem:[#allocation4 + $0x29] sm:$0x1] %v2668_v17 }
 0x2cb   : > { %1586 = vrot.lane.b32.xlu0 %v1499_v9, %s2666_s4  ;;  %v1579_v28 = vpop.permute.xlu1 %1578  ;;  %2140 = vst [vmem:[#allocation4 + $0x41] sm:$0x1] %v2668_v17 }
 0x2cc   : > { %1656 = vst.msk [vmem:[#allocation3 + $0x98] sm:$0xff] %vm1636_vm10, %v1579_v28 }
 0x2cd   : > { %v1772_v6 = vpop.permute.xlu0 %1771  ;;  %v1872_v18 = vld [vmem:[#allocation3 + $0x50] sm:$0xff]  ;;  %2141 = vst [vmem:[#allocation4 + $0x59] sm:$0x1] %v2668_v17 }
 0x2ce   : > { %1849 = vst.msk [vmem:[#allocation3 + $0x98] sm:$0xff] %vm1829_vm11, %v1772_v6  ;;  %2501 = vmatmul.msk.f32.gmra.mxu1 %vm1899_vm12, %v1872_v18  ;;  %1761 = vrot.lane.b32.xlu2 %v1683_v31, %s2667_s5 }
 0x2cf   : > { %2142 = vst [vmem:[#allocation4 + $0x71] sm:$0x1] %v2668_v17 }
 0x2d0   : > { %v1756_v62 = vpop.permute.xlu2 %1755  ;;  %2143 = vst [vmem:[#allocation4 + $0x89] sm:$0x1] %v2668_v17 }
 0x2d1   : > { %1409 = vrot.lane.b32.xlu1 %v1314_v37, %s2665_s3  ;;  %2144 = vst [vmem:[#allocation4 + $0xa1] sm:$0x1] %v2668_v17 }
 0x2d2   : > { %2145 = vst [vmem:[#allocation4 + $0xb9] sm:$0x1] %v2668_v17 }
 0x2d3   : > { %1602 = vrot.lane.b32.xlu0 %v1507_v49, %s2666_s4  ;;  %v1595_v45 = vpop.permute.xlu1 %1594  ;;  %2146 = vst [vmem:[#allocation4 + $0xd1] sm:$0x1] %v2668_v17 }
 0x2d4   : > { %1664 = vst.msk [vmem:[#allocation3 + $0xd8] sm:$0xff] %vm1636_vm10, %v1595_v45 }
 0x2d5   : > { %1857 = vst.msk [vmem:[#allocation3 + $0xd8] sm:$0xff] %vm1829_vm11, %v1788_v56  ;;  %v1370_v20 = vpop.permute.xlu0 %1369  ;;  %v1881_v13 = vld [vmem:[#allocation3 + $0x98] sm:$0xff] }
 0x2d6   : > { %1455 = vst.msk [vmem:[#allocation3 + $0x58] sm:$0xff] %vm1443_vm8, %v1370_v20  ;;  %2510 = vmatmul.msk.f32.gmra.mxu2 %vm1899_vm12, %v1881_v13  ;;  %1779 = vrot.lane.b32.xlu2 %v1692_v15, %s2667_s5 }
 0x2d7   : > { %1648 = vst.msk [vmem:[#allocation3 + $0x58] sm:$0xff] %vm1636_vm10, %v1563_v11 }
 0x2d8   : > { %1841 = vst.msk [vmem:[#allocation3 + $0x58] sm:$0xff] %vm1829_vm11, %v1756_v62  ;;  %v1774_v33 = vpop.permute.xlu2 %1773 }
 0x2d9   : > { %1795 = vrot.lane.b32.xlu1 %v1700_v44, %s2667_s5  ;;  %2147 = vst [vmem:[#allocation4 + $0xe9] sm:$0x1] %v2668_v17 }
 0x2da   : > { %2148 = vst [vmem:[#allocation4 + $0x101] sm:$0x1] %v2668_v17 }
 0x2db   : > { %1554 = vrot.lane.b32.xlu0 %v1483_v12, %s2666_s4  ;;  %v1547_v0 = vpop.permute.xlu1 %1546  ;;  %2149 = vst [vmem:[#allocation4 + $0x119] sm:$0x1] %v2668_v17 }
 0x2dc   : > { %1640 = vst.msk [vmem:[#allocation3 + $0x18] sm:$0xff] %vm1636_vm10, %v1547_v0  ;;  %v1889_v61 = vld [vmem:[#allocation3 + $0xd8] sm:$0xff] }
 0x2dd   : > { %v1388_v3 = vpop.permute.xlu0 %1387  ;;  %2518 = vmatmul.msk.f32.gmra.mxu3 %vm1899_vm12, %v1889_v61  ;;  %2150 = vst [vmem:[#allocation4 + $0x131] sm:$0x1] %v2668_v17 }
 0x2de   : > { %1464 = vst.msk [vmem:[#allocation3 + $0xa0] sm:$0xff] %vm1443_vm8, %v1388_v3  ;;  %1377 = vrot.lane.b32.xlu2 %v1298_v2, %s2665_s3 }
 0x2df   : > { %v1873_v10 = vld [vmem:[#allocation3 + $0x58] sm:$0xff]  ;;  %2151 = vst [vmem:[#allocation4 + $0x149] sm:$0x1] %v2668_v17 }
 0x2e0   : > { %v1372_v16 = vpop.permute.xlu2 %1371  ;;  %2502 = vmatmul.msk.f32.gmra.mxu1 %vm1899_vm12, %v1873_v10  ;;  %2152 = vst [vmem:[#allocation4 + $0x161] sm:$0x1] %v2668_v17 }
 0x2e1   : > { %1456 = vst.msk [vmem:[#allocation3 + $0x60] sm:$0xff] %vm1443_vm8, %v1372_v16  ;;  %1570 = vrot.lane.b32.xlu1 %v1491_v1, %s2666_s4  ;;  %s2417_s4 = scalar_lea.hbm %s3924_s2, %s2529_s29 }
 0x2e2   : > { %2153 = vst [vmem:[#allocation4 + $0x179] sm:$0x1] %v2668_v17 }
 0x2e3   : > { %1763 = vrot.lane.b32.xlu0 %v1684_v5, %s2667_s5  ;;  %v1740_v7 = vpop.permute.xlu1 %1739  ;;  %2154 = vst [vmem:[#allocation4 + $0x191] sm:$0x1] %v2668_v17 }
 0x2e4   : > { %1833 = vst.msk [vmem:[#allocation3 + $0x18] sm:$0xff] %vm1829_vm11, %v1740_v7 }
 0x2e5   : > { %v1581_v25 = vpop.permute.xlu0 %1580  ;;  %2116 = vst [vmem:[#allocation4] sm:$0x1] %v2668_v17 }
 0x2e6   : > { %1657 = vst.msk [vmem:[#allocation3 + $0xa0] sm:$0xff] %vm1636_vm10, %v1581_v25  ;;  %1747 = vrot.lane.b32.xlu2 %v1676_v58, %s2667_s5  ;;  %s2420_s5 = sshll.u32 %s2417_s4, 4  ;;  %s2421_s5 = int_to_ptr.hbm [resolvable:$true] %s2420_s5 }
 0x2e7   : > { %1850 = vst.msk [vmem:[#allocation3 + $0xa0] sm:$0xff] %vm1829_vm11, %v1774_v33  ;;  %s2609_s7 = sshra.s32 %s2421_s5, 4  ;;  %s2610_s7 = int_to_ptr.hbm [resolvable:$true] %s2609_s7 }
 0x2e8   : > { %v1390_v26 = vpop.permute.xlu2 %1389  ;;  %2138 = vst [vmem:[#allocation4 + $0x11] sm:$0x1] %v2668_v17  ;;  %s2611_s8 = scalar_lea.hbm %s2610_s7, 64  ;;  %p2616_p0 = scmp.lt.s32.totalorder %s2610_s7, %s3924_s2 }
 0x2e9   : > { %1465 = vst.msk [vmem:[#allocation3 + $0xa8] sm:$0xff] %vm1443_vm8, %v1390_v26  ;;  %p2612_p11 = scmp.ne.s32.totalorder %s2610_s7, %s2611_s8  ;;  %p2617_p1 = scmp.lt.s32.totalorder %s2615_s17, %s2611_s8 }
 0x2eb   : > { %v1404_v23 = vpop.permute.xlu1 %1403  ;;  %v1865_v38 = vld [vmem:[#allocation3 + $0x18] sm:$0xff]  ;;  %p2613_p12 = pnand %p2612_p11, %p2723_p5  ;;  %p2618_p2 = por %p2617_p1, %p2616_p0 }
 0x2ec   : > { %1472 = vst.msk [vmem:[#allocation3 + $0xe0] sm:$0xff] %vm1443_vm8, %v1404_v23  ;;  %2494 = vmatmul.msk.f32.gmra.mxu0 %vm1899_vm12, %v1865_v38  ;;  %v2189_v0 = vld [vmem:[#allocation4] sm:$0xff] }
 0x2ed   : > { %v1597_v39 = vpop.permute.xlu0 %1596  ;;  %p2614_p13 = pneg %p2613_p12 }
 0x2ee   : > { %1665 = vst.msk [vmem:[#allocation3 + $0xe0] sm:$0xff] %vm1636_vm10, %v1597_v39  ;;  %v1882_v14 = vld [vmem:[#allocation3 + $0xa0] sm:$0xff] }
 0x2ef   : > { %2511 = vmatmul.msk.f32.gmra.mxu2 %vm1899_vm12, %v1882_v14  ;;  %p2619_p3 = pnand %p2618_p2, %p2614_p13 }
 0x2f0   : > { %v1583_v21 = vpop.permute.xlu2 %1582 }
 0x2f1   : > { %1658 = vst.msk [vmem:[#allocation3 + $0xa8] sm:$0xff] %vm1636_vm10, %v1583_v21 }
 0x2f3   : > { %v1790_v60 = vpop.permute.xlu1 %1789 }
 0x2f4   : > { %1858 = vst.msk [vmem:[#allocation3 + $0xe0] sm:$0xff] %vm1829_vm11, %v1790_v60 }
 0x2f5   : > { %v1549_v19 = vpop.permute.xlu0 %1548 }
 0x2f6   : > { %1641 = vst.msk [vmem:[#allocation3 + $0x20] sm:$0xff] %vm1636_vm10, %v1549_v19 }
 0x2f8   : > { %v1599_v30 = vpop.permute.xlu2 %1598 }
 0x2fb   : > { %v1565_v43 = vpop.permute.xlu1 %1564  ;;  %v1890_v22 = vld [vmem:[#allocation3 + $0xe0] sm:$0xff] }
 0x2fc   : > { %1649 = vst.msk [vmem:[#allocation3 + $0x60] sm:$0xff] %vm1636_vm10, %v1565_v43  ;;  %2519 = vmatmul.msk.f32.gmra.mxu3 %vm1899_vm12, %v1890_v22 }
 0x2fd   : > { %v1742_v27 = vpop.permute.xlu0 %1741 }
 0x2fe   : > { %1834 = vst.msk [vmem:[#allocation3 + $0x20] sm:$0xff] %vm1829_vm11, %v1742_v27  ;;  %v2041_v32 = vpop.f32.mrf.mxu1 }
 0x2ff   : > { %2165 = vst [vmem:[#allocation4 + $0x79] sm:$0xff] %v2041_v32 }
 0x300   : > { %v1551_v29 = vpop.permute.xlu2 %1550 }
 0x301   : > { %1642 = vst.msk [vmem:[#allocation3 + $0x28] sm:$0xff] %vm1636_vm10, %v1551_v29 }
 0x303   : > { %v1758_v36 = vpop.permute.xlu1 %1757 }
 0x304   : > { %1842 = vst.msk [vmem:[#allocation3 + $0x60] sm:$0xff] %vm1829_vm11, %v1758_v36 }
 0x305   : > { %v1406_v34 = vpop.permute.xlu0 %1405  ;;  %v1866_v35 = vld [vmem:[#allocation3 + $0x20] sm:$0xff] }
 0x306   : > { %1473 = vst.msk [vmem:[#allocation3 + $0xe8] sm:$0xff] %vm1443_vm8, %v1406_v34  ;;  %2495 = vmatmul.msk.f32.gmra.mxu0 %vm1899_vm12, %v1866_v35  ;;  %v2191_v34 = vld [vmem:[#allocation4 + $0x10] sm:$0x3] }
 0x307   : > { %1666 = vst.msk [vmem:[#allocation3 + $0xe8] sm:$0xff] %vm1636_vm10, %v1599_v30  ;;  %v2065_v42 = vpop.f32.mrf.mxu2 }
 0x308   : > { %v1744_v40 = vpop.permute.xlu2 %1743  ;;  %2173 = vst [vmem:[#allocation4 + $0xd9] sm:$0xff] %v2065_v42 }
 0x309   : > { %1835 = vst.msk [vmem:[#allocation3 + $0x28] sm:$0xff] %vm1829_vm11, %v1744_v40  ;;  %v2089_v41 = vpop.f32.mrf.mxu3 }
 0x30a   : > { %2181 = vst [vmem:[#allocation4 + $0x139] sm:$0xff] %v2089_v41 }
 0x30b   : > { %v1776_v48 = vpop.permute.xlu1 %1775  ;;  %v1874_v46 = vld [vmem:[#allocation3 + $0x60] sm:$0xff] }
 0x30c   : > { %2503 = vmatmul.msk.f32.gmra.mxu1 %vm1899_vm12, %v1874_v46  ;;  %1851 = vst.msk [vmem:[#allocation3 + $0xa8] sm:$0xff] %vm1829_vm11, %v1776_v48 }
 0x30d   : > { %v1792_v24 = vpop.permute.xlu0 %1791 }
 0x30e   : > { %1859 = vst.msk [vmem:[#allocation3 + $0xe8] sm:$0xff] %vm1829_vm11, %v1792_v24 }
 0x310   : > { %v1867_v47 = vld [vmem:[#allocation3 + $0x28] sm:$0xff]  ;;  %v1408_v52 = vpop.permute.xlu2 %1407 }
 0x311   : > { %2496 = vmatmul.msk.f32.gmra.mxu0 %vm1899_vm12, %v1867_v47  ;;  %v2017_v59 = vpop.f32.mrf.mxu0  ;;  %1474 = vst.msk [vmem:[#allocation3 + $0xf0] sm:$0xff] %vm1443_vm8, %v1408_v52 }
 0x312   : > { %2157 = vst [vmem:[#allocation4 + $0x19] sm:$0xff] %v2017_v59 }
 0x313   : > { %v1374_v50 = vpop.permute.xlu1 %1373  ;;  %v1883_v57 = vld [vmem:[#allocation3 + $0xa8] sm:$0xff] }
 0x314   : > { %1457 = vst.msk [vmem:[#allocation3 + $0x68] sm:$0xff] %vm1443_vm8, %v1374_v50  ;;  %2512 = vmatmul.msk.f32.gmra.mxu2 %vm1899_vm12, %v1883_v57 }
 0x315   : > { %v1567_v51 = vpop.permute.xlu0 %1566  ;;  %v1891_v9 = vld [vmem:[#allocation3 + $0xe8] sm:$0xff] }
 0x316   : > { %1650 = vst.msk [vmem:[#allocation3 + $0x68] sm:$0xff] %vm1636_vm10, %v1567_v51  ;;  %2520 = vmatmul.msk.f32.gmra.mxu3 %vm1899_vm12, %v1891_v9 }
 0x318   : > { %v1794_v55 = vpop.permute.xlu2 %1793 }
 0x319   : > { %v2213_v2 = vld [vmem:[#allocation4 + $0x18] sm:$0xff] }
 0x31a   : > { %v2068_v63 = vpop.f32.mrf.mxu2  ;;  %v2237_v1 = vmax.f32 %v2189_v0, %v2213_v2 }
 0x31b   : > { %v1392_v53 = vpop.permute.xlu1 %1391  ;;  %2174 = vst [vmem:[#allocation4 + $0xe1] sm:$0xff] %v2068_v63 }
 0x31c   : > { %1466 = vst.msk [vmem:[#allocation3 + $0xb0] sm:$0xff] %vm1443_vm8, %v1392_v53 }
 0x31d   : > { %v1760_v54 = vpop.permute.xlu0 %1759 }
 0x31e   : > { %1843 = vst.msk [vmem:[#allocation3 + $0x68] sm:$0xff] %vm1829_vm11, %v1760_v54 }
 0x320   : > { %v1569_v56 = vpop.permute.xlu2 %1568 }
 0x323   : > { %v1585_v4 = vpop.permute.xlu1 %1584 }
 0x324   : > { %1659 = vst.msk [vmem:[#allocation3 + $0xb0] sm:$0xff] %vm1636_vm10, %v1585_v4 }
 0x325   : > { %v1778_v8 = vpop.permute.xlu0 %1777  ;;  %v1875_v62 = vld [vmem:[#allocation3 + $0x68] sm:$0xff] }
 0x326   : > { %1852 = vst.msk [vmem:[#allocation3 + $0xb0] sm:$0xff] %vm1829_vm11, %v1778_v8  ;;  %2504 = vmatmul.msk.f32.gmra.mxu1 %vm1899_vm12, %v1875_v62  ;;  %v2231_v62 = vld [vmem:[#allocation4 + $0x138] sm:$0xff] }
 0x327   : > { %v2092_v28 = vpop.f32.mrf.mxu3 }
 0x328   : > { %v1762_v11 = vpop.permute.xlu2 %1761  ;;  %2182 = vst [vmem:[#allocation4 + $0x141] sm:$0xff] %v2092_v28 }
 0x32b   : > { %v2020_v31 = vpop.f32.mrf.mxu0  ;;  %v1601_v6 = vpop.permute.xlu1 %1600 }
 0x32c   : > { %2158 = vst [vmem:[#allocation4 + $0x21] sm:$0xff] %v2020_v31 }
 0x32d   : > { %v1376_v18 = vpop.permute.xlu0 %1375  ;;  %1667 = vst.msk [vmem:[#allocation3 + $0xf0] sm:$0xff] %vm1636_vm10, %v1601_v6  ;;  %v1884_v45 = vld [vmem:[#allocation3 + $0xb0] sm:$0xff] }
 0x32e   : > { %1860 = vst.msk [vmem:[#allocation3 + $0xf0] sm:$0xff] %vm1829_vm11, %v1794_v55  ;;  %2513 = vmatmul.msk.f32.gmra.mxu2 %vm1899_vm12, %v1884_v45 }
 0x32f   : > { %1458 = vst.msk [vmem:[#allocation3 + $0x70] sm:$0xff] %vm1443_vm8, %v1376_v18 }
 0x330   : > { %v1780_v37 = vpop.permute.xlu2 %1779  ;;  %1651 = vst.msk [vmem:[#allocation3 + $0x70] sm:$0xff] %vm1636_vm10, %v1569_v56 }
 0x331   : > { %v2044_v49 = vpop.f32.mrf.mxu1  ;;  %1844 = vst.msk [vmem:[#allocation3 + $0x70] sm:$0xff] %vm1829_vm11, %v1762_v11 }
 0x332   : > { %2166 = vst [vmem:[#allocation4 + $0x81] sm:$0xff] %v2044_v49 }
 0x333   : > { %v1553_v15 = vpop.permute.xlu1 %1552  ;;  %v2214_v35 = vld [vmem:[#allocation4 + $0x20] sm:$0xff]  ;;  %v2215_v42 = vld [vmem:[#allocation4 + $0x28] sm:$0x3] }
 0x334   : > { %1643 = vst.msk [vmem:[#allocation3 + $0x30] sm:$0xff] %vm1636_vm10, %v1553_v15  ;;  %v2239_v40 = vmax.f32 %v2191_v34, %v2215_v42 }
 0x335   : > { %v1394_v20 = vpop.permute.xlu0 %1393  ;;  %v1892_v44 = vld [vmem:[#allocation3 + $0xf0] sm:$0xff] }
 0x336   : > { %v2023_v13 = vpop.f32.mrf.mxu0  ;;  %1467 = vst.msk [vmem:[#allocation3 + $0xb8] sm:$0xff] %vm1443_vm8, %v1394_v20  ;;  %2521 = vmatmul.msk.f32.gmra.mxu3 %vm1899_vm12, %v1892_v44 }
 0x337   : > { %2159 = vst [vmem:[#allocation4 + $0x31] sm:$0xff] %v2023_v13 }
 0x338   : > { %v1378_v33 = vpop.permute.xlu2 %1377  ;;  %v1876_v12 = vld [vmem:[#allocation3 + $0x70] sm:$0xff] }
 0x339   : > { %1459 = vst.msk [vmem:[#allocation3 + $0x78] sm:$0xff] %vm1443_vm8, %v1378_v33  ;;  %2505 = vmatmul.msk.f32.gmra.mxu1 %vm1899_vm12, %v1876_v12 }
 0x33b   : > { %v1746_v61 = vpop.permute.xlu1 %1745 }
 0x33c   : > { %1836 = vst.msk [vmem:[#allocation3 + $0x30] sm:$0xff] %vm1829_vm11, %v1746_v61 }
 0x33d   : > { %v1587_v3 = vpop.permute.xlu0 %1586 }
 0x33e   : > { %1660 = vst.msk [vmem:[#allocation3 + $0xb8] sm:$0xff] %vm1636_vm10, %v1587_v3  ;;  %v3849_v10 = vld [vmem:[#allocation4 + $0x30] sm:$0xff] }
 0x33f   : > { %1853 = vst.msk [vmem:[#allocation3 + $0xb8] sm:$0xff] %vm1829_vm11, %v1780_v37  ;;  %v2071_v16 = vpop.f32.mrf.mxu2  ;;  %v2286_v5 = vmax.f32 %v2237_v1, %v3849_v10 }
 0x340   : > { %2175 = vst [vmem:[#allocation4 + $0xf1] sm:$0xff] %v2071_v16  ;;  %v1748_v39 = vpop.permute.xlu2 %1747  ;;  %v2219_v16 = vld [vmem:[#allocation4 + $0x78] sm:$0xff] }
 0x341   : > { %v2095_v7 = vpop.f32.mrf.mxu3  ;;  %2310 = vst [vmem:[#allocation4] sm:$0xff] %v2286_v5  ;;  %v2225_v5 = vld [vmem:[#allocation4 + $0xd8] sm:$0xff] }
 0x342   : > { %2183 = vst [vmem:[#allocation4 + $0x151] sm:$0xff] %v2095_v7 }
 0x343   : > { %v1410_v58 = vpop.permute.xlu1 %1409  ;;  %v1868_v25 = vld [vmem:[#allocation3 + $0x30] sm:$0xff] }
 0x344   : > { %1475 = vst.msk [vmem:[#allocation3 + $0xf8] sm:$0xff] %vm1443_vm8, %v1410_v58  ;;  %2497 = vmatmul.msk.f32.gmra.mxu0 %vm1899_vm12, %v1868_v25 }
 0x345   : > { %v1603_v26 = vpop.permute.xlu0 %1602 }
 0x346   : > { %1668 = vst.msk [vmem:[#allocation3 + $0xf8] sm:$0xff] %vm1636_vm10, %v1603_v26  ;;  %v1885_v17 = vld [vmem:[#allocation3 + $0xb8] sm:$0xff] }
 0x347   : > { %2514 = vmatmul.msk.f32.gmra.mxu2 %vm1899_vm12, %v1885_v17  ;;  %v2204_v6 = vld [vmem:[#allocation4 + $0xf0] sm:$0xff] }
 0x349   : > { %v2210_v33 = vld [vmem:[#allocation4 + $0x150] sm:$0xff] }
 0x34b   : > { %v2047_v23 = vpop.f32.mrf.mxu1  ;;  %v1796_v38 = vpop.permute.xlu1 %1795 }
 0x34c   : > { %2167 = vst [vmem:[#allocation4 + $0x91] sm:$0xff] %v2047_v23 }
 0x34d   : > { %1861 = vst.msk [vmem:[#allocation3 + $0xf8] sm:$0xff] %vm1829_vm11, %v1796_v38  ;;  %v1555_v14 = vpop.permute.xlu0 %1554 }
 0x34e   : > { %1644 = vst.msk [vmem:[#allocation3 + $0x38] sm:$0xff] %vm1636_vm10, %v1555_v14 }
 0x34f   : > { %1837 = vst.msk [vmem:[#allocation3 + $0x38] sm:$0xff] %vm1829_vm11, %v1748_v39 }
 0x353   : > { %v1571_v21 = vpop.permute.xlu1 %1570  ;;  %v2198_v18 = vld [vmem:[#allocation4 + $0x90] sm:$0xff] }
 0x354   : > { %v1893_v60 = vld [vmem:[#allocation3 + $0xf8] sm:$0xff]  ;;  %1652 = vst.msk [vmem:[#allocation3 + $0x78] sm:$0xff] %vm1636_vm10, %v1571_v21 }
 0x355   : > { %2522 = vmatmul.msk.f32.gmra.mxu3 %vm1899_vm12, %v1893_v60  ;;  %v1764_v19 = vpop.permute.xlu0 %1763 }
 0x356   : > { %1845 = vst.msk [vmem:[#allocation3 + $0x78] sm:$0xff] %vm1829_vm11, %v1764_v19  ;;  %v1869_v30 = vld [vmem:[#allocation3 + $0x38] sm:$0xff] }
 0x357   : > { %2498 = vmatmul.msk.f32.gmra.mxu0 %vm1899_vm12, %v1869_v30 }
 0x359   : > { %v2074_v43 = vpop.f32.mrf.mxu2 }
 0x35a   : > { %2176 = vst [vmem:[#allocation4 + $0xf9] sm:$0xff] %v2074_v43  ;;  %v2232_v43 = vld [vmem:[#allocation4 + $0x140] sm:$0xff] }
 0x35d   : > { %v2050_v22 = vpop.f32.mrf.mxu1  ;;  %v1877_v27 = vld [vmem:[#allocation3 + $0x78] sm:$0xff] }
 0x35e   : > { %2168 = vst [vmem:[#allocation4 + $0x99] sm:$0xff] %v2050_v22  ;;  %2506 = vmatmul.msk.f32.gmra.mxu1 %vm1899_vm12, %v1877_v27  ;;  %v2233_v22 = vld [vmem:[#allocation4 + $0x148] sm:$0x3] }
 0x360   : > { %v2098_v29 = vpop.f32.mrf.mxu3 }
 0x361   : > { %2184 = vst [vmem:[#allocation4 + $0x159] sm:$0xff] %v2098_v29  ;;  %v3875_v19 = vld [vmem:[#allocation4 + $0xf8] sm:$0xff]  ;;  %v2206_v30 = vld [vmem:[#allocation4 + $0x100] sm:$0x3] }
 0x369   : > { %v2026_v36 = vpop.f32.mrf.mxu0 }
 0x36a   : > { %2160 = vst [vmem:[#allocation4 + $0x39] sm:$0xff] %v2026_v36 }
 0x371   : > { %v3865_v41 = vld [vmem:[#allocation4 + $0x38] sm:$0xff]  ;;  %v2264_v48 = vld [vmem:[#allocation4 + $0x40] sm:$0x3] }
 0x372   : > { %v2287_v46 = vmax.f32 %v2214_v35, %v3865_v41  ;;  %v2288_v24 = vmax.f32 %v2239_v40, %v2264_v48  ;;  %v2077_v47 = vpop.f32.mrf.mxu2 }
 0x373   : > { %2177 = vst [vmem:[#allocation4 + $0x109] sm:$0xff] %v2077_v47  ;;  %v2282_v47 = vld [vmem:[#allocation4 + $0x160] sm:$0x3] }
 0x374   : > { %2311 = vst [vmem:[#allocation4 + $0x8] sm:$0xff] %v2287_v46  ;;  %v2220_v46 = vld [vmem:[#allocation4 + $0x80] sm:$0xff] }
 0x375   : > { %2312 = vst [vmem:[#allocation4 + $0x10] sm:$0x3] %v2288_v24  ;;  %v2211_v24 = vld [vmem:[#allocation4 + $0x158] sm:$0xff] }
 0x37a   : > { %v2228_v9 = vld [vmem:[#allocation4 + $0x108] sm:$0xff] }
 0x37b   : > { %v2334_v52 = vld [vmem:[#allocation4] ss:$2 sm:$0xff]  ;;  %v2350_v50 = vld [vmem:[#allocation4 + $0x1] ss:$2 sm:$0xff]  ;;  %v2252_v37 = vmax.f32 %v2204_v6, %v2228_v9 }
 0x37c   : > { %v2365_v51 = vmax.f32 %v2334_v52, %v2350_v50  ;;  %v2374_v55 = vld [vmem:[#allocation4 + $0x2] ss:$2 sm:$0xff] }
 0x37d   : > { %v2221_v52 = vld [vmem:[#allocation4 + $0x88] sm:$0x3] }
 0x37e   : > { %v2389_v53 = vmax.f32 %v2365_v51, %v2374_v55  ;;  %v2199_v55 = vld [vmem:[#allocation4 + $0x98] sm:$0xff] }
 0x37f   : > { %v2101_v54 = vpop.f32.mrf.mxu3 }
 0x380   : > { %2185 = vst [vmem:[#allocation4 + $0x169] sm:$0xff] %v2101_v54  ;;  %v2200_v54 = vld [vmem:[#allocation4 + $0xa0] sm:$0x3] }
 0x381   : > { %2397 = vst [vmem:[%s3871_s28] sm:$0xff] %v2389_v53 }
 0x383   : > { %v2029_v59 = vpop.f32.mrf.mxu0 }
 0x384   : > { %2161 = vst [vmem:[#allocation4 + $0x49] sm:$0xff] %v2029_v59  ;;  %v2270_v59 = vld [vmem:[#allocation4 + $0xa0] sm:$0x3] }
 0x387   : > { %v2234_v49 = vld [vmem:[#allocation4 + $0x168] sm:$0xff] }
 0x388   : > { %v2258_v2 = vmax.f32 %v2210_v33, %v2234_v49 }
 0x389   : > { %v2053_v56 = vpop.f32.mrf.mxu1 }
 0x38a   : > { %2169 = vst [vmem:[#allocation4 + $0xa9] sm:$0xff] %v2053_v56 }
 0x38b   : > { %v2216_v3 = vld [vmem:[#allocation4 + $0x48] sm:$0xff] }
 0x38c   : > { %v2240_v25 = vmax.f32 %v3849_v10, %v2216_v3 }
 0x38e   : > { %v2032_v32 = vpop.f32.mrf.mxu0 }
 0x38f   : > { %2162 = vst [vmem:[#allocation4 + $0x51] sm:$0xff] %v2032_v32 }
 0x391   : > { %v2222_v31 = vld [vmem:[#allocation4 + $0xa8] sm:$0xff] }
 0x392   : > { %v2246_v15 = vmax.f32 %v2198_v18, %v2222_v31 }
 0x396   : > { %v2218_v32 = vld [vmem:[#allocation4 + $0x58] sm:$0x3] }
 0x397   : > { %v2080_v4 = vpop.f32.mrf.mxu2 }
 0x398   : > { %2178 = vst [vmem:[#allocation4 + $0x111] sm:$0xff] %v2080_v4 }
 0x399   : > { %v2104_v57 = vpop.f32.mrf.mxu3 }
 0x39a   : > { %2186 = vst [vmem:[#allocation4 + $0x171] sm:$0xff] %v2104_v57  ;;  %v2217_v57 = vld [vmem:[#allocation4 + $0x50] sm:$0xff] }
 0x39f   : > { %v2229_v21 = vld [vmem:[#allocation4 + $0x110] sm:$0xff]  ;;  %v2230_v60 = vld [vmem:[#allocation4 + $0x118] sm:$0x3] }
 0x3a0   : > { %v2253_v27 = vmax.f32 %v3875_v19, %v2229_v21  ;;  %v2254_v10 = vmax.f32 %v2206_v30, %v2230_v60 }
 0x3a3   : > { %v2056_v63 = vpop.f32.mrf.mxu1 }
 0x3a4   : > { %2170 = vst [vmem:[#allocation4 + $0xb1] sm:$0xff] %v2056_v63 }
 0x3ab   : > { %v2223_v49 = vld [vmem:[#allocation4 + $0xb0] sm:$0xff] }
 0x3b1   : > { %v2083_v8 = vpop.f32.mrf.mxu2 }
 0x3b2   : > { %2179 = vst [vmem:[#allocation4 + $0x121] sm:$0xff] %v2083_v8 }
 0x3b6   : > { %v2059_v11 = vpop.f32.mrf.mxu1 }
 0x3b7   : > { %2171 = vst [vmem:[#allocation4 + $0xc1] sm:$0xff] %v2059_v11  ;;  %v2235_v11 = vld [vmem:[#allocation4 + $0x170] sm:$0xff] }
 0x3b9   : > { %v2107_v28 = vpop.f32.mrf.mxu3  ;;  %v2207_v45 = vld [vmem:[#allocation4 + $0x120] sm:$0xff] }
 0x3ba   : > { %2187 = vst [vmem:[#allocation4 + $0x181] sm:$0xff] %v2107_v28  ;;  %v2255_v20 = vmax.f32 %v2207_v45, %v2231_v62  ;;  %v2301_v44 = vmax.f32 %v2252_v37, %v2207_v45  ;;  %v2194_v28 = vld [vmem:[#allocation4 + $0x40] sm:$0x3]  ;;  %v2236_v62 = vld [vmem:[#allocation4 + $0x178] sm:$0x3] }
 0x3bb   : > { %v2242_v37 = vmax.f32 %v2194_v28, %v2218_v32 }
 0x3bc   : > { %v2304_v61 = vmax.f32 %v2255_v20, %v2210_v33  ;;  %2325 = vst [vmem:[#allocation4 + $0x78] sm:$0xff] %v2301_v44  ;;  %v2226_v33 = vld [vmem:[#allocation4 + $0xe0] sm:$0xff] }
 0x3be   : > { %v2271_v13 = vld [vmem:[#allocation4 + $0xc0] sm:$0xff]  ;;  %2328 = vst [vmem:[#allocation4 + $0x90] sm:$0xff] %v2304_v61 }
 0x3bf   : > { %v2295_v0 = vmax.f32 %v2246_v15, %v2271_v13  ;;  %v2249_v58 = vmax.f32 %v2271_v13, %v2225_v5  ;;  %v2259_v15 = vmax.f32 %v2211_v24, %v2235_v11  ;;  %v2227_v5 = vld [vmem:[#allocation4 + $0xe8] sm:$0x3] }
 0x3c1   : > { %v2035_v12 = vpop.f32.mrf.mxu0  ;;  %v2283_v1 = vld [vmem:[#allocation4 + $0x180] sm:$0xff]  ;;  %2319 = vst [vmem:[#allocation4 + $0x48] sm:$0xff] %v2295_v0  ;;  %v2298_v26 = vmax.f32 %v2249_v58, %v2204_v6 }
 0x3c2   : > { %2163 = vst [vmem:[#allocation4 + $0x61] sm:$0xff] %v2035_v12  ;;  %v2307_v7 = vmax.f32 %v2258_v2, %v2283_v1  ;;  %v2212_v6 = vld [vmem:[#allocation4 + $0x160] sm:$0x3]  ;;  %v2224_v12 = vld [vmem:[#allocation4 + $0xb8] sm:$0x3] }
 0x3c3   : > { %v2248_v21 = vmax.f32 %v2200_v54, %v2224_v12 }
 0x3c4   : > { %2331 = vst [vmem:[#allocation4 + $0xa8] sm:$0xff] %v2307_v7 }
 0x3c9   : > { %v2195_v17 = vld [vmem:[#allocation4 + $0x60] sm:$0xff] }
 0x3ca   : > { %v2243_v23 = vmax.f32 %v2195_v17, %v2219_v16  ;;  %v2289_v38 = vmax.f32 %v2240_v25, %v2195_v17  ;;  %2322 = vst [vmem:[#allocation4 + $0x60] sm:$0xff] %v2298_v26  ;;  %v2086_v39 = vpop.f32.mrf.mxu2  ;;  %v2247_v25 = vmax.f32 %v2199_v55, %v2223_v49 }
 0x3cb   : > { %2180 = vst [vmem:[#allocation4 + $0x129] sm:$0xff] %v2086_v39 }
 0x3cc   : > { %v2292_v14 = vmax.f32 %v2243_v23, %v2198_v18  ;;  %2313 = vst [vmem:[#allocation4 + $0x18] sm:$0xff] %v2289_v38  ;;  %v2241_v18 = vmax.f32 %v3865_v41, %v2217_v57  ;;  %v2260_v41 = vmax.f32 %v2212_v6, %v2236_v62 }
 0x3ce   : > { %2316 = vst [vmem:[#allocation4 + $0x30] sm:$0xff] %v2292_v14 }
 0x3d2   : > { %v2208_v29 = vld [vmem:[#allocation4 + $0x128] sm:$0xff]  ;;  %v2209_v36 = vld [vmem:[#allocation4 + $0x130] sm:$0x3] }
 0x3d3   : > { %v2279_v34 = vld [vmem:[#allocation4 + $0x130] sm:$0x3]  ;;  %v2256_v35 = vmax.f32 %v2208_v29, %v2232_v43  ;;  %v2257_v42 = vmax.f32 %v2209_v36, %v2233_v22  ;;  %v2302_v40 = vmax.f32 %v2253_v27, %v2208_v29  ;;  %v2276_v29 = vld [vmem:[#allocation4 + $0x100] sm:$0x3] }
 0x3d4   : > { %v2303_v48 = vmax.f32 %v2254_v10, %v2279_v34  ;;  %v2038_v53 = vpop.f32.mrf.mxu0 }
 0x3d5   : > { %v2305_v50 = vmax.f32 %v2256_v35, %v2211_v24  ;;  %v2306_v51 = vmax.f32 %v2257_v42, %v2282_v47  ;;  %2326 = vst [vmem:[#allocation4 + $0x80] sm:$0xff] %v2302_v40 }
 0x3d6   : > { %2327 = vst [vmem:[#allocation4 + $0x88] sm:$0x3] %v2303_v48 }
 0x3d7   : > { %2329 = vst [vmem:[#allocation4 + $0x98] sm:$0xff] %v2305_v50 }
 0x3d8   : > { %2330 = vst [vmem:[#allocation4 + $0xa0] sm:$0x3] %v2306_v51  ;;  %v2110_v56 = vpop.f32.mrf.mxu3 }
 0x3d9   : > { %2164 = vst [vmem:[#allocation4 + $0x69] sm:$0xff] %v2038_v53 }
 0x3da   : > { %2188 = vst [vmem:[#allocation4 + $0x189] sm:$0xff] %v2110_v56 }
 0x3db   : > { %v2062_v4 = vpop.f32.mrf.mxu1 }
 0x3dc   : > { %2172 = vst [vmem:[#allocation4 + $0xc9] sm:$0xff] %v2062_v4  ;;  %v2344_v63 = vld [vmem:[#allocation4 + $0x78] ss:$2 sm:$0xff]  ;;  %v2360_v8 = vld [vmem:[#allocation4 + $0x79] ss:$2 sm:$0xff] }
 0x3dd   : > { %v2370_v9 = vmax.f32 %v2344_v63, %v2360_v8  ;;  %v2384_v31 = vld [vmem:[#allocation4 + $0x7a] ss:$2 sm:$0xff] }
 0x3de   : > { %v2346_v7 = vld [vmem:[#allocation4 + $0x90] ss:$2 sm:$0xff]  ;;  %v2362_v58 = vld [vmem:[#allocation4 + $0x91] ss:$2 sm:$0xff] }
 0x3df   : > { %v2394_v45 = vmax.f32 %v2370_v9, %v2384_v31  ;;  %v2371_v27 = vmax.f32 %v2346_v7, %v2362_v58  ;;  %v2386_v35 = vld [vmem:[#allocation4 + $0x92] ss:$2 sm:$0xff] }
 0x3e0   : > { %v2196_v20 = vld [vmem:[#allocation4 + $0x68] sm:$0xff]  ;;  %v2197_v13 = vld [vmem:[#allocation4 + $0x70] sm:$0x3] }
 0x3e1   : > { %v2267_v44 = vld [vmem:[#allocation4 + $0x70] sm:$0x3]  ;;  %v2244_v0 = vmax.f32 %v2196_v20, %v2220_v46  ;;  %v2245_v2 = vmax.f32 %v2197_v13, %v2221_v52  ;;  %v2290_v61 = vmax.f32 %v2241_v18, %v2196_v20  ;;  %v2284_v1 = vld [vmem:[#allocation4 + $0x188] sm:$0xff]  ;;  %2402 = vst [vmem:[%s3871_s28 + $0x28] sm:$0xff] %v2394_v45  ;;  %v2395_v42 = vmax.f32 %v2371_v27, %v2386_v35 }
 0x3e2   : > { %v2291_v3 = vmax.f32 %v2242_v37, %v2267_v44  ;;  %v2285_v16 = vld [vmem:[#allocation4 + $0x190] sm:$0x3]  ;;  %v2308_v23 = vmax.f32 %v2259_v15, %v2284_v1 }
 0x3e3   : > { %v2293_v26 = vmax.f32 %v2244_v0, %v2199_v55  ;;  %v2294_v17 = vmax.f32 %v2245_v2, %v2270_v59  ;;  %2314 = vst [vmem:[#allocation4 + $0x20] sm:$0xff] %v2290_v61  ;;  %v2202_v38 = vld [vmem:[#allocation4 + $0xc8] sm:$0xff]  ;;  %v2203_v39 = vld [vmem:[#allocation4 + $0xd0] sm:$0x3]  ;;  %v2309_v60 = vmax.f32 %v2260_v41, %v2285_v16 }
 0x3e4   : > { %v2273_v14 = vld [vmem:[#allocation4 + $0xd0] sm:$0x3]  ;;  %2315 = vst [vmem:[#allocation4 + $0x28] sm:$0x3] %v2291_v3  ;;  %v2250_v30 = vmax.f32 %v2202_v38, %v2226_v33  ;;  %v2251_v43 = vmax.f32 %v2203_v39, %v2227_v5  ;;  %v2296_v22 = vmax.f32 %v2247_v25, %v2202_v38 }
 0x3e5   : > { %2317 = vst [vmem:[#allocation4 + $0x38] sm:$0xff] %v2293_v26  ;;  %v2297_v10 = vmax.f32 %v2248_v21, %v2273_v14 }
 0x3e6   : > { %2318 = vst [vmem:[#allocation4 + $0x40] sm:$0x3] %v2294_v17  ;;  %v2299_v36 = vmax.f32 %v2250_v30, %v3875_v19  ;;  %v2300_v34 = vmax.f32 %v2251_v43, %v2276_v29 }
 0x3e7   : > { %2332 = vst [vmem:[#allocation4 + $0xb0] sm:$0xff] %v2308_v23 }
 0x3e8   : > { %2333 = vst [vmem:[#allocation4 + $0xb8] sm:$0x3] %v2309_v60 }
 0x3e9   : > { %2320 = vst [vmem:[#allocation4 + $0x50] sm:$0xff] %v2296_v22 }
 0x3ea   : > { %2321 = vst [vmem:[#allocation4 + $0x58] sm:$0x3] %v2297_v10  ;;  %v2336_v40 = vld [vmem:[#allocation4 + $0x18] ss:$2 sm:$0xff]  ;;  %v2352_v48 = vld [vmem:[#allocation4 + $0x19] ss:$2 sm:$0xff] }
 0x3eb   : > { %2323 = vst [vmem:[#allocation4 + $0x68] sm:$0xff] %v2299_v36  ;;  %v2366_v46 = vmax.f32 %v2336_v40, %v2352_v48  ;;  %v2376_v24 = vld [vmem:[#allocation4 + $0x1a] ss:$2 sm:$0xff] }
 0x3ec   : > { %2324 = vst [vmem:[#allocation4 + $0x70] sm:$0x3] %v2300_v34  ;;  %v2338_v47 = vld [vmem:[#allocation4 + $0x30] ss:$2 sm:$0xff]  ;;  %v2354_v52 = vld [vmem:[#allocation4 + $0x31] ss:$2 sm:$0xff] }
 0x3ed   : > { %v2367_v50 = vmax.f32 %v2338_v47, %v2354_v52  ;;  %v2390_v19 = vmax.f32 %v2366_v46, %v2376_v24  ;;  %2403 = vst [vmem:[%s3871_s28 + $0x30] sm:$0xff] %v2395_v42  ;;  %v2378_v53 = vld [vmem:[#allocation4 + $0x32] ss:$2 sm:$0xff] }
 0x3ee   : > { %v2348_v51 = vld [vmem:[#allocation4 + $0xa8] ss:$2 sm:$0xff]  ;;  %v2364_v55 = vld [vmem:[#allocation4 + $0xa9] ss:$2 sm:$0xff] }
 0x3ef   : > { %v2372_v54 = vmax.f32 %v2348_v51, %v2364_v55  ;;  %v2391_v59 = vmax.f32 %v2367_v50, %v2378_v53  ;;  %2398 = vst [vmem:[%s3871_s28 + $0x8] sm:$0xff] %v2390_v19  ;;  %v2388_v4 = vld [vmem:[#allocation4 + $0xaa] ss:$2 sm:$0xff] }
 0x3f0   : > { %v2340_v56 = vld [vmem:[#allocation4 + $0x48] ss:$2 sm:$0xff]  ;;  %v2356_v32 = vld [vmem:[#allocation4 + $0x49] ss:$2 sm:$0xff] }
 0x3f1   : > { %v2368_v57 = vmax.f32 %v2340_v56, %v2356_v32  ;;  %v2396_v63 = vmax.f32 %v2372_v54, %v2388_v4  ;;  %2399 = vst [vmem:[%s3871_s28 + $0x10] sm:$0xff] %v2391_v59  ;;  %v2380_v9 = vld [vmem:[#allocation4 + $0x4a] ss:$2 sm:$0xff] }
 0x3f2   : > { %v2342_v8 = vld [vmem:[#allocation4 + $0x60] ss:$2 sm:$0xff]  ;;  %v2358_v11 = vld [vmem:[#allocation4 + $0x61] ss:$2 sm:$0xff] }
 0x3f3   : > { %v2369_v28 = vmax.f32 %v2342_v8, %v2358_v11  ;;  %v2392_v31 = vmax.f32 %v2368_v57, %v2380_v9  ;;  %2404 = vst [vmem:[%s3871_s28 + $0x38] sm:$0xff] %v2396_v63  ;;  %v2382_v6 = vld [vmem:[#allocation4 + $0x62] ss:$2 sm:$0xff] }
 0x3f5   : > { %v2393_v18 = vmax.f32 %v2369_v28, %v2382_v6  ;;  %2400 = vst [vmem:[%s3871_s28 + $0x18] sm:$0xff] %v2392_v31 }
 0x3f7   : > { %2401 = vst [vmem:[%s3871_s28 + $0x20] sm:$0xff] %v2393_v18 }
 0x3f8   : > { %2622 = shalt.err (!%p2619_p3)
}
 0x3f9   : > { %s2669_s23 = smov 128  }
 0x3fa   : > { %2545 = dma.vmem_to_hbm [thread:$0]  (%p2723_p5), %s2419_s13, 1024, %s2421_s5, %s2406_s6, %s2669_s23, %s2669_s23, %s2661_s27  }
 0x3fb PF: > { %p2551_p4 = scmp.ge.s32.totalorder %s2657_s12, 2  ;;  %s2435_s24 = sand.u32 1, %s2645_s9  }
 0x3fc   : > { %s2436_s25 = scalar_lea.sflag [#allocation6], %s2435_s24 }
 0x3fd   : > { %p2548_p7 = pnand %p2551_p4, %p2727_p6 }
 0x3ff   : > { %p2549_p8 = pneg %p2548_p7 }
 0x401   : > { %2640 = dma.done.wait (%p2549_p8), %s2436_s25, 1024  }
 0x402   : > { %2642 = vsyncadd (%p2549_p8), %s2436_s25, 4294966272  ;;  %p12_p9 = scmp.ge.s32.totalorder %s2710_s15, 4   ;;  %s4018_s9 = smov %s2649_s10 }
 0x403   : > { %s4019_s10 = smov %s2653_s11  ;;  %s4020_s11 = smov %s2721_s18 }
 0x404   : > { %s4021_s12 = smov %s2710_s15  ;;  %14 = sbr.rel (!%p12_p9) target bundleno = 3 (0x3), region = 92 }
 0x409   :  { %2442 = vsyncpa [#allocation6], 1 }
 0x40a   :  { %2444 = vsyncpa [#allocation6 + $0x1], 1 }

</bundles_post_ra>
